<compile_context>
chip_gen: v5e
topology: v5e:2x2
jax: 0.10.0
libtpu: 0.0.40
codegen_flags: <defaults>
</compile_context>

<pallas_src>
import jax
import jax.numpy as jnp
from jax import lax
from jax.experimental import pallas as pl
from jax.experimental.pallas import tpu as pltpu


# ---------------------------------------------------------------------------
# Kernel 1: fused im2col (VMEM scratch, never HBM) + single MXU matmul per tile
#           (bf16 operands, f32 accum) + bias + per-tile BN partial statistics.
# Grid = (N, Hout // TH). Each step produces TH output rows of one image.
# ---------------------------------------------------------------------------
def _make_conv_kernel(KH, KW, Wout, Cin, Cout_p, TH):
    M_t = TH * Wout

    def kernel(xp_ref, w_ref, b_ref, y_ref, ps_ref, psq_ref, lhs_ref):
        # xp_ref : (1, Hp, Wp, Cin)      bf16  whole padded image (h-tile invariant)
        # w_ref  : (KH*KW*Cin, Cout_p)   bf16  im2col-ordered weights (grid invariant)
        # b_ref  : (1, Cout_p)           f32   conv bias (zero-padded channels)
        # y_ref  : (1, TH*Wout, Cout_p)  bf16  conv+bias tile, rows flattened
        # ps_ref : (1, 1, 8, Cout_p)     f32   per-tile channel partial sums
        # psq_ref: (1, 1, 8, Cout_p)     f32   per-tile channel partial sums of squares
        # lhs_ref: (TH*Wout, KH*KW*Cin)  bf16  VMEM scratch: fused-im2col patch
        j = pl.program_id(1)
        h0 = j * TH                                    # first padded input row of tile

        # Fused im2col: KH*KW small bf16 slabs, sliced BEFORE the matmul (tiny shifts
        # instead of shifting f32 results), written at lane offsets into the scratch.
        for dh in range(KH):
            rows = xp_ref[0, pl.ds(h0 + dh, TH), :, :]          # (TH, Wp, Cin) bf16
            for dw in range(KW):
                t = dh * KW + dw
                lhs_ref[:, t * Cin:(t + 1) * Cin] = (
                    rows[:, dw:dw + Wout, :].reshape(M_t, Cin))

        # One MXU pass: M = TH*Wout, K = KH*KW*Cin, N = Cout_p; f32 accumulation.
        acc = jnp.dot(lhs_ref[...], w_ref[...],
                      preferred_element_type=jnp.float32) + b_ref[...]

        y_ref[0] = acc.astype(jnp.bfloat16)
        # Per-tile BN partials: reduce over whole (8,128) vreg-tiles -> pure VPU adds.
        ps_ref[0, 0] = jnp.sum(acc.reshape(-1, 8, Cout_p), axis=0)
        psq_ref[0, 0] = jnp.sum((acc * acc).reshape(-1, 8, Cout_p), axis=0)

    return kernel


# ---------------------------------------------------------------------------
# Kernel 2: fused normalize + ReLU + channel-slice + NHWC->NCHW transpose.
# Writes the final (N, Cout, H*W) layout directly (lane-dense, H*W lanes).
# ---------------------------------------------------------------------------
def _make_bn_relu_kernel(Cout_k):
    def kernel(y_ref, scale_ref, shift_ref, o_ref):
        # y_ref: (1, HW, Cout_p) bf16 ; scale/shift: (Cout_p, 1) f32 ; o_ref: (1, Cout_k, HW) f32
        yt = jnp.transpose(y_ref[0].astype(jnp.float32))            # (Cout_p, HW), XLU
        z = yt[:Cout_k] * scale_ref[:Cout_k] + shift_ref[:Cout_k]   # (Cout_k, HW)
        o_ref[0] = jnp.maximum(z, 0.0)

    return kernel


def _pick_tile_h(Hout, Wout):
    """Largest divisor TH of Hout with TH*Wout <= 512 and (TH*Wout) % 8 == 0."""
    best = 0
    for th in range(1, Hout + 1):
        if Hout % th == 0 and th * Wout <= 512 and (th * Wout) % 8 == 0:
            best = th
    return best


# ---------------------------------------------------------------------------
# Wrapper
# ---------------------------------------------------------------------------
@jax.jit
def basic_conv2d_forward(x_nchw, w, b, gamma, beta):
    """Conv2d(kxk, stride=1, 'same', bias) + BatchNorm2d(batch stats) + ReLU -> NCHW."""
    N, Cin, H, W = x_nchw.shape
    Cout, _, KH, KW = w.shape
    ph, pw = KH // 2, KW // 2
    Hp, Wp = H + 2 * ph, W + 2 * pw
    Hout, Wout = H, W                                   # stride 1, 'same' padding
    Cout_p = ((Cout + 127) // 128) * 128                # lane-dense intermediate channels
    Cout8 = ((Cout + 7) // 8) * 8                       # sublane-aligned final channels
    eps = 1e-5

    TH = _pick_tile_h(Hout, Wout)
    assert TH > 0, "need a row tile TH with (TH*W) % 8 == 0"
    n_ht = Hout // TH
    M_t = TH * Wout
    HW = Hout * Wout
    KTAP = KH * KW * Cin

    # TODO(synk): if the surrounding model keeps activations NHWC+bf16 between layers,
    # this layout-conversion pass disappears entirely.
    xp = jnp.pad(jnp.transpose(x_nchw, (0, 2, 3, 1)),
                 ((0, 0), (ph, ph), (pw, pw), (0, 0))).astype(jnp.bfloat16)
    # OIHW -> (KH*KW*Cin, Cout_p) in im2col tap order, zero-padded output channels.
    w2 = jnp.transpose(w, (2, 3, 1, 0)).reshape(KTAP, Cout)
    w2 = jnp.pad(w2, ((0, 0), (0, Cout_p - Cout))).astype(jnp.bfloat16)
    b_p = jnp.pad(b.astype(jnp.float32), (0, Cout_p - Cout)).reshape(1, Cout_p)

    conv_kernel = _make_conv_kernel(KH, KW, Wout, Cin, Cout_p, TH)
    y, ps, psq = pl.pallas_call(
        conv_kernel,
        out_shape=(
            jax.ShapeDtypeStruct((N, HW, Cout_p), jnp.bfloat16),
            jax.ShapeDtypeStruct((N, n_ht, 8, Cout_p), jnp.float32),
            jax.ShapeDtypeStruct((N, n_ht, 8, Cout_p), jnp.float32),
        ),
        grid_spec=pltpu.PrefetchScalarGridSpec(
            num_scalar_prefetch=0,
            grid=(N, n_ht),
            in_specs=[
                # Whole padded image, h-tile-invariant -> DMA'd once per image, stays
                # resident in VMEM while that image's tiles are produced.
                # TODO(synk): for very large Hp*Wp*Cin feature maps (v7x: 64 MiB VMEM)
                # switch to a rolling (TH+KH-1)-row input window.
                pl.BlockSpec((1, Hp, Wp, Cin), lambda i, j: (i, 0, 0, 0)),
                pl.BlockSpec((KTAP, Cout_p), lambda i, j: (0, 0)),
                pl.BlockSpec((1, Cout_p), lambda i, j: (0, 0)),
            ],
            out_specs=(
                pl.BlockSpec((1, M_t, Cout_p), lambda i, j: (i, j, 0)),
                pl.BlockSpec((1, 1, 8, Cout_p), lambda i, j: (i, j, 0, 0)),
                pl.BlockSpec((1, 1, 8, Cout_p), lambda i, j: (i, j, 0, 0)),
            ),
            scratch_shapes=[pltpu.VMEM((M_t, KTAP), jnp.bfloat16)],
        ),
        compiler_params=pltpu.CompilerParams(
            # Per-tile stats blocks -> no output is resident across a grid axis, so both
            # axes shard across TensorCores on v7x.
            dimension_semantics=("parallel", "parallel")),
    )(xp, w2, b_p)

    # BatchNorm batch statistics from the in-kernel partials (y is never re-read).
    M_total = N * Hout * Wout
    s1 = jnp.sum(ps, axis=(0, 1, 2))
    s2 = jnp.sum(psq, axis=(0, 1, 2))
    mean = s1 / M_total
    # TODO(synk): E[x^2]-E[x]^2 in f32 can cancel for large-mean channels; a shifted-moment
    # formulation would be safer for deep-layer activations.
    var = jnp.maximum(s2 / M_total - mean * mean, 0.0)   # biased var, like BN forward
    inv = lax.rsqrt(var + eps)
    gamma_p = jnp.pad(gamma.astype(jnp.float32), (0, Cout_p - Cout))
    beta_p = jnp.pad(beta.astype(jnp.float32), (0, Cout_p - Cout))
    scale = (gamma_p * inv).reshape(Cout_p, 1)           # per-channel, column layout for
    shift = (beta_p - mean * gamma_p * inv).reshape(Cout_p, 1)  # the transposed epilogue

    # Fused normalize + ReLU + channel slice + NHWC->NCHW transpose epilogue.
    out3 = pl.pallas_call(
        _make_bn_relu_kernel(Cout8),
        out_shape=jax.ShapeDtypeStruct((N, Cout8, HW), jnp.float32),
        grid_spec=pltpu.PrefetchScalarGridSpec(
            num_scalar_prefetch=0,
            grid=(N,),
            in_specs=[
                pl.BlockSpec((1, HW, Cout_p), lambda i: (i, 0, 0)),
                pl.BlockSpec((Cout_p, 1), lambda i: (0, 0)),
                pl.BlockSpec((Cout_p, 1), lambda i: (0, 0)),
            ],
            out_specs=pl.BlockSpec((1, Cout8, HW), lambda i: (i, 0, 0)),
        ),
        compiler_params=pltpu.CompilerParams(dimension_semantics=("parallel",)),
    )(y, scale, shift)

    out = out3.reshape(N, Cout8, Hout, Wout)             # free reshape (metadata only)
    if Cout8 != Cout:
        out = out[:, :Cout]
    return out


if __name__ == "__main__":
    key = jax.random.PRNGKey(0)
    kx, kw_, kb, kg, kbt = jax.random.split(key, 5)

    N, Cin, H, W = 2, 4, 16, 16
    Cout, K = 8, 3

    x = jax.random.normal(kx, (N, Cin, H, W), jnp.float32)
    fan_in = Cin * K * K
    bound = 1.0 / (fan_in ** 0.5)
    w = jax.random.uniform(kw_, (Cout, Cin, K, K), jnp.float32, -bound, bound)
    b = jax.random.uniform(kb, (Cout,), jnp.float32, -bound, bound)
    gamma = jax.random.uniform(kg, (Cout,), jnp.float32, 0.5, 1.5)
    beta = 0.1 * jax.random.normal(kbt, (Cout,), jnp.float32)

    out = jax.block_until_ready(basic_conv2d_forward(x, w, b, gamma, beta))

    # Pure-JAX reference with the PyTorch module's training-mode semantics:
    # conv(+bias) -> BatchNorm (batch stats, biased var) -> ReLU.
    # Conv operands and the stored conv intermediate are rounded to bf16 to mirror the
    # kernel (bf16 MXU operands; bf16 y in HBM); BN statistics are taken from the f32
    # conv, exactly as the kernel takes them from its f32 accumulator.
    x_bf = x.astype(jnp.bfloat16).astype(jnp.float32)
    w_bf = w.astype(jnp.bfloat16).astype(jnp.float32)
    ref_conv = lax.conv_general_dilated(
        x_bf, w_bf, window_strides=(1, 1), padding=((1, 1), (1, 1)),
        dimension_numbers=("NCHW", "OIHW", "NCHW"),
    ) + b[None, :, None, None]
    mean = ref_conv.mean(axis=(0, 2, 3), keepdims=True)
    var = ref_conv.var(axis=(0, 2, 3), keepdims=True)
    y_bf = ref_conv.astype(jnp.bfloat16).astype(jnp.float32)
    ref = jnp.maximum(
        (y_bf - mean) * lax.rsqrt(var + 1e-5)
        * gamma[None, :, None, None] + beta[None, :, None, None],
        0.0,
    )

    assert out.shape == (N, Cout, H, W)
    # Tolerance covers rare one-bf16-ulp differences where MXU vs XLA f32 accumulation
    # order flips the bf16 rounding of the stored intermediate.
    assert jnp.allclose(out, ref, atol=1e-2, rtol=1e-2), "mismatch vs reference"
    print("KERNEL_OK")
</pallas_src>

<mosaic_0001>
module attributes {stable_mosaic.version = 11 : i64} {
  func.func @kernel(%arg0: i32, %arg1: i32, %arg2: memref<1x18x18x4xbf16, #tpu.memory_space<vmem>>, %arg3: memref<36x128xbf16, #tpu.memory_space<vmem>>, %arg4: memref<1x128xf32, #tpu.memory_space<vmem>>, %arg5: memref<1x256x128xbf16, #tpu.memory_space<vmem>>, %arg6: memref<1x1x8x128xf32, #tpu.memory_space<vmem>>, %arg7: memref<1x1x8x128xf32, #tpu.memory_space<vmem>>, %arg8: memref<256x36xbf16, #tpu.memory_space<vmem>>) attributes {dimension_semantics = [#tpu.dimension_semantics<parallel>, #tpu.dimension_semantics<parallel>], iteration_bounds = array<i64: 2, 1>, scalar_prefetch = 0 : i64, scratch_operands = 1 : i64, tpu.core_type = #tpu.core_type<tc>, window_params = [{transform_indices = @transform_0, window_bounds = array<i64: 1, 18, 18, 4>}, {pipeline_mode = #tpu.pipeline_mode<synchronous>, transform_indices = @transform_1, window_bounds = array<i64: 36, 128>}, {pipeline_mode = #tpu.pipeline_mode<synchronous>, transform_indices = @transform_2, window_bounds = array<i64: 1, 128>}, {transform_indices = @transform_3, window_bounds = array<i64: 1, 256, 128>}, {transform_indices = @transform_4, window_bounds = array<i64: 1, 1, 8, 128>}, {transform_indices = @transform_5, window_bounds = array<i64: 1, 1, 8, 128>}]} {
    %c16_i32 = arith.constant 16 : i32
    %0 = arith.muli %arg1, %c16_i32 : i32
    %c0_i32 = arith.constant 0 : i32
    %1 = arith.addi %0, %c0_i32 : i32
    %c0 = arith.constant 0 : index
    %2 = arith.index_cast %1 : i32 to index
    %c0_0 = arith.constant 0 : index
    %c0_1 = arith.constant 0 : index
    %3 = vector.load %arg2[%c0, %2, %c0_0, %c0_1] : memref<1x18x18x4xbf16, #tpu.memory_space<vmem>>, vector<1x16x18x4xbf16>
    %4 = vector.shape_cast %3 : vector<1x16x18x4xbf16> to vector<16x18x4xbf16>
    %5 = vector.extract_strided_slice %4 {offsets = [0, 0, 0], sizes = [16, 16, 4], strides = [1, 1, 1]} : vector<16x18x4xbf16> to vector<16x16x4xbf16>
    %6 = vector.shape_cast %5 : vector<16x16x4xbf16> to vector<256x4xbf16>
    %c0_2 = arith.constant 0 : index
    %c0_3 = arith.constant 0 : index
    %7 = vector.load %arg8[%c0_2, %c0_3] : memref<256x36xbf16, #tpu.memory_space<vmem>>, vector<256x4xbf16>
    tpu.vector_store %arg8[%c0_2, %c0_3], %6 {strides = array<i32>} : memref<256x36xbf16, #tpu.memory_space<vmem>>, vector<256x4xbf16>,
    %8 = vector.extract_strided_slice %4 {offsets = [0, 1, 0], sizes = [16, 16, 4], strides = [1, 1, 1]} : vector<16x18x4xbf16> to vector<16x16x4xbf16>
    %9 = vector.shape_cast %8 : vector<16x16x4xbf16> to vector<256x4xbf16>
    %c0_4 = arith.constant 0 : index
    %c4 = arith.constant 4 : index
    %10 = vector.load %arg8[%c0_4, %c4] : memref<256x36xbf16, #tpu.memory_space<vmem>>, vector<256x4xbf16>
    tpu.vector_store %arg8[%c0_4, %c4], %9 {strides = array<i32>} : memref<256x36xbf16, #tpu.memory_space<vmem>>, vector<256x4xbf16>,
    %11 = vector.extract_strided_slice %4 {offsets = [0, 2, 0], sizes = [16, 16, 4], strides = [1, 1, 1]} : vector<16x18x4xbf16> to vector<16x16x4xbf16>
    %12 = vector.shape_cast %11 : vector<16x16x4xbf16> to vector<256x4xbf16>
    %c0_5 = arith.constant 0 : index
    %c8 = arith.constant 8 : index
    %13 = vector.load %arg8[%c0_5, %c8] : memref<256x36xbf16, #tpu.memory_space<vmem>>, vector<256x4xbf16>
    tpu.vector_store %arg8[%c0_5, %c8], %12 {strides = array<i32>} : memref<256x36xbf16, #tpu.memory_space<vmem>>, vector<256x4xbf16>,
    %c1_i32 = arith.constant 1 : i32
    %14 = arith.addi %0, %c1_i32 : i32
    %c0_6 = arith.constant 0 : index
    %15 = arith.index_cast %14 : i32 to index
    %c0_7 = arith.constant 0 : index
    %c0_8 = arith.constant 0 : index
    %16 = vector.load %arg2[%c0_6, %15, %c0_7, %c0_8] : memref<1x18x18x4xbf16, #tpu.memory_space<vmem>>, vector<1x16x18x4xbf16>
    %17 = vector.shape_cast %16 : vector<1x16x18x4xbf16> to vector<16x18x4xbf16>
    %18 = vector.extract_strided_slice %17 {offsets = [0, 0, 0], sizes = [16, 16, 4], strides = [1, 1, 1]} : vector<16x18x4xbf16> to vector<16x16x4xbf16>
    %19 = vector.shape_cast %18 : vector<16x16x4xbf16> to vector<256x4xbf16>
    %c0_9 = arith.constant 0 : index
    %c12 = arith.constant 12 : index
    %20 = vector.load %arg8[%c0_9, %c12] : memref<256x36xbf16, #tpu.memory_space<vmem>>, vector<256x4xbf16>
    tpu.vector_store %arg8[%c0_9, %c12], %19 {strides = array<i32>} : memref<256x36xbf16, #tpu.memory_space<vmem>>, vector<256x4xbf16>,
    %21 = vector.extract_strided_slice %17 {offsets = [0, 1, 0], sizes = [16, 16, 4], strides = [1, 1, 1]} : vector<16x18x4xbf16> to vector<16x16x4xbf16>
    %22 = vector.shape_cast %21 : vector<16x16x4xbf16> to vector<256x4xbf16>
    %c0_10 = arith.constant 0 : index
    %c16 = arith.constant 16 : index
    %23 = vector.load %arg8[%c0_10, %c16] : memref<256x36xbf16, #tpu.memory_space<vmem>>, vector<256x4xbf16>
    tpu.vector_store %arg8[%c0_10, %c16], %22 {strides = array<i32>} : memref<256x36xbf16, #tpu.memory_space<vmem>>, vector<256x4xbf16>,
    %24 = vector.extract_strided_slice %17 {offsets = [0, 2, 0], sizes = [16, 16, 4], strides = [1, 1, 1]} : vector<16x18x4xbf16> to vector<16x16x4xbf16>
    %25 = vector.shape_cast %24 : vector<16x16x4xbf16> to vector<256x4xbf16>
    %c0_11 = arith.constant 0 : index
    %c20 = arith.constant 20 : index
    %26 = vector.load %arg8[%c0_11, %c20] : memref<256x36xbf16, #tpu.memory_space<vmem>>, vector<256x4xbf16>
    tpu.vector_store %arg8[%c0_11, %c20], %25 {strides = array<i32>} : memref<256x36xbf16, #tpu.memory_space<vmem>>, vector<256x4xbf16>,
    %c2_i32 = arith.constant 2 : i32
    %27 = arith.addi %0, %c2_i32 : i32
    %c0_12 = arith.constant 0 : index
    %28 = arith.index_cast %27 : i32 to index
    %c0_13 = arith.constant 0 : index
    %c0_14 = arith.constant 0 : index
    %29 = vector.load %arg2[%c0_12, %28, %c0_13, %c0_14] : memref<1x18x18x4xbf16, #tpu.memory_space<vmem>>, vector<1x16x18x4xbf16>
    %30 = vector.shape_cast %29 : vector<1x16x18x4xbf16> to vector<16x18x4xbf16>
    %31 = vector.extract_strided_slice %30 {offsets = [0, 0, 0], sizes = [16, 16, 4], strides = [1, 1, 1]} : vector<16x18x4xbf16> to vector<16x16x4xbf16>
    %32 = vector.shape_cast %31 : vector<16x16x4xbf16> to vector<256x4xbf16>
    %c0_15 = arith.constant 0 : index
    %c24 = arith.constant 24 : index
    %33 = vector.load %arg8[%c0_15, %c24] : memref<256x36xbf16, #tpu.memory_space<vmem>>, vector<256x4xbf16>
    tpu.vector_store %arg8[%c0_15, %c24], %32 {strides = array<i32>} : memref<256x36xbf16, #tpu.memory_space<vmem>>, vector<256x4xbf16>,
    %34 = vector.extract_strided_slice %30 {offsets = [0, 1, 0], sizes = [16, 16, 4], strides = [1, 1, 1]} : vector<16x18x4xbf16> to vector<16x16x4xbf16>
    %35 = vector.shape_cast %34 : vector<16x16x4xbf16> to vector<256x4xbf16>
    %c0_16 = arith.constant 0 : index
    %c28 = arith.constant 28 : index
    %36 = vector.load %arg8[%c0_16, %c28] : memref<256x36xbf16, #tpu.memory_space<vmem>>, vector<256x4xbf16>
    tpu.vector_store %arg8[%c0_16, %c28], %35 {strides = array<i32>} : memref<256x36xbf16, #tpu.memory_space<vmem>>, vector<256x4xbf16>,
    %37 = vector.extract_strided_slice %30 {offsets = [0, 2, 0], sizes = [16, 16, 4], strides = [1, 1, 1]} : vector<16x18x4xbf16> to vector<16x16x4xbf16>
    %38 = vector.shape_cast %37 : vector<16x16x4xbf16> to vector<256x4xbf16>
    %c0_17 = arith.constant 0 : index
    %c32 = arith.constant 32 : index
    %39 = vector.load %arg8[%c0_17, %c32] : memref<256x36xbf16, #tpu.memory_space<vmem>>, vector<256x4xbf16>
    tpu.vector_store %arg8[%c0_17, %c32], %38 {strides = array<i32>} : memref<256x36xbf16, #tpu.memory_space<vmem>>, vector<256x4xbf16>,
    %c0_18 = arith.constant 0 : index
    %c0_19 = arith.constant 0 : index
    %40 = vector.load %arg8[%c0_18, %c0_19] : memref<256x36xbf16, #tpu.memory_space<vmem>>, vector<256x36xbf16>
    %c0_20 = arith.constant 0 : index
    %c0_21 = arith.constant 0 : index
    %41 = vector.load %arg3[%c0_20, %c0_21] : memref<36x128xbf16, #tpu.memory_space<vmem>>, vector<36x128xbf16>
    %cst = arith.constant dense<0.000000e+00> : vector<256x128xf32>
    %42 = tpu.matmul %40, %41, %cst {dimension_numbers = #tpu.dot_dimension_numbers<[1], [0], [0], [1], [0, 0, 1, 1], [], []>} : vector<256x36xbf16>, vector<36x128xbf16>, vector<256x128xf32> -> vector<256x128xf32>
    %c0_22 = arith.constant 0 : index
    %c0_23 = arith.constant 0 : index
    %43 = vector.load %arg4[%c0_22, %c0_23] : memref<1x128xf32, #tpu.memory_space<vmem>>, vector<1x128xf32>
    %44 = vector.broadcast %43 : vector<1x128xf32> to vector<256x128xf32>
    %45 = arith.addf %42, %44 : vector<256x128xf32>
    %46 = arith.truncf %45 : vector<256x128xf32> to vector<256x128xbf16>
    %c0_24 = arith.constant 0 : index
    %c0_25 = arith.constant 0 : index
    %c0_26 = arith.constant 0 : index
    %47 = vector.load %arg5[%c0_24, %c0_25, %c0_26] : memref<1x256x128xbf16, #tpu.memory_space<vmem>>, vector<1x256x128xbf16>
    %48 = vector.shape_cast %47 : vector<1x256x128xbf16> to vector<256x128xbf16>
    %49 = vector.shape_cast %46 : vector<256x128xbf16> to vector<1x256x128xbf16>
    tpu.vector_store %arg5[%c0_24, %c0_25, %c0_26], %49 {strides = array<i32>} : memref<1x256x128xbf16, #tpu.memory_space<vmem>>, vector<1x256x128xbf16>,
    %50 = vector.shape_cast %45 : vector<256x128xf32> to vector<32x8x128xf32>
    %cst_27 = arith.constant dense<0.000000e+00> : vector<8x128xf32>
    %51 = vector.multi_reduction <add>, %50, %cst_27 [0] : vector<32x8x128xf32> to vector<8x128xf32>
    %c0_28 = arith.constant 0 : index
    %c0_29 = arith.constant 0 : index
    %c0_30 = arith.constant 0 : index
    %c0_31 = arith.constant 0 : index
    %52 = vector.load %arg6[%c0_28, %c0_29, %c0_30, %c0_31] : memref<1x1x8x128xf32, #tpu.memory_space<vmem>>, vector<1x1x8x128xf32>
    %53 = vector.shape_cast %52 : vector<1x1x8x128xf32> to vector<8x128xf32>
    %54 = vector.shape_cast %51 : vector<8x128xf32> to vector<1x1x8x128xf32>
    tpu.vector_store %arg6[%c0_28, %c0_29, %c0_30, %c0_31], %54 {strides = array<i32>} : memref<1x1x8x128xf32, #tpu.memory_space<vmem>>, vector<1x1x8x128xf32>,
    %55 = arith.mulf %45, %45 : vector<256x128xf32>
    %56 = vector.shape_cast %55 : vector<256x128xf32> to vector<32x8x128xf32>
    %cst_32 = arith.constant dense<0.000000e+00> : vector<8x128xf32>
    %57 = vector.multi_reduction <add>, %56, %cst_32 [0] : vector<32x8x128xf32> to vector<8x128xf32>
    %c0_33 = arith.constant 0 : index
    %c0_34 = arith.constant 0 : index
    %c0_35 = arith.constant 0 : index
    %c0_36 = arith.constant 0 : index
    %58 = vector.load %arg7[%c0_33, %c0_34, %c0_35, %c0_36] : memref<1x1x8x128xf32, #tpu.memory_space<vmem>>, vector<1x1x8x128xf32>
    %59 = vector.shape_cast %58 : vector<1x1x8x128xf32> to vector<8x128xf32>
    %60 = vector.shape_cast %57 : vector<8x128xf32> to vector<1x1x8x128xf32>
    tpu.vector_store %arg7[%c0_33, %c0_34, %c0_35, %c0_36], %60 {strides = array<i32>} : memref<1x1x8x128xf32, #tpu.memory_space<vmem>>, vector<1x1x8x128xf32>,
    return
  }
  func.func @transform_0(%arg0: i32, %arg1: i32) -> (i32, i32, i32, i32) {
    %c0_i32 = arith.constant 0 : i32
    %c0_i32_0 = arith.constant 0 : i32
    %c0_i32_1 = arith.constant 0 : i32
    %c0_i32_2 = arith.constant 0 : i32
    return %arg0, %c0_i32, %c0_i32_0, %c0_i32_1 : i32, i32, i32, i32
  }
  func.func @transform_1(%arg0: i32, %arg1: i32) -> (i32, i32) {
    %c0_i32 = arith.constant 0 : i32
    %c0_i32_0 = arith.constant 0 : i32
    %c0_i32_1 = arith.constant 0 : i32
    return %c0_i32, %c0_i32_0 : i32, i32
  }
  func.func @transform_2(%arg0: i32, %arg1: i32) -> (i32, i32) {
    %c0_i32 = arith.constant 0 : i32
    %c0_i32_0 = arith.constant 0 : i32
    %c0_i32_1 = arith.constant 0 : i32
    return %c0_i32, %c0_i32_0 : i32, i32
  }
  func.func @transform_3(%arg0: i32, %arg1: i32) -> (i32, i32, i32) {
    %c0_i32 = arith.constant 0 : i32
    %c0_i32_0 = arith.constant 0 : i32
    return %arg0, %arg1, %c0_i32 : i32, i32, i32
  }
  func.func @transform_4(%arg0: i32, %arg1: i32) -> (i32, i32, i32, i32) {
    %c0_i32 = arith.constant 0 : i32
    %c0_i32_0 = arith.constant 0 : i32
    %c0_i32_1 = arith.constant 0 : i32
    return %arg0, %arg1, %c0_i32, %c0_i32_0 : i32, i32, i32, i32
  }
  func.func @transform_5(%arg0: i32, %arg1: i32) -> (i32, i32, i32, i32) {
    %c0_i32 = arith.constant 0 : i32
    %c0_i32_0 = arith.constant 0 : i32
    %c0_i32_1 = arith.constant 0 : i32
    return %arg0, %arg1, %c0_i32, %c0_i32_0 : i32, i32, i32, i32
  }
}

module attributes {stable_mosaic.version = 11 : i64} {
  func.func @kernel(%arg0: i32, %arg1: memref<1x256x128xbf16, #tpu.memory_space<vmem>>, %arg2: memref<128x1xf32, #tpu.memory_space<vmem>>, %arg3: memref<128x1xf32, #tpu.memory_space<vmem>>, %arg4: memref<1x8x256xf32, #tpu.memory_space<vmem>>) attributes {dimension_semantics = [#tpu.dimension_semantics<parallel>], iteration_bounds = array<i64: 2>, scalar_prefetch = 0 : i64, scratch_operands = 0 : i64, tpu.core_type = #tpu.core_type<tc>, window_params = [{transform_indices = @transform_0, window_bounds = array<i64: 1, 256, 128>}, {pipeline_mode = #tpu.pipeline_mode<synchronous>, transform_indices = @transform_1, window_bounds = array<i64: 128, 1>}, {pipeline_mode = #tpu.pipeline_mode<synchronous>, transform_indices = @transform_2, window_bounds = array<i64: 128, 1>}, {transform_indices = @transform_3, window_bounds = array<i64: 1, 8, 256>}]} {
    %c0 = arith.constant 0 : index
    %c0_0 = arith.constant 0 : index
    %c0_1 = arith.constant 0 : index
    %0 = vector.load %arg1[%c0, %c0_0, %c0_1] : memref<1x256x128xbf16, #tpu.memory_space<vmem>>, vector<1x256x128xbf16>
    %1 = vector.shape_cast %0 : vector<1x256x128xbf16> to vector<256x128xbf16>
    %2 = arith.extf %1 : vector<256x128xbf16> to vector<256x128xf32>
    %3 = tpu.transpose %2, [1, 0] : vector<256x128xf32> -> vector<128x256xf32>
    %4 = vector.extract_strided_slice %3 {offsets = [0, 0], sizes = [8, 256], strides = [1, 1]} : vector<128x256xf32> to vector<8x256xf32>
    %c0_2 = arith.constant 0 : index
    %c0_3 = arith.constant 0 : index
    %5 = vector.load %arg2[%c0_2, %c0_3] : memref<128x1xf32, #tpu.memory_space<vmem>>, vector<8x1xf32>
    %6 = vector.broadcast %5 : vector<8x1xf32> to vector<8x256xf32>
    %7 = arith.mulf %4, %6 : vector<8x256xf32>
    %c0_4 = arith.constant 0 : index
    %c0_5 = arith.constant 0 : index
    %8 = vector.load %arg3[%c0_4, %c0_5] : memref<128x1xf32, #tpu.memory_space<vmem>>, vector<8x1xf32>
    %9 = vector.broadcast %8 : vector<8x1xf32> to vector<8x256xf32>
    %10 = arith.addf %7, %9 : vector<8x256xf32>
    %cst = arith.constant 0.000000e+00 : f32
    %11 = vector.broadcast %cst : f32 to vector<8x256xf32>
    %12 = arith.maximumf %10, %11 : vector<8x256xf32>
    %c0_6 = arith.constant 0 : index
    %c0_7 = arith.constant 0 : index
    %c0_8 = arith.constant 0 : index
    %13 = vector.load %arg4[%c0_6, %c0_7, %c0_8] : memref<1x8x256xf32, #tpu.memory_space<vmem>>, vector<1x8x256xf32>
    %14 = vector.shape_cast %13 : vector<1x8x256xf32> to vector<8x256xf32>
    %15 = vector.shape_cast %12 : vector<8x256xf32> to vector<1x8x256xf32>
    tpu.vector_store %arg4[%c0_6, %c0_7, %c0_8], %15 {strides = array<i32>} : memref<1x8x256xf32, #tpu.memory_space<vmem>>, vector<1x8x256xf32>,
    return
  }
  func.func @transform_0(%arg0: i32) -> (i32, i32, i32) {
    %c0_i32 = arith.constant 0 : i32
    %c0_i32_0 = arith.constant 0 : i32
    %c0_i32_1 = arith.constant 0 : i32
    return %arg0, %c0_i32, %c0_i32_0 : i32, i32, i32
  }
  func.func @transform_1(%arg0: i32) -> (i32, i32) {
    %c0_i32 = arith.constant 0 : i32
    %c0_i32_0 = arith.constant 0 : i32
    %c0_i32_1 = arith.constant 0 : i32
    return %c0_i32, %c0_i32_0 : i32, i32
  }
  func.func @transform_2(%arg0: i32) -> (i32, i32) {
    %c0_i32 = arith.constant 0 : i32
    %c0_i32_0 = arith.constant 0 : i32
    %c0_i32_1 = arith.constant 0 : i32
    return %c0_i32, %c0_i32_0 : i32, i32
  }
  func.func @transform_3(%arg0: i32) -> (i32, i32, i32) {
    %c0_i32 = arith.constant 0 : i32
    %c0_i32_0 = arith.constant 0 : i32
    %c0_i32_1 = arith.constant 0 : i32
    return %arg0, %c0_i32, %c0_i32_0 : i32, i32, i32
  }
}

</mosaic_0001>

<bundles_post_ra>
// kernel: basic_conv2d_forward.3
= control target key start
LH: loop header
LB: loop body
LE: loop exit
PB: predicated region body
PF: predicated region fallthrough
CT: control target
= control target key end

     0   :  { %s543_s12 = smov 0   ;;  %s588_s0 = inlined_call_operand.vmem [shape: bf16[2,256,128], index: 0, kind: input, shape index: {}]   ;;  %s589_s1 = inlined_call_operand.vmem [shape: f32[128,1], index: 1, kind: input, shape index: {}]   ;;  %s590_s2 = inlined_call_operand.vmem [shape: f32[128,1], index: 2, kind: input, shape index: {}]   ;;  %s591_s3 = inlined_call_operand.vmem [shape: f32[2,8,256], index: 3, kind: output, shape index: {}]  }
   0x1 LB: > { %s374_s13 = sadd.s32 4294967295, %s520_s12   ;;  %p378_p0 = scmp.ge.s32.totalorder %s520_s12, 1  ;;  %s520_s12 = sphi %s543_s12, %s13_s12  }
   0x2   : > { %p137_p1 = scmp.lt.s32.totalorder %s520_s12, 3 }
   0x4   : > { %p138_p2 = pnand %p378_p0, %p137_p1 }
   0x5   : > { %p161_p3 = scmp.lt.s32.totalorder (!%p138_p2), %s374_s13, 1 }
   0x6   : > { %141 = sbr.rel (%p138_p2) target bundleno = 244 (0xf4), region = 32 }
   0xb   : > { %s593_s13 = smov (!%p161_p3, %s374_s13), 1  ;;  %v299_v31 = vld [vmem:[%s589_s1] sm:$0xff]  ;;  %v522_v32 = vmov 0  }
   0xc   : > { %s385_s14 = sshll.u32 %s593_s13, 7  ;;  %475 = vset.pattern.permute.xlu1 %v522_v32  ;;  %v307_v38 = vld [vmem:[%s590_s2] sm:$0xff]  ;;  %s386_s22 = sshll.u32 %s593_s13, 4 }
   0xd   : > { %s557_s17 = scalar_lea.vmem %s588_s0, %s385_s14  ;;  %302 = vperm.xlu1 %475, %v299_v31   ;;  %s170_s25 = scalar_lea.vmem %s591_s3, %s386_s22 }
   0xe   : > { %v388_v0 = vld [vmem:[%s557_s17] sm:$0xff]   ;;  %v451_v8 = vld [vmem:[%s557_s17 + $0x8] sm:$0xff]   ;;  %v452_v16 = vld [vmem:[%s557_s17 + $0x10] sm:$0xff]  }
   0xf   : > { %v458_v1 = vld [vmem:[%s557_s17 + $0x40] sm:$0xff]   ;;  %v389_v2 = vunpack.c.l.bf16 %v388_v0  ;;  %v390_v5 = vunpack.c.h.bf16 %v388_v0  ;;  %v459_v9 = vld [vmem:[%s557_s17 + $0x48] sm:$0xff]   ;;  %v393_v10 = vunpack.c.l.bf16 %v451_v8  ;;  %v394_v13 = vunpack.c.h.bf16 %v451_v8  ;;  %v460_v17 = vld [vmem:[%s557_s17 + $0x50] sm:$0xff]  }
  0x10   : > { %v421_v3 = vunpack.c.l.bf16 %v458_v1  ;;  %v422_v6 = vunpack.c.h.bf16 %v458_v1  ;;  %v425_v11 = vunpack.c.l.bf16 %v459_v9  ;;  %v426_v14 = vunpack.c.h.bf16 %v459_v9  ;;  %v453_v24 = vld [vmem:[%s557_s17 + $0x18] sm:$0xff]   ;;  %v454_v34 = vld [vmem:[%s557_s17 + $0x20] sm:$0xff]   ;;  %v455_v43 = vld [vmem:[%s557_s17 + $0x28] sm:$0xff]  }
  0x11   : > { %v397_v18 = vunpack.c.l.bf16 %v452_v16  ;;  %v429_v19 = vunpack.c.l.bf16 %v460_v17  ;;  %v398_v21 = vunpack.c.h.bf16 %v452_v16  ;;  %v430_v22 = vunpack.c.h.bf16 %v460_v17  ;;  %v461_v25 = vld [vmem:[%s557_s17 + $0x58] sm:$0xff]   ;;  %v462_v35 = vld [vmem:[%s557_s17 + $0x60] sm:$0xff]   ;;  %v463_v44 = vld [vmem:[%s557_s17 + $0x68] sm:$0xff]  }
  0x12   : > { %v476_v4 = vpack.i.bf16 %v421_v3, %v389_v2  ;;  %v478_v7 = vpack.i.bf16 %v422_v6, %v390_v5  ;;  %v480_v12 = vpack.i.bf16 %v425_v11, %v393_v10  ;;  %v482_v15 = vpack.i.bf16 %v426_v14, %v394_v13  ;;  %v456_v51 = vld [vmem:[%s557_s17 + $0x30] sm:$0xff]   ;;  %v457_v59 = vld [vmem:[%s557_s17 + $0x38] sm:$0xff]  }
  0x13   : > { %v484_v20 = vpack.i.bf16 %v429_v19, %v397_v18  ;;  %v486_v23 = vpack.i.bf16 %v430_v22, %v398_v21  ;;  %v401_v26 = vunpack.c.l.bf16 %v453_v24  ;;  %v433_v27 = vunpack.c.l.bf16 %v461_v25  ;;  %v464_v52 = vld [vmem:[%s557_s17 + $0x70] sm:$0xff]   ;;  %v465_v60 = vld [vmem:[%s557_s17 + $0x78] sm:$0xff]  }
  0x14   : > { %477 = vxpose.xlu0.b32.start [1/16] (narrow) %v476_v4, 8  ;;  %v402_v29 = vunpack.c.h.bf16 %v453_v24  ;;  %v434_v30 = vunpack.c.h.bf16 %v461_v25  ;;  %v405_v36 = vunpack.c.l.bf16 %v454_v34  ;;  %v437_v37 = vunpack.c.l.bf16 %v462_v35 }
  0x15   : > { %v488_v28 = vpack.i.bf16 %v433_v27, %v401_v26  ;;  %310 = vperm.xlu1 %475, %v307_v38   ;;  %v406_v40 = vunpack.c.h.bf16 %v454_v34  ;;  %v438_v41 = vunpack.c.h.bf16 %v462_v35  ;;  %v409_v45 = vunpack.c.l.bf16 %v455_v43 }
  0x16   : > { %v490_v33 = vpack.i.bf16 %v434_v30, %v402_v29  ;;  %v492_v39 = vpack.i.bf16 %v437_v37, %v405_v36  ;;  %v441_v46 = vunpack.c.l.bf16 %v463_v44  ;;  %v410_v48 = vunpack.c.h.bf16 %v455_v43 }
  0x17   : > { %v494_v42 = vpack.i.bf16 %v438_v41, %v406_v40  ;;  %v442_v49 = vunpack.c.h.bf16 %v463_v44  ;;  %v413_v53 = vunpack.c.l.bf16 %v456_v51  ;;  %v445_v54 = vunpack.c.l.bf16 %v464_v52 }
  0x18   : > { %v496_v47 = vpack.i.bf16 %v441_v46, %v409_v45  ;;  %v414_v56 = vunpack.c.h.bf16 %v456_v51  ;;  %v446_v57 = vunpack.c.h.bf16 %v464_v52  ;;  %v417_v61 = vunpack.c.l.bf16 %v457_v59 }
  0x19   : > { %v498_v50 = vpack.i.bf16 %v442_v49, %v410_v48  ;;  %v500_v55 = vpack.i.bf16 %v445_v54, %v413_v53  ;;  %v449_v62 = vunpack.c.l.bf16 %v465_v60  ;;  %v418_v0 = vunpack.c.h.bf16 %v457_v59 }
  0x1a   : > { %v502_v58 = vpack.i.bf16 %v446_v57, %v414_v56  ;;  %v450_v1 = vunpack.c.h.bf16 %v465_v60 }
  0x1b   : > { %v504_v63 = vpack.i.bf16 %v449_v62, %v417_v61 }
  0x1c   : > { %479 = vxpose.xlu0.b32.cont [2/16] (narrow) %v478_v7, 8  ;;  %v506_v2 = vpack.i.bf16 %v450_v1, %v418_v0 }
  0x24   : > { %481 = vxpose.xlu0.b32.cont [3/16] (narrow) %v480_v12, 8 }
  0x2c   : > { %483 = vxpose.xlu0.b32.cont [4/16] (narrow) %v482_v15, 8 }
  0x34   : > { %485 = vxpose.xlu0.b32.cont [5/16] (narrow) %v484_v20, 8 }
  0x3c   : > { %487 = vxpose.xlu0.b32.cont [6/16] (narrow) %v486_v23, 8 }
  0x44   : > { %489 = vxpose.xlu0.b32.cont [7/16] (narrow) %v488_v28, 8 }
  0x4c   : > { %491 = vxpose.xlu0.b32.cont [8/16] (narrow) %v490_v33, 8 }
  0x54   : > { %493 = vxpose.xlu0.b32.cont [9/16] (narrow) %v492_v39, 8 }
  0x5c   : > { %495 = vxpose.xlu0.b32.cont [10/16] (narrow) %v494_v42, 8 }
  0x64   : > { %497 = vxpose.xlu0.b32.cont [11/16] (narrow) %v496_v47, 8 }
  0x6c   : > { %499 = vxpose.xlu0.b32.cont [12/16] (narrow) %v498_v50, 8 }
  0x74   : > { %501 = vxpose.xlu0.b32.cont [13/16] (narrow) %v500_v55, 8 }
  0x7c   : > { %503 = vxpose.xlu0.b32.cont [14/16] (narrow) %v502_v58, 8 }
  0x7f   : > { %v303_v3 = vpop.permute.xlu1 %302 }
  0x84   : > { %505 = vxpose.xlu0.b32.cont [15/16] (narrow) %v504_v63, 8 }
  0x87   : > { %v311_v9 = vpop.permute.xlu1 %310 }
  0x8c   : > { %507 = vxpose.xlu0.b32.end [16/16] (narrow) %v506_v2, 8 }
  0xb8   : > { %v508_v4 = vpop.trf.xlu0 }
  0xb9   : > { %v512_v5 = vunpack.i.h.bf16 %v508_v4  ;;  %v509_v6 = vunpack.i.l.bf16 %v508_v4 }
  0xbb   : > { %v305_v7 = vmul.f32 %v509_v6, %v303_v3  ;;  %v306_v8 = vmul.f32 %v512_v5, %v303_v3 }
  0xbd   : > { %v313_v10 = vadd.f32 %v311_v9, %v305_v7  ;;  %v314_v11 = vadd.f32 %v311_v9, %v306_v8 }
  0xbf   : > { %v315_v12 = vmax.f32 %v313_v10, 0.0  ;;  %v316_v13 = vmax.f32 %v314_v11, 0.0 }
  0xc1   : > { %317 = vst [vmem:[%s170_s25] sm:$0xff] %v315_v12 }
  0xc2   : > { %318 = vst [vmem:[%s170_s25 + $0x8] sm:$0xff] %v316_v13 }
  0xf3   : > { %513 = vset.pattern.permute.xlu0 %v522_v32 }
  0xf4 PF: > { %s13_s12 = sadd.s32 1, %s520_s12  }
  0xf5   : > { %p10_p4 = scmp.ge.s32.totalorder %s13_s12, 4  }
  0xf7   :  { %12 = sbr.rel (!%p10_p4) target bundleno = 1 (0x1), region = 62 }

// kernel: basic_conv2d_forward.2
= control target key start
LH: loop header
LB: loop body
LE: loop exit
PB: predicated region body
PF: predicated region fallthrough
CT: control target
= control target key end

     0   :  { %s4234_s18 = smov 0   ;;  %s4236_s19 = smov 0   ;;  %s6311_s0 = inlined_call_operand.vmem [shape: bf16[2,18,18,4], index: 0, kind: input, shape index: {}]   ;;  %s6312_s1 = inlined_call_operand.vmem [shape: bf16[36,128], index: 1, kind: input, shape index: {}]   ;;  %s6313_s2 = inlined_call_operand.vmem [shape: f32[1,128], index: 2, kind: input, shape index: {}]   ;;  %s6314_s3 = inlined_call_operand.vmem [shape: bf16[2,256,128], index: 3, kind: output, shape index: {0}]   ;;  %s6315_s4 = inlined_call_operand.vmem [shape: f32[2,1,8,128], index: 4, kind: output, shape index: {1}]   ;;  %s6316_s5 = inlined_call_operand.vmem [shape: f32[2,1,8,128], index: 5, kind: output, shape index: {2}]  }
   0x1   :  { %s4238_s20 = smov 0  }
   0x2 LB: > { %s28_s21 = sadd.s32 1, %s4190_s19  ;;  %p3760_p0 = scmp.ge.s32.totalorder %s4194_s20, 1  ;;  %s4194_s20 = sphi %s4238_s20, %s16_s20   ;;  %s4190_s19 = sphi %s4236_s19, %s6365_s19   ;;  %s4186_s18 = sphi %s4234_s18, %s6364_s18  }
   0x3   : > { %p30_p1 = scmp.ge.s32.totalorder %s28_s21, 2  ;;  %p210_p2 = scmp.lt.s32.totalorder %s4194_s20, 3 }
   0x5   : > { %s6367_s21 = smov (%p30_p1, %s28_s21), 0  ;;  %p211_p3 = pnand %p3760_p0, %p210_p2 }
   0x7   : > { %214 = sbr.rel (%p211_p3) target bundleno = 979 (0x3d3), region = 32 }
   0xc   : > { %p256_p4 = scmp.lt.s32.totalorder %s4186_s18, 1  ;;  %vm371_vm0 = vsmask.f32 3328  ;;  %vm372_vm1 = vsmask.f32 7440  ;;  %s4196_s26 = smov 4  }
   0xd   : > { %vm4292_vm2 = vmor %vm371_vm0, %vm372_vm1  ;;  %vm935_vm3 = vcmask 1042432   ;;  %vm936_vm4 = vcmask 1046532   ;;  %vm338_vm5 = vcmask 27648   ;;  %s4197_s27 = smov 8   ;;  %vm854_vm7 = vcmask 60448   ;;  %s4198_s28 = smov 12  }
   0xe   : > { %s6369_s18 = smov (!%p256_p4, %s4186_s18), 1  ;;  %vm4610_vm6 = vmor %vm935_vm3, %vm936_vm4  ;;  %vm1146_vm8 = vcmask 93248   ;;  %s4199_s29 = smov 16   ;;  %vm1359_vm9 = vcmask 126048   ;;  %vm1872_vm10 = vcmask 158848   ;;  %vm2129_vm11 = vcmask 191648  }
   0xf   : > { %s4123_s22 = smul.u32 216, %s6369_s18  ;;  %s4200_s30 = smov 20   ;;  %vm3330_vm12 = vcmask 1041408   ;;  %vm2342_vm13 = vcmask 224448   ;;  %vm2855_vm14 = vcmask 257248   ;;  %vm3112_vm15 = vcmask 290048  }
  0x10   : > { %s4201_s6 = smov 24   ;;  %s4202_s7 = smov 28   ;;  %vm3281_vm0 = vcmask 293888  }
  0x11   : > { %s4258_s25 = scalar_lea.vmem %s6311_s0, %s4123_s22  ;;  %s4203_s8 = smov 32  }
  0x12   : > { %v4261_v0 = vld [vmem:[%s4258_s25 + $0xc] sm:$0xf]  ;;  %v4264_v1 = vld [vmem:[%s4258_s25 + $0x10] sm:$0xf]  ;;  %v4267_v2 = vld [vmem:[%s4258_s25] sm:$0xf] }
  0x13   : > { %v399_v3 = vshrl.u32 %v4261_v0, 16  ;;  %v402_v4 = vshll.u32 %v4261_v0, 16  ;;  %v408_v5 = vshll.u32 %v4264_v1, 16  ;;  %v4273_v6 = vld [vmem:[%s4258_s25 + $0x4] sm:$0xf]  ;;  %v375_v7 = vshrl.u32 %v4267_v2, 16 }
  0x14   : > { %v378_v8 = vshll.u32 %v4267_v2, 16  ;;  %v384_v9 = vshll.u32 %v4273_v6, 16  ;;  %v412_v10 = vshrl.u32 %v4264_v1, 16  ;;  %v388_v11 = vshrl.u32 %v4273_v6, 16  ;;  %v4281_v15 = vld [vmem:[%s4258_s25 + $0x14] sm:$0x1] }
  0x15   : > { %v401_v12 = vrot.slane %v399_v3, 4  ;;  %v404_v13 = vrot.slane %v402_v4, 5  ;;  %v377_v14 = vrot.slane %v375_v7, 4  ;;  %v410_v16 = vrot.slane %v408_v5, 5  ;;  %v4284_v19 = vld [vmem:[%s4258_s25 + $0x28] sm:$0xf] }
  0x16   : > { %v380_v17 = vrot.slane %v378_v8, 5  ;;  %v414_v18 = vrot.slane %v412_v10, 4  ;;  %v386_v21 = vrot.slane %v384_v9, 5  ;;  %v4287_v22 = vld [vmem:[%s4258_s25 + $0x8] sm:$0x1]  ;;  %v390_v23 = vrot.slane %v388_v11, 4 }
  0x17   : > { %v405_v20 = vor.u32 %v404_v13, %v401_v12  ;;  %v456_v24 = vshll.u32 %v4284_v19, 16  ;;  %v418_v28 = vshll.u32 %v4281_v15, 16  ;;  %v460_v29 = vshrl.u32 %v4284_v19, 16  ;;  %v4299_v30 = vld [vmem:[%s4258_s25 + $0x24] sm:$0xf]  ;;  %s4000_s17 = sshll.u32 %s6369_s18, 7 }
  0x18   : > { %v381_v26 = vor.u32 %v380_v17, %v377_v14  ;;  %v415_v27 = vor.u32 %v414_v18, %v410_v16  ;;  %v391_v33 = vor.u32 %v390_v23, %v386_v21  ;;  %v394_v34 = vshll.u32 %v4287_v22, 16  ;;  %v4312_v43 = vld [vmem:[%s4258_s25 + $0x2c] sm:$0x1]  ;;  %v4316_v46 = vld [vmem:[%s4258_s25 + $0x3c] sm:$0xf]  ;;  %s6157_s24 = scalar_lea.vmem %s6314_s3, %s4000_s17 }
  0x19   : > { %v406_v31 = vrot.slane %v405_v20, 4  ;;  %v4302_v35 = vrot.slane %v456_v24, 5  ;;  %v462_v37 = vrot.slane %v460_v29, 4  ;;  %v447_v38 = vshrl.u32 %v4299_v30, 16  ;;  %v4319_v49 = vld [vmem:[%s4258_s25 + $0x34] sm:$0xf] }
  0x1a   : > { %v382_v32 = vrot.slane %v381_v26, 4  ;;  %v450_v39 = vshll.u32 %v4299_v30, 16  ;;  %v416_v41 = vrot.slane %v415_v27, 4  ;;  %v420_v42 = vrot.slane %v418_v28, 5  ;;  %v4322_v50 = vld [vmem:[%s4258_s25 + $0x18] sm:$0xf] }
  0x1b   : > { %v411_v36 = vsel %vm4292_vm2, %v406_v31, %v410_v16  ;;  %v449_v44 = vrot.slane %v447_v38, 4  ;;  %v392_v47 = vrot.slane %v391_v33, 4  ;;  %v396_v48 = vrot.slane %v394_v34, 5  ;;  %v4327_v53 = vld [vmem:[%s4258_s25 + $0x1c] sm:$0xf] }
  0x1c   : > { %762 = vrot.lane.b32.xlu1 %v411_v36, %s4196_s26  ;;  %v387_v40 = vsel %vm4292_vm2, %v382_v32, %v386_v21  ;;  %v452_v45 = vrot.slane %v450_v39, 5  ;;  %v463_v51 = vor.u32 %v462_v37, %v4302_v35  ;;  %v466_v52 = vshll.u32 %v4312_v43, 16  ;;  %v4341_v3 = vld [vmem:[%s4258_s25 + $0x4c] sm:$0xf]  ;;  %v4344_v7 = vld [vmem:[%s4258_s25 + $0x40] sm:$0xf] }
  0x1d   : > { %758 = vrot.lane.b32.xlu0 %v387_v40, %s4196_s26  ;;  %v421_v54 = vsel %vm4292_vm2, %v416_v41, %v420_v42  ;;  %v495_v55 = vshrl.u32 %v4316_v46, 16  ;;  %v498_v56 = vshll.u32 %v4316_v46, 16  ;;  %v480_v58 = vshll.u32 %v4319_v49, 16  ;;  %v4348_v11 = vld [vmem:[%s4258_s25 + $0x38] sm:$0x1] }
  0x1e   : > { %v453_v57 = vor.u32 %v452_v45, %v449_v44  ;;  %v484_v59 = vshrl.u32 %v4319_v49, 16  ;;  %v423_v60 = vshrl.u32 %v4322_v50, 16  ;;  %v397_v61 = vsel %vm4292_vm2, %v392_v47, %v396_v48  ;;  %6335 = vst [vmem:[#allocation3_spill] sm:$0xff] %v4348_v11  ;;  %v4355_v18 = vld [vmem:[%s4258_s25 + $0x20] sm:$0x1] }
  0x1f   : > { %v426_v62 = vshll.u32 %v4322_v50, 16  ;;  %v432_v63 = vshll.u32 %v4327_v53, 16  ;;  %v464_v4 = vrot.slane %v463_v51, 4  ;;  %v468_v5 = vrot.slane %v466_v52, 5  ;;  %v4359_v24 = vld [vmem:[%s4258_s25 + $0x48] sm:$0xf] }
  0x20   : > { %v425_v8 = vrot.slane %v423_v60, 4  ;;  %v497_v9 = vrot.slane %v495_v55, 4  ;;  %v500_v10 = vrot.slane %v498_v56, 5  ;;  %v454_v13 = vrot.slane %v453_v57, 4  ;;  %v4378_v45 = vld [vmem:[%s4258_s25 + $0x30] sm:$0xf] }
  0x21   : > { %v428_v12 = vrot.slane %v426_v62, 5  ;;  %v4351_v14 = vrot.slane %v480_v58, 5  ;;  %v486_v16 = vrot.slane %v484_v59, 4  ;;  %v528_v17 = vshll.u32 %v4341_v3, 16  ;;  %v4382_v47 = vld [vmem:[%s4258_s25 + $0x50] sm:$0x1] }
  0x22   : > { %v434_v21 = vrot.slane %v432_v63, 5  ;;  %v532_v23 = vshrl.u32 %v4341_v3, 16  ;;  %v436_v26 = vshrl.u32 %v4327_v53, 16  ;;  %v469_v27 = vsel %vm4292_vm2, %v464_v4, %v468_v5  ;;  %6336 = vst [vmem:[#allocation4_spill] sm:$0xff] %v4382_v47  ;;  %v4394_v63 = vld [vmem:[%s4258_s25 + $0x58] sm:$0xf] }
  0x23   : > { %v429_v20 = vor.u32 %v428_v12, %v425_v8  ;;  %v504_v28 = vshll.u32 %v4344_v7, 16  ;;  %v490_v29 = vshll.u32 %v4348_v11, 16  ;;  %v501_v31 = vor.u32 %v500_v10, %v497_v9  ;;  %v4581_v11 = vld [vmem:[%s4258_s25 + $0xbc] sm:$0x1]  ;;  %341 = vst.msk [vmem:[#allocation2 + $0x8] sm:$0xf] %vm338_vm5, %v4261_v0 }
  0x24   : > { %764 = vrot.lane.b32.xlu1 %v421_v54, %s4196_s26  ;;  %v438_v33 = vrot.slane %v436_v26, 4  ;;  %v442_v34 = vshll.u32 %v4355_v18, 16  ;;  %v459_v36 = vsel %vm4292_vm2, %v454_v13, %v4302_v35  ;;  %v487_v37 = vor.u32 %v486_v16, %v4351_v14  ;;  %v4386_v54 = vld [vmem:[%s4258_s25 + $0x60] sm:$0xf]  ;;  %339 = vst.msk [vmem:[#allocation2] sm:$0xf] %vm338_vm5, %v4267_v2 }
  0x25   : > { %760 = vrot.lane.b32.xlu0 %v397_v61, %s4196_s26  ;;  %v430_v32 = vrot.slane %v429_v20, 4  ;;  %v519_v38 = vshrl.u32 %v4359_v24, 16  ;;  %v522_v39 = vshll.u32 %v4359_v24, 16  ;;  %v4375_v41 = vrot.slane %v528_v17, 5  ;;  %340 = vst.msk [vmem:[#allocation2 + $0x4] sm:$0xf] %vm338_vm5, %v4273_v6 }
  0x26   : > { %v534_v42 = vrot.slane %v532_v23, 4  ;;  %v439_v44 = vor.u32 %v438_v33, %v434_v21  ;;  %v502_v35 = vrot.slane %v501_v31, 4  ;;  %v506_v48 = vrot.slane %v504_v28, 5  ;;  %v4410_v31 = vld [vmem:[%s4258_s25 + $0x64] sm:$0xf] }
  0x27   : > { %v435_v40 = vsel %vm4292_vm2, %v430_v32, %v434_v21  ;;  %v444_v52 = vrot.slane %v442_v34, 5  ;;  %v521_v55 = vrot.slane %v519_v38, 4  ;;  %v524_v56 = vrot.slane %v522_v39, 5  ;;  %v4413_v32 = vld [vmem:[%s4258_s25 + $0x5c] sm:$0x1] }
  0x28   : > { %766 = vrot.lane.b32.xlu2 %v435_v40, %s4196_s26  ;;  %v440_v51 = vrot.slane %v439_v44, 4  ;;  %v471_v57 = vshrl.u32 %v4378_v45, 16  ;;  %v474_v58 = vshll.u32 %v4378_v45, 16  ;;  %v488_v59 = vrot.slane %v487_v37, 4  ;;  %6337 = vst [vmem:[#allocation5_spill] sm:$0xff] %v4413_v32 }
  0x29   : > { %v492_v60 = vrot.slane %v490_v29, 5  ;;  %v535_v61 = vor.u32 %v534_v42, %v4375_v41  ;;  %v538_v62 = vshll.u32 %v4382_v47, 16  ;;  %v567_v4 = vshrl.u32 %v4386_v54, 16  ;;  %v4419_v38 = vld [vmem:[%s4258_s25 + $0x44] sm:$0x1] }
  0x2a   : > { %v570_v5 = vshll.u32 %v4386_v54, 16  ;;  %v473_v8 = vrot.slane %v471_v57, 4  ;;  %v476_v9 = vrot.slane %v474_v58, 5  ;;  %v507_v10 = vsel %vm4292_vm2, %v502_v35, %v506_v48  ;;  %v4422_v40 = vld [vmem:[%s4258_s25 + $0x70] sm:$0xf] }
  0x2b   : > { %v445_v12 = vsel %vm4292_vm2, %v440_v51, %v444_v52  ;;  %v525_v13 = vor.u32 %v524_v56, %v521_v55  ;;  %v552_v16 = vshll.u32 %v4394_v63, 16  ;;  %v556_v17 = vshrl.u32 %v4394_v63, 16  ;;  %v4428_v51 = vld [vmem:[%s4258_s25 + $0x6c] sm:$0xf]  ;;  %v4431_v52 = vld [vmem:[%s4258_s25 + $0x54] sm:$0xf] }
  0x2c   : > { %772 = vrot.lane.b32.xlu1 %v469_v27, %s4196_s26  ;;  %v477_v20 = vor.u32 %v476_v9, %v473_v8  ;;  %v493_v21 = vsel %vm4292_vm2, %v488_v59, %v492_v60  ;;  %v540_v23 = vrot.slane %v538_v62, 5  ;;  %v536_v26 = vrot.slane %v535_v61, 4  ;;  %342 = vst.msk [vmem:[#allocation2 + $0xc] sm:$0xf] %vm338_vm5, %v4264_v1 }
  0x2d   : > { %770 = vrot.lane.b32.xlu0 %v459_v36, %s4196_s26  ;;  %v569_v27 = vrot.slane %v567_v4, 4  ;;  %v572_v28 = vrot.slane %v570_v5, 5  ;;  %v508_v29 = vshrl.u32 %v4344_v7, 16  ;;  %v526_v34 = vrot.slane %v525_v13, 4  ;;  %343 = vst.msk [vmem:[#allocation2 + $0x10] sm:$0xf] %vm338_vm5, %v4322_v50 }
  0x2e   : > { %v478_v33 = vrot.slane %v477_v20, 4  ;;  %v4416_v36 = vrot.slane %v552_v16, 5  ;;  %v558_v37 = vrot.slane %v556_v17, 4  ;;  %v541_v42 = vsel %vm4292_vm2, %v536_v26, %v540_v23  ;;  %v4452_v16 = vld [vmem:[%s4258_s25 + $0x74] sm:$0x1] }
  0x2f   : > { %v510_v39 = vrot.slane %v508_v29, 4  ;;  %v573_v44 = vor.u32 %v572_v28, %v569_v27  ;;  %v576_v35 = vshll.u32 %v4410_v31, 16  ;;  %v562_v55 = vshll.u32 %v4413_v32, 16  ;;  %6338 = vst [vmem:[#allocation6_spill] sm:$0xff] %v4452_v16  ;;  %v4455_v28 = vld [vmem:[%s4258_s25 + $0x84] sm:$0xf] }
  0x30   : > { %768 = vrot.lane.b32.xlu2 %v445_v12, %s4196_s26  ;;  %v483_v56 = vsel %vm4292_vm2, %v478_v33, %v4351_v14  ;;  %v514_v58 = vshll.u32 %v4419_v38, 16  ;;  %v531_v59 = vsel %vm4292_vm2, %v526_v34, %v4375_v41  ;;  %v559_v60 = vor.u32 %v558_v37, %v4416_v36  ;;  %v4458_v29 = vld [vmem:[%s4258_s25 + $0x7c] sm:$0xf]  ;;  %344 = vst.msk [vmem:[#allocation2 + $0x14] sm:$0xf] %vm338_vm5, %v4327_v53 }
  0x31   : > { %v511_v57 = vor.u32 %v510_v39, %v506_v48  ;;  %v600_v61 = vshll.u32 %v4422_v40, 16  ;;  %v604_v62 = vshrl.u32 %v4422_v40, 16  ;;  %v591_v4 = vshrl.u32 %v4428_v51, 16  ;;  %345 = vst.msk [vmem:[#allocation2 + $0x18] sm:$0xf] %vm338_vm5, %v4299_v30 }
  0x32   : > { %v594_v5 = vshll.u32 %v4428_v51, 16  ;;  %v543_v14 = vshrl.u32 %v4431_v52, 16  ;;  %v546_v48 = vshll.u32 %v4431_v52, 16  ;;  %v516_v8 = vrot.slane %v514_v58, 5  ;;  %346 = vst.msk [vmem:[#allocation2 + $0x1c] sm:$0xf] %vm338_vm5, %v4284_v19 }
  0x33   : > { %v512_v41 = vrot.slane %v511_v57, 4  ;;  %v574_v12 = vrot.slane %v573_v44, 4  ;;  %v578_v13 = vrot.slane %v576_v35, 5  ;;  %v602_v17 = vrot.slane %v600_v61, 5  ;;  %347 = vst.msk [vmem:[#allocation2 + $0x20] sm:$0xf] %vm338_vm5, %v4378_v45 }
  0x34   : > { %778 = vrot.lane.b32.xlu1 %v507_v10, %s4196_s26  ;;  %v545_v9 = vrot.slane %v543_v14, 4  ;;  %v548_v10 = vrot.slane %v546_v48, 5  ;;  %v606_v20 = vrot.slane %v604_v62, 4  ;;  %v564_v23 = vrot.slane %v562_v55, 5  ;;  %v4478_v62 = vld [vmem:[%s4258_s25 + $0x94] sm:$0xf] }
  0x35   : > { %776 = vrot.lane.b32.xlu0 %v493_v21, %s4196_s26  ;;  %v560_v21 = vrot.slane %v559_v60, 4  ;;  %v593_v26 = vrot.slane %v591_v4, 4  ;;  %v596_v27 = vrot.slane %v594_v5, 5  ;;  %v610_v33 = vshll.u32 %v4452_v16, 16  ;;  %v4475_v60 = vld [vmem:[%s4258_s25 + $0x88] sm:$0xf] }
  0x36   : > { %v517_v34 = vsel %vm4292_vm2, %v512_v41, %v516_v8  ;;  %v549_v37 = vor.u32 %v548_v10, %v545_v9  ;;  %v580_v39 = vshrl.u32 %v4410_v31, 16  ;;  %v607_v44 = vor.u32 %v606_v20, %v602_v17  ;;  %v4481_v5 = vld [vmem:[%s4258_s25 + $0x78] sm:$0xf]  ;;  %v4485_v9 = vld [vmem:[%s4258_s25 + $0x68] sm:$0x1] }
  0x37   : > { %v639_v35 = vshrl.u32 %v4455_v28, 16  ;;  %v642_v55 = vshll.u32 %v4455_v28, 16  ;;  %v597_v57 = vor.u32 %v596_v27, %v593_v26  ;;  %v624_v58 = vshll.u32 %v4458_v29, 16  ;;  %6339 = vst [vmem:[#allocation7_spill] sm:$0xff] %v4485_v9  ;;  %v4495_v27 = vld [vmem:[%s4258_s25 + $0x90] sm:$0xf] }
  0x38   : > { %774 = vrot.lane.b32.xlu2 %v483_v56, %s4196_s26  ;;  %v565_v56 = vsel %vm4292_vm2, %v560_v21, %v564_v23  ;;  %v550_v61 = vrot.slane %v549_v37, 4  ;;  %v582_v4 = vrot.slane %v580_v39, 4  ;;  %v608_v14 = vrot.slane %v607_v44, 4  ;;  %348 = vst.msk [vmem:[#allocation2 + $0x24] sm:$0xf] %vm338_vm5, %v4319_v49 }
  0x39   : > { %v612_v48 = vrot.slane %v610_v33, 5  ;;  %v641_v41 = vrot.slane %v639_v35, 4  ;;  %v644_v8 = vrot.slane %v642_v55, 5  ;;  %v598_v10 = vrot.slane %v597_v57, 4  ;;  %349 = vst.msk [vmem:[#allocation2 + $0x28] sm:$0xf] %vm338_vm5, %v4316_v46 }
  0x3a   : > { %v4490_v20 = vrot.slane %v624_v58, 5  ;;  %v672_v23 = vshll.u32 %v4478_v62, 16  ;;  %v676_v26 = vshrl.u32 %v4478_v62, 16  ;;  %v618_v33 = vshll.u32 %v4481_v5, 16  ;;  %350 = vst.msk [vmem:[#allocation2 + $0x2c] sm:$0xf] %vm338_vm5, %v4344_v7 }
  0x3b   : > { %v555_v37 = vsel %vm4292_vm2, %v550_v61, %v4416_v36  ;;  %v583_v39 = vor.u32 %v582_v4, %v578_v13  ;;  %v613_v44 = vsel %vm4292_vm2, %v608_v14, %v612_v48  ;;  %v645_v35 = vor.u32 %v644_v8, %v641_v41  ;;  %v4517_v48 = vld [vmem:[%s4258_s25 + $0x98] sm:$0x1]  ;;  %351 = vst.msk [vmem:[#allocation2 + $0x30] sm:$0xf] %vm338_vm5, %v4359_v24 }
  0x3c   : > { %784 = vrot.lane.b32.xlu1 %v541_v42, %s4196_s26  ;;  %v579_v42 = vsel %vm4292_vm2, %v574_v12, %v578_v13  ;;  %v4488_v12 = vld [vmem:[%s4258_s25 + $0x80] sm:$0x1]  ;;  %v648_v55 = vshll.u32 %v4475_v60, 16  ;;  %v603_v57 = vsel %vm4292_vm2, %v598_v10, %v602_v17  ;;  %v666_v36 = vshll.u32 %v4495_v27, 16  ;;  %6341 = vst [vmem:[#allocation9_spill] sm:$0xff] %v4517_v48 }
  0x3d   : > { %782 = vrot.lane.b32.xlu0 %v531_v59, %s4196_s26  ;;  %v628_v59 = vshrl.u32 %v4458_v29, 16  ;;  %6340 = vst [vmem:[#allocation8_spill] sm:$0xff] %v4488_v12  ;;  %v4513_v13 = vrot.slane %v672_v23, 5  ;;  %v678_v61 = vrot.slane %v676_v26, 4  ;;  %v620_v14 = vrot.slane %v618_v33, 5 }
  0x3e   : > { %v584_v17 = vrot.slane %v583_v39, 4  ;;  %v646_v8 = vrot.slane %v645_v35, 4  ;;  %v650_v10 = vrot.slane %v648_v55, 5  ;;  %v668_v16 = vrot.slane %v666_v36, 5  ;;  %v4521_v23 = vld [vmem:[%s4258_s25 + $0xa8] sm:$0xf] }
  0x3f   : > { %v630_v21 = vrot.slane %v628_v59, 4  ;;  %v663_v59 = vshrl.u32 %v4495_v27, 16  ;;  %6342 = vst [vmem:[#allocation10_spill] sm:$0xff] %v4521_v23  ;;  %v679_v26 = vor.u32 %v678_v61, %v4513_v13  ;;  %v4526_v33 = vld [vmem:[%s4258_s25 + $0xa0] sm:$0xf]  ;;  %v711_v55 = vshrl.u32 %v4521_v23, 16 }
  0x40   : > { %780 = vrot.lane.b32.xlu2 %v517_v34, %s4196_s26  ;;  %v615_v34 = vshrl.u32 %v4481_v5, 16  ;;  %v651_v35 = vsel %vm4292_vm2, %v646_v8, %v650_v10  ;;  %v700_v36 = vshrl.u32 %v4526_v33, 16  ;;  %352 = vst.msk [vmem:[#allocation2 + $0x34] sm:$0xf] %vm338_vm5, %v4341_v3 }
  0x41   : > { %v631_v58 = vor.u32 %v630_v21, %v4490_v20  ;;  %v680_v61 = vrot.slane %v679_v26, 4  ;;  %353 = vst.msk [vmem:[#allocation2 + $0x38] sm:$0xf] %vm338_vm5, %v4431_v52 }
  0x42   : > { %v617_v4 = vrot.slane %v615_v34, 4  ;;  %v682_v34 = vshll.u32 %v4517_v48, 16  ;;  %354 = vst.msk [vmem:[#allocation2 + $0x3c] sm:$0xf] %vm338_vm5, %v4394_v63 }
  0x43   : > { %v632_v21 = vrot.slane %v631_v58, 4  ;;  %355 = vst.msk [vmem:[#allocation2 + $0x40] sm:$0xf] %vm338_vm5, %v4386_v54 }
  0x44   : > { %790 = vrot.lane.b32.xlu1 %v579_v42, %s4196_s26  ;;  %v586_v42 = vshll.u32 %v4485_v9, 16  ;;  %356 = vst.msk [vmem:[#allocation2 + $0x44] sm:$0xf] %vm338_vm5, %v4410_v31 }
  0x45   : > { %788 = vrot.lane.b32.xlu0 %v565_v56, %s4196_s26  ;;  %v634_v56 = vshll.u32 %v4488_v12, 16  ;;  %357 = vst.msk [vmem:[#allocation2 + $0x48] sm:$0xf] %vm338_vm5, %v4428_v51 }
  0x46   : > { %v588_v41 = vrot.slane %v586_v42, 5  ;;  %v652_v42 = vshrl.u32 %v4475_v60, 16  ;;  %358 = vst.msk [vmem:[#allocation2 + $0x4c] sm:$0xf] %vm338_vm5, %v4422_v40 }
  0x47   : > { %v636_v12 = vrot.slane %v634_v56, 5  ;;  %v714_v56 = vshll.u32 %v4521_v23, 16  ;;  %359 = vst.msk [vmem:[#allocation2 + $0x50] sm:$0xf] %vm338_vm5, %v4481_v5 }
  0x48   : > { %786 = vrot.lane.b32.xlu2 %v555_v37, %s4196_s26  ;;  %v665_v37 = vrot.slane %v663_v59, 4  ;;  %v589_v39 = vsel %vm4292_vm2, %v584_v17, %v588_v41  ;;  %v696_v59 = vshll.u32 %v4526_v33, 16  ;;  %v4542_v17 = vld [vmem:[%s4258_s25 + $0xac] sm:$0xf]  ;;  %v4545_v41 = vld [vmem:[%s4258_s25 + $0xa4] sm:$0x1] }
  0x49   : > { %6343 = vst [vmem:[#allocation11_spill] sm:$0xff] %v4545_v41  ;;  %v716_v8 = vrot.slane %v714_v56, 5  ;;  %v720_v48 = vshll.u32 %v4542_v17, 16  ;;  %v706_v32 = vshll.u32 %v4545_v41, 16 }
  0x4a   : > { %v669_v58 = vor.u32 %v668_v16, %v665_v37  ;;  %v713_v16 = vrot.slane %v711_v55, 4  ;;  %v4552_v37 = vld [vmem:[%s4258_s25 + $0x9c] sm:$0xf]  ;;  %v4564_v55 = vld [vmem:[%s4258_s25 + $0xb4] sm:$0xf] }
  0x4b   : > { %6346 = vst [vmem:[#allocation14_spill] sm:$0xff] %v4564_v55  ;;  %v722_v47 = vrot.slane %v720_v48, 5  ;;  %v754_v48 = vshll.u32 %v4581_v11, 16 }
  0x4c   : > { %796 = vrot.lane.b32.xlu1 %v613_v44, %s4196_s26  ;;  %v621_v44 = vor.u32 %v620_v14, %v617_v4  ;;  %v684_v4 = vrot.slane %v682_v34, 5  ;;  %v670_v26 = vrot.slane %v669_v58, 4  ;;  %v698_v34 = vrot.slane %v696_v59, 5  ;;  %360 = vst.msk [vmem:[#allocation2 + $0x54] sm:$0xf] %vm338_vm5, %v4458_v29 }
  0x4d   : > { %794 = vrot.lane.b32.xlu0 %v603_v57, %s4196_s26  ;;  %v637_v57 = vsel %vm4292_vm2, %v632_v21, %v636_v12  ;;  %v654_v12 = vrot.slane %v652_v42, 4  ;;  %v4549_v21 = vld [vmem:[%s4258_s25 + $0x8c] sm:$0x1]  ;;  %v687_v58 = vshrl.u32 %v4552_v37, 16  ;;  %v690_v59 = vshll.u32 %v4552_v37, 16 }
  0x4e   : > { %v622_v14 = vrot.slane %v621_v44, 4  ;;  %6344 = vst [vmem:[#allocation12_spill] sm:$0xff] %v4549_v21  ;;  %v4555_v44 = vld [vmem:[%s4258_s25 + $0xb8] sm:$0xf] }
  0x4f   : > { %6345 = vst [vmem:[#allocation13_spill] sm:$0xff] %v4555_v44  ;;  %v655_v56 = vor.u32 %v654_v12, %v650_v10  ;;  %v735_v10 = vshrl.u32 %v4564_v55, 16  ;;  %v738_v12 = vshll.u32 %v4564_v55, 16  ;;  %v689_v41 = vrot.slane %v687_v58, 4 }
  0x50   : > { %792 = vrot.lane.b32.xlu2 %v589_v39, %s4196_s26  ;;  %v702_v39 = vrot.slane %v700_v36, 4  ;;  %v627_v42 = vsel %vm4292_vm2, %v622_v14, %v4490_v20  ;;  %v717_v36 = vor.u32 %v716_v8, %v713_v16  ;;  %v675_v20 = vsel %vm4292_vm2, %v670_v26, %v4513_v13  ;;  %361 = vst.msk [vmem:[#allocation2 + $0x58] sm:$0xf] %vm338_vm5, %v4455_v28 }
  0x51   : > { %v656_v16 = vrot.slane %v655_v56, 4  ;;  %v737_v23 = vrot.slane %v735_v10, 4  ;;  %v740_v55 = vrot.slane %v738_v12, 5  ;;  %v724_v56 = vshrl.u32 %v4542_v17, 16  ;;  %362 = vst.msk [vmem:[#allocation2 + $0x5c] sm:$0xf] %vm338_vm5, %v4475_v60 }
  0x52   : > { %v703_v14 = vor.u32 %v702_v39, %v698_v34  ;;  %v718_v9 = vrot.slane %v717_v36, 4  ;;  %v708_v39 = vrot.slane %v706_v32, 5  ;;  %v940_v12 = vrot.slane %v4273_v6, 5  ;;  %363 = vst.msk [vmem:[#allocation2 + $0x60] sm:$0xf] %vm338_vm5, %v4495_v27 }
  0x53   : > { %v3766_v6 = vrot.slane %v4267_v2, 9  ;;  %364 = vst.msk [vmem:[#allocation2 + $0x64] sm:$0xf] %vm338_vm5, %v4478_v62 }
  0x54   : > { %802 = vrot.lane.b32.xlu1 %v651_v35, %s4196_s26  ;;  %v685_v35 = vsel %vm4292_vm2, %v680_v61, %v684_v4  ;;  %v744_v61 = vshll.u32 %v4555_v44, 16  ;;  %v748_v4 = vshrl.u32 %v4555_v44, 16  ;;  %v704_v26 = vrot.slane %v703_v14, 4  ;;  %365 = vst.msk [vmem:[#allocation2 + $0x68] sm:$0xf] %vm338_vm5, %v4552_v37 }
  0x55   : > { %800 = vrot.lane.b32.xlu0 %v637_v57, %s4196_s26  ;;  %v658_v57 = vshll.u32 %v4549_v21, 16  ;;  %v692_v21 = vrot.slane %v690_v59, 5  ;;  %v741_v59 = vor.u32 %v740_v55, %v737_v23  ;;  %v941_v2 = vsel %vm4610_vm6, %v3766_v6, %v940_v12  ;;  %366 = vst.msk [vmem:[#allocation2 + $0x6c] sm:$0xf] %vm338_vm5, %v4526_v33 }
  0x56   : > { %v746_v44 = vrot.slane %v744_v61, 5  ;;  %v750_v13 = vrot.slane %v748_v4, 4  ;;  %v709_v32 = vsel %vm4292_vm2, %v704_v26, %v708_v39  ;;  %v726_v61 = vrot.slane %v724_v56, 4  ;;  %v4595_v4 = vld [vmem:[%s4258_s25 + $0xb0] sm:$0x1] }
  0x57   : > { %v660_v8 = vrot.slane %v658_v57, 5  ;;  %v723_v57 = vsel %vm4292_vm2, %v718_v9, %v722_v47  ;;  %v742_v9 = vrot.slane %v741_v59, 4  ;;  %v730_v10 = vshll.u32 %v4595_v4, 16  ;;  %368 = vst.msk [vmem:[#allocation2 + $0x74] sm:$0xf] %vm338_vm5, %v4542_v17 }
  0x58   : > { %798 = vrot.lane.b32.xlu2 %v627_v42, %s4196_s26  ;;  %v693_v42 = vor.u32 %v692_v21, %v689_v41  ;;  %v751_v58 = vor.u32 %v750_v13, %v746_v44  ;;  %v756_v21 = vrot.slane %v754_v48, 5  ;;  %v727_v14 = vor.u32 %v726_v61, %v722_v47 }
  0x59   : > { %v747_v55 = vsel %vm4292_vm2, %v742_v9, %v746_v44  ;;  %v3767_v47 = vrot.slane %v4261_v0, 9  ;;  %v942_v44 = vrot.slane %v940_v12, 4  ;;  %v943_v26 = vrot.slane %v4287_v22, 5  ;;  %v6349_v9 = vld [vmem:[#allocation10_spill] sm:$0xff]  ;;  %v6352_v12 = vld [vmem:[#allocation13_spill] sm:$0xff] }
  0x5a   : > { %v694_v36 = vrot.slane %v693_v42, 4  ;;  %v752_v41 = vrot.slane %v751_v58, 4  ;;  %v954_v42 = vrot.slane %v4327_v53, 5  ;;  %v957_v22 = vrot.slane %v4355_v18, 5  ;;  %367 = vst.msk [vmem:[#allocation2 + $0x70] sm:$0xf] %vm338_vm5, %v6349_v9 }
  0x5b   : > { %v944_v0 = vsel %vm4610_vm6, %v942_v44, %v943_v26  ;;  %v3768_v56 = vrot.slane %v4322_v50, 9  ;;  %v961_v18 = vrot.slane %v4284_v19, 5  ;;  %v950_v58 = vrot.slane %v4281_v15, 5  ;;  %370 = vst.msk [vmem:[#allocation2 + $0x7c] sm:$0xf] %vm338_vm5, %v6352_v12  ;;  %v6353_v44 = vld [vmem:[#allocation4_spill] sm:$0xff] }
  0x5c   : > { %808 = vrot.lane.b32.xlu1 %v685_v35, %s4196_s26  ;;  %v661_v35 = vsel %vm4292_vm2, %v656_v16, %v660_v8  ;;  %v757_v23 = vsel %vm4292_vm2, %v752_v41, %v756_v21  ;;  %v728_v16 = vrot.slane %v727_v14, 4  ;;  %v732_v8 = vrot.slane %v730_v10, 5  ;;  %v6350_v14 = vld [vmem:[#allocation14_spill] sm:$0xff] }
  0x5d   : > { %806 = vrot.lane.b32.xlu0 %v675_v20, %s4196_s26  ;;  %v699_v20 = vsel %vm4292_vm2, %v694_v36, %v698_v34  ;;  %v947_v34 = vrot.slane %v4264_v1, 5  ;;  %v956_v1 = vrot.slane %v954_v42, 4  ;;  %v955_v50 = vsel %vm4610_vm6, %v3768_v56, %v954_v42  ;;  %369 = vst.msk [vmem:[#allocation2 + $0x78] sm:$0xf] %vm338_vm5, %v6350_v14 }
  0x5e   : > { %v733_v39 = vsel %vm4292_vm2, %v728_v16, %v732_v8  ;;  %v3770_v19 = vrot.slane %v4378_v45, 9  ;;  %v968_v48 = vrot.slane %v4319_v49, 5  ;;  %v964_v59 = vrot.slane %v4312_v43, 5 }
  0x5f   : > { %v958_v53 = vsel %vm4610_vm6, %v956_v1, %v957_v22  ;;  %v975_v45 = vrot.slane %v4344_v7, 5  ;;  %v3769_v7 = vrot.slane %v4299_v30, 9  ;;  %v978_v61 = vrot.slane %v4419_v38, 5  ;;  %v6354_v1 = vld [vmem:[#allocation7_spill] sm:$0xff] }
  0x60   : > { %804 = vrot.lane.b32.xlu2 %v661_v35, %s4196_s26  ;;  %v948_v35 = vsel %vm4610_vm6, %v3767_v47, %v947_v34  ;;  %v969_v49 = vsel %vm4610_vm6, %v3770_v19, %v968_v48  ;;  %v3771_v21 = vrot.slane %v4316_v46, 9  ;;  %v970_v10 = vrot.slane %v968_v48, 4 }
  0x61   : > { %v977_v36 = vrot.slane %v975_v45, 4  ;;  %v962_v30 = vsel %vm4610_vm6, %v3769_v7, %v961_v18  ;;  %v989_v16 = vrot.slane %v4394_v63, 5  ;;  %v985_v26 = vrot.slane %v6353_v44, 5 }
  0x62   : > { %v976_v46 = vsel %vm4610_vm6, %v3771_v21, %v975_v45  ;;  %v996_v63 = vrot.slane %v4410_v31, 5  ;;  %v999_v22 = vrot.slane %v6354_v1, 5  ;;  %v3774_v31 = vrot.slane %v4386_v54, 9  ;;  %v6356_v45 = vld [vmem:[#allocation6_spill] sm:$0xff]  ;;  %v6357_v21 = vld [vmem:[#allocation12_spill] sm:$0xff] }
  0x63   : > { %v979_v38 = vsel %vm4610_vm6, %v977_v36, %v978_v61  ;;  %v991_v54 = vrot.slane %v989_v16, 4  ;;  %v3776_v48 = vrot.slane %v4481_v5, 9  ;;  %v3775_v61 = vrot.slane %v4428_v51, 9 }
  0x64   : > { %814 = vrot.lane.b32.xlu1 %v723_v57, %s4196_s26  ;;  %v949_v57 = vrot.slane %v947_v34, 4  ;;  %v998_v6 = vrot.slane %v996_v63, 4 }
  0x65   : > { %812 = vrot.lane.b32.xlu0 %v709_v32, %s4196_s26  ;;  %v963_v32 = vrot.slane %v961_v18, 4  ;;  %v997_v18 = vsel %vm4610_vm6, %v3774_v31, %v996_v63  ;;  %v1045_v31 = vrot.slane %v6352_v12, 5 }
  0x66   : > { %v951_v15 = vsel %vm4610_vm6, %v949_v57, %v950_v58  ;;  %v1003_v57 = vrot.slane %v4422_v40, 5  ;;  %v6355_v58 = vld [vmem:[#allocation5_spill] sm:$0xff] }
  0x67   : > { %v965_v43 = vsel %vm4610_vm6, %v963_v32, %v964_v59  ;;  %v992_v19 = vrot.slane %v6355_v58, 5  ;;  %v1010_v32 = vrot.slane %v4458_v29, 5  ;;  %v1017_v29 = vrot.slane %v4475_v60, 5 }
  0x68   : > { %810 = vrot.lane.b32.xlu2 %v699_v20, %s4196_s26  ;;  %v982_v20 = vrot.slane %v4341_v3, 5  ;;  %v3773_v3 = vrot.slane %v4431_v52, 9 }
  0x69   : > { %v993_v7 = vsel %vm4610_vm6, %v991_v54, %v992_v19  ;;  %v1011_v5 = vsel %vm4610_vm6, %v3776_v48, %v1010_v32  ;;  %v1048_v54 = vrot.slane %v4581_v11, 5  ;;  %v4837_v19 = vld [vmem:[%s4258_s25 + $0xc] sm:$0xf]  ;;  %v3781_v11 = vrot.slane %v6350_v14, 9  ;;  %v4855_v14 = vld [vmem:[%s4258_s25 + $0x18] sm:$0xf] }
  0x6a   : > { %v984_v34 = vrot.slane %v982_v20, 4  ;;  %v990_v52 = vsel %vm4610_vm6, %v3773_v3, %v989_v16  ;;  %v6358_v3 = vld [vmem:[#allocation8_spill] sm:$0xff] }
  0x6b   : > { %v1013_v16 = vrot.slane %v6358_v3, 5 }
  0x6c   : > { %820 = vrot.lane.b32.xlu1 %v757_v23, %s4196_s26  ;;  %v6351_v23 = vld [vmem:[#allocation3_spill] sm:$0xff]  ;;  %v986_v42 = vsel %vm4610_vm6, %v984_v34, %v985_v26 }
  0x6d   : > { %818 = vrot.lane.b32.xlu0 %v747_v55, %s4196_s26  ;;  %v971_v55 = vrot.slane %v6351_v23, 5 }
  0x70   : > { %816 = vrot.lane.b32.xlu2 %v733_v39, %s4196_s26 }
  0x74   : > { %1054 = vrot.lane.b32.xlu1 %v948_v35, %s4197_s27  ;;  %v972_v35 = vsel %vm4610_vm6, %v970_v10, %v971_v55  ;;  %v1004_v10 = vsel %vm4610_vm6, %v3775_v61, %v1003_v57  ;;  %v1024_v55 = vrot.slane %v4478_v62, 5 }
  0x75   : > { %1052 = vrot.lane.b32.xlu0 %v944_v0, %s4197_s27  ;;  %v3772_v0 = vrot.slane %v4359_v24, 9  ;;  %v1000_v24 = vsel %vm4610_vm6, %v998_v6, %v999_v22  ;;  %v1041_v6 = vrot.slane %v4595_v4, 5 }
  0x76   : > { %v1026_v26 = vrot.slane %v1024_v55, 4 }
  0x78   : > { %1050 = vrot.lane.b32.xlu2 %v941_v2, %s4197_s27 }
  0x7c   : > { %1060 = vrot.lane.b32.xlu1 %v958_v53, %s4197_s27 }
  0x7d   : > { %1058 = vrot.lane.b32.xlu0 %v955_v50, %s4197_s27  ;;  %v983_v50 = vsel %vm4610_vm6, %v3772_v0, %v982_v20  ;;  %v3777_v20 = vrot.slane %v4455_v28, 9  ;;  %v1012_v28 = vrot.slane %v1010_v32, 4 }
  0x7f   : > { %v1018_v23 = vsel %vm4610_vm6, %v3777_v20, %v1017_v29 }
  0x80   : > { %1056 = vrot.lane.b32.xlu2 %v951_v15, %s4197_s27 }
  0x82   : > { %v767_v41 = vpop.permute.xlu2 %766 }
  0x83   : > { %859 = vst.msk [vmem:[#allocation2 + $0x10] sm:$0xf] %vm854_vm7, %v767_v41  ;;  %v1019_v41 = vrot.slane %v1017_v29, 4  ;;  %v4869_v29 = vld [vmem:[%s4258_s25 + $0x30] sm:$0xf] }
  0x84   : > { %1066 = vrot.lane.b32.xlu1 %v969_v49, %s4197_s27  ;;  %v1005_v49 = vrot.slane %v1003_v57, 4  ;;  %v1047_v57 = vrot.slane %v1045_v31, 4 }
  0x85   : > { %1064 = vrot.lane.b32.xlu0 %v965_v43, %s4197_s27  ;;  %v1006_v43 = vrot.slane %v6356_v45, 5  ;;  %v4852_v45 = vld [vmem:[%s4258_s25 + $0x1c] sm:$0xf] }
  0x86   : > { %v1049_v48 = vsel %vm4610_vm6, %v1047_v57, %v1048_v54  ;;  %v1393_v57 = vshrl.u32 %v4837_v19, 16  ;;  %v1396_v54 = vshll.u32 %v4837_v19, 16 }
  0x87   : > { %v1007_v36 = vsel %vm4610_vm6, %v1005_v49, %v1006_v43  ;;  %v1046_v49 = vsel %vm4610_vm6, %v3781_v11, %v1045_v31 }
  0x88   : > { %1062 = vrot.lane.b32.xlu2 %v962_v30, %s4197_s27  ;;  %v1020_v30 = vrot.slane %v6357_v21, 5 }
  0x8a   : > { %v769_v8 = vpop.permute.xlu2 %768  ;;  %v1021_v51 = vsel %vm4610_vm6, %v1019_v41, %v1020_v30  ;;  %v4884_v30 = vld [vmem:[%s4258_s25 + $0x24] sm:$0xf] }
  0x8b   : > { %860 = vst.msk [vmem:[#allocation2 + $0x14] sm:$0xf] %vm854_vm7, %v769_v8  ;;  %v3779_v8 = vrot.slane %v4552_v37, 9 }
  0x8c   : > { %1072 = vrot.lane.b32.xlu1 %v979_v38, %s4197_s27 }
  0x8d   : > { %1070 = vrot.lane.b32.xlu0 %v976_v46, %s4197_s27 }
  0x8e   : > { %v763_v47 = vpop.permute.xlu1 %762 }
  0x8f   : > { %857 = vst.msk [vmem:[#allocation2 + $0x8] sm:$0xf] %vm854_vm7, %v763_v47  ;;  %v759_v39 = vpop.permute.xlu0 %758  ;;  %v1031_v47 = vrot.slane %v4526_v33, 5  ;;  %v1038_v33 = vrot.slane %v4542_v17, 5 }
  0x90   : > { %855 = vst.msk [vmem:[#allocation2] sm:$0xf] %vm854_vm7, %v759_v39  ;;  %1068 = vrot.lane.b32.xlu2 %v972_v35, %s4197_s27  ;;  %v6359_v39 = vld [vmem:[#allocation9_spill] sm:$0xff] }
  0x91   : > { %v1027_v35 = vrot.slane %v6359_v39, 5  ;;  %v1032_v37 = vsel %vm4610_vm6, %v3779_v8, %v1031_v47  ;;  %v1040_v0 = vrot.slane %v1038_v33, 4  ;;  %v4920_v8 = vld [vmem:[%s4258_s25 + $0x48] sm:$0xf] }
  0x92   : > { %v775_v56 = vpop.permute.xlu2 %774 }
  0x93   : > { %863 = vst.msk [vmem:[#allocation2 + $0x20] sm:$0xf] %vm854_vm7, %v775_v56  ;;  %v1028_v63 = vsel %vm4610_vm6, %v1026_v26, %v1027_v35  ;;  %v3780_v56 = vrot.slane %v6349_v9, 9  ;;  %v1033_v9 = vrot.slane %v1031_v47, 4  ;;  %v4923_v47 = vld [vmem:[%s4258_s25 + $0x64] sm:$0xf] }
  0x94   : > { %1078 = vrot.lane.b32.xlu1 %v990_v52, %s4197_s27  ;;  %v1014_v52 = vsel %vm4610_vm6, %v1012_v28, %v1013_v16  ;;  %v4938_v35 = vld [vmem:[%s4258_s25 + $0x58] sm:$0xf] }
  0x95   : > { %1076 = vrot.lane.b32.xlu0 %v986_v42, %s4197_s27  ;;  %v3778_v42 = vrot.slane %v4495_v27, 9  ;;  %v1042_v27 = vsel %vm4610_vm6, %v1040_v0, %v1041_v6  ;;  %v1039_v4 = vsel %vm4610_vm6, %v3780_v56, %v1038_v33  ;;  %v4959_v0 = vld [vmem:[%s4258_s25 + $0x88] sm:$0xf]  ;;  %v4962_v6 = vld [vmem:[%s4258_s25 + $0x84] sm:$0xf] }
  0x96   : > { %v765_v2 = vpop.permute.xlu1 %764 }
  0x97   : > { %858 = vst.msk [vmem:[#allocation2 + $0xc] sm:$0xf] %vm854_vm7, %v765_v2  ;;  %v761_v53 = vpop.permute.xlu0 %760  ;;  %v1025_v2 = vsel %vm4610_vm6, %v3778_v42, %v1024_v55  ;;  %v4908_v55 = vld [vmem:[%s4258_s25 + $0x4c] sm:$0xf] }
  0x98   : > { %856 = vst.msk [vmem:[#allocation2 + $0x4] sm:$0xf] %vm854_vm7, %v761_v53  ;;  %1074 = vrot.lane.b32.xlu2 %v983_v50, %s4197_s27  ;;  %v6360_v53 = vld [vmem:[#allocation11_spill] sm:$0xff]  ;;  %v4956_v42 = vld [vmem:[%s4258_s25 + $0x6c] sm:$0xf] }
  0x99   : > { %v1034_v50 = vrot.slane %v6360_v53, 5  ;;  %v4992_v53 = vld [vmem:[%s4258_s25 + $0x90] sm:$0xf] }
  0x9a   : > { %v781_v59 = vpop.permute.xlu2 %780 }
  0x9b   : > { %866 = vst.msk [vmem:[#allocation2 + $0x2c] sm:$0xf] %vm854_vm7, %v781_v59  ;;  %v1035_v12 = vsel %vm4610_vm6, %v1033_v9, %v1034_v50 }
  0x9c   : > { %1084 = vrot.lane.b32.xlu1 %v1000_v24, %s4197_s27 }
  0x9d   : > { %1082 = vrot.lane.b32.xlu0 %v997_v18, %s4197_s27 }
  0x9e   : > { %v773_v15 = vpop.permute.xlu1 %772 }
  0x9f   : > { %862 = vst.msk [vmem:[#allocation2 + $0x1c] sm:$0xf] %vm854_vm7, %v773_v15  ;;  %v771_v40 = vpop.permute.xlu0 %770 }
  0xa0   : > { %861 = vst.msk [vmem:[#allocation2 + $0x18] sm:$0xf] %vm854_vm7, %v771_v40  ;;  %1080 = vrot.lane.b32.xlu2 %v993_v7, %s4197_s27 }
  0xa2   : > { %v787_v38 = vpop.permute.xlu2 %786 }
  0xa3   : > { %869 = vst.msk [vmem:[#allocation2 + $0x38] sm:$0xf] %vm854_vm7, %v787_v38  ;;  %v4887_v38 = vld [vmem:[%s4258_s25 + $0x40] sm:$0xf] }
  0xa4   : > { %1090 = vrot.lane.b32.xlu1 %v1011_v5, %s4197_s27  ;;  %v4866_v5 = vld [vmem:[%s4258_s25 + $0x10] sm:$0xf] }
  0xa5   : > { %1088 = vrot.lane.b32.xlu0 %v1007_v36, %s4197_s27  ;;  %v4872_v36 = vld [vmem:[%s4258_s25 + $0x28] sm:$0xf]  ;;  %v1402_v50 = vshll.u32 %v4866_v5, 16 }
  0xa6   : > { %v779_v46 = vpop.permute.xlu1 %778 }
  0xa7   : > { %865 = vst.msk [vmem:[#allocation2 + $0x28] sm:$0xf] %vm854_vm7, %v779_v46  ;;  %v777_v60 = vpop.permute.xlu0 %776  ;;  %v4890_v46 = vld [vmem:[%s4258_s25 + $0x3c] sm:$0xf] }
  0xa8   : > { %864 = vst.msk [vmem:[#allocation2 + $0x24] sm:$0xf] %vm854_vm7, %v777_v60  ;;  %1086 = vrot.lane.b32.xlu2 %v1004_v10, %s4197_s27 }
  0xaa   : > { %v793_v34 = vpop.permute.xlu2 %792 }
  0xab   : > { %872 = vst.msk [vmem:[#allocation2 + $0x44] sm:$0xf] %vm854_vm7, %v793_v34  ;;  %v4926_v34 = vld [vmem:[%s4258_s25 + $0x60] sm:$0xf] }
  0xac   : > { %1096 = vrot.lane.b32.xlu1 %v1021_v51, %s4197_s27  ;;  %v4902_v51 = vld [vmem:[%s4258_s25 + $0x34] sm:$0xf] }
  0xad   : > { %1094 = vrot.lane.b32.xlu0 %v1018_v23, %s4197_s27  ;;  %v4905_v23 = vld [vmem:[%s4258_s25 + $0x54] sm:$0xf] }
  0xae   : > { %v785_v44 = vpop.permute.xlu1 %784 }
  0xaf   : > { %868 = vst.msk [vmem:[#allocation2 + $0x34] sm:$0xf] %vm854_vm7, %v785_v44  ;;  %v783_v62 = vpop.permute.xlu0 %782 }
  0xb0   : > { %867 = vst.msk [vmem:[#allocation2 + $0x30] sm:$0xf] %vm854_vm7, %v783_v62  ;;  %1092 = vrot.lane.b32.xlu2 %v1014_v52, %s4197_s27  ;;  %v4941_v62 = vld [vmem:[%s4258_s25 + $0x78] sm:$0xf]  ;;  %v4944_v52 = vld [vmem:[%s4258_s25 + $0x70] sm:$0xf] }
  0xb2   : > { %v799_v1 = vpop.permute.xlu2 %798 }
  0xb3   : > { %875 = vst.msk [vmem:[#allocation2 + $0x50] sm:$0xf] %vm854_vm7, %v799_v1 }
  0xb4   : > { %1102 = vrot.lane.b32.xlu1 %v1032_v37, %s4197_s27 }
  0xb5   : > { %1100 = vrot.lane.b32.xlu0 %v1028_v63, %s4197_s27 }
  0xb6   : > { %v791_v22 = vpop.permute.xlu1 %790 }
  0xb7   : > { %871 = vst.msk [vmem:[#allocation2 + $0x40] sm:$0xf] %vm854_vm7, %v791_v22  ;;  %v789_v17 = vpop.permute.xlu0 %788 }
  0xb8   : > { %870 = vst.msk [vmem:[#allocation2 + $0x3c] sm:$0xf] %vm854_vm7, %v789_v17  ;;  %1098 = vrot.lane.b32.xlu2 %v1025_v2, %s4197_s27  ;;  %v4974_v17 = vld [vmem:[%s4258_s25 + $0x7c] sm:$0xf] }
  0xb9   : > { %v4977_v2 = vld [vmem:[%s4258_s25 + $0x9c] sm:$0xf] }
  0xba   : > { %v805_v24 = vpop.permute.xlu2 %804 }
  0xbb   : > { %878 = vst.msk [vmem:[#allocation2 + $0x5c] sm:$0xf] %vm854_vm7, %v805_v24  ;;  %v1406_v24 = vshrl.u32 %v4866_v5, 16 }
  0xbc   : > { %1108 = vrot.lane.b32.xlu1 %v1042_v27, %s4197_s27  ;;  %v4980_v27 = vld [vmem:[%s4258_s25 + $0x94] sm:$0xf] }
  0xbd   : > { %1106 = vrot.lane.b32.xlu0 %v1039_v4, %s4197_s27 }
  0xbe   : > { %v797_v18 = vpop.permute.xlu1 %796 }
  0xbf   : > { %874 = vst.msk [vmem:[#allocation2 + $0x4c] sm:$0xf] %vm854_vm7, %v797_v18  ;;  %v795_v58 = vpop.permute.xlu0 %794  ;;  %v4997_v18 = vld [vmem:[%s4258_s25 + $0xac] sm:$0xf] }
  0xc0   : > { %873 = vst.msk [vmem:[#allocation2 + $0x48] sm:$0xf] %vm854_vm7, %v795_v58  ;;  %1104 = vrot.lane.b32.xlu2 %v1035_v12, %s4197_s27  ;;  %v5002_v58 = vld [vmem:[%s4258_s25 + $0xa8] sm:$0xf]  ;;  %v1404_v12 = vrot.slane %v1402_v50, 5  ;;  %v1468_v50 = vshll.u32 %v4869_v29, 16 }
  0xc2   : > { %v811_v32 = vpop.permute.xlu2 %810 }
  0xc3   : > { %881 = vst.msk [vmem:[#allocation2 + $0x68] sm:$0xf] %vm854_vm7, %v811_v32  ;;  %v1395_v32 = vrot.slane %v1393_v57, 4  ;;  %v5050_v57 = vld [vmem:[%s4258_s25 + $0xb4] sm:$0xf] }
  0xc4   : > { %1263 = vrot.lane.b32.xlu1 %v4837_v19, %s4198_s28 }
  0xc5   : > { %1112 = vrot.lane.b32.xlu0 %v1049_v48, %s4197_s27  ;;  %v1408_v48 = vrot.slane %v1406_v24, 4  ;;  %v1474_v24 = vshll.u32 %v4902_v51, 16 }
  0xc6   : > { %v803_v59 = vpop.permute.xlu1 %802 }
  0xc7   : > { %877 = vst.msk [vmem:[#allocation2 + $0x58] sm:$0xf] %vm854_vm7, %v803_v59  ;;  %v801_v15 = vpop.permute.xlu0 %800  ;;  %v1398_v59 = vrot.slane %v1396_v54, 5  ;;  %v1478_v54 = vshrl.u32 %v4902_v51, 16 }
  0xc8   : > { %876 = vst.msk [vmem:[#allocation2 + $0x54] sm:$0xf] %vm854_vm7, %v801_v15  ;;  %1110 = vrot.lane.b32.xlu2 %v1046_v49, %s4197_s27  ;;  %v5011_v15 = vld [vmem:[%s4258_s25 + $0x14] sm:$0x1] }
  0xca   : > { %v817_v43 = vpop.permute.xlu2 %816 }
  0xcb   : > { %884 = vst.msk [vmem:[#allocation2 + $0x74] sm:$0xf] %vm854_vm7, %v817_v43  ;;  %v5017_v43 = vld [vmem:[%s4258_s25 + $0xa0] sm:$0xf] }
  0xcc   : > { %1269 = vrot.lane.b32.xlu1 %v4852_v45, %s4198_s28 }
  0xcd   : > { %1267 = vrot.lane.b32.xlu0 %v4855_v14, %s4198_s28 }
  0xce   : > { %v809_v40 = vpop.permute.xlu1 %808 }
  0xcf   : > { %880 = vst.msk [vmem:[#allocation2 + $0x64] sm:$0xf] %vm854_vm7, %v809_v40  ;;  %v807_v7 = vpop.permute.xlu0 %806  ;;  %v1441_v40 = vshrl.u32 %v4884_v30, 16 }
  0xd0   : > { %879 = vst.msk [vmem:[#allocation2 + $0x60] sm:$0xf] %vm854_vm7, %v807_v7  ;;  %1265 = vrot.lane.b32.xlu2 %v4866_v5, %s4198_s28  ;;  %v1444_v7 = vshll.u32 %v4884_v30, 16 }
  0xd2   : > { %v1051_v61 = vpop.permute.xlu2 %1050 }
  0xd3   : > { %1147 = vst.msk [vmem:[#allocation2] sm:$0xf] %vm1146_vm8, %v1051_v61  ;;  %v5022_v61 = vld [vmem:[%s4258_s25 + $0xc0] sm:$0xf] }
  0xd4   : > { %1275 = vrot.lane.b32.xlu1 %v4869_v29, %s4198_s28 }
  0xd5   : > { %1273 = vrot.lane.b32.xlu0 %v4872_v36, %s4198_s28 }
  0xd6   : > { %v815_v41 = vpop.permute.xlu1 %814 }
  0xd7   : > { %883 = vst.msk [vmem:[#allocation2 + $0x70] sm:$0xf] %vm854_vm7, %v815_v41  ;;  %v813_v21 = vpop.permute.xlu0 %812  ;;  %v1409_v41 = vor.u32 %v1408_v48, %v1404_v12 }
  0xd8   : > { %882 = vst.msk [vmem:[#allocation2 + $0x6c] sm:$0xf] %vm854_vm7, %v813_v21  ;;  %1271 = vrot.lane.b32.xlu2 %v4884_v30, %s4198_s28  ;;  %v1412_v21 = vshll.u32 %v5011_v15, 16 }
  0xda   : > { %v1057_v20 = vpop.permute.xlu2 %1056 }
  0xdb   : > { %1150 = vst.msk [vmem:[#allocation2 + $0xc] sm:$0xf] %vm1146_vm8, %v1057_v20  ;;  %v1426_v20 = vshll.u32 %v4852_v45, 16 }
  0xdc   : > { %1281 = vrot.lane.b32.xlu1 %v4887_v38, %s4198_s28 }
  0xdd   : > { %1279 = vrot.lane.b32.xlu0 %v4890_v46, %s4198_s28 }
  0xde   : > { %v821_v60 = vpop.permute.xlu1 %820 }
  0xdf   : > { %886 = vst.msk [vmem:[#allocation2 + $0x7c] sm:$0xf] %vm854_vm7, %v821_v60  ;;  %v819_v10 = vpop.permute.xlu0 %818  ;;  %v1430_v60 = vshrl.u32 %v4852_v45, 16 }
  0xe0   : > { %885 = vst.msk [vmem:[#allocation2 + $0x78] sm:$0xf] %vm854_vm7, %v819_v10  ;;  %1277 = vrot.lane.b32.xlu2 %v4902_v51, %s4198_s28  ;;  %v5028_v10 = vld [vmem:[%s4258_s25 + $0xb8] sm:$0xf] }
  0xe2   : > { %v1063_v28 = vpop.permute.xlu2 %1062 }
  0xe3   : > { %1153 = vst.msk [vmem:[#allocation2 + $0x18] sm:$0xf] %vm1146_vm8, %v1063_v28  ;;  %v1399_v28 = vor.u32 %v1398_v59, %v1395_v32  ;;  %v1450_v32 = vshll.u32 %v4872_v36, 16 }
  0xe4   : > { %1287 = vrot.lane.b32.xlu1 %v4905_v23, %s4198_s28 }
  0xe5   : > { %1285 = vrot.lane.b32.xlu0 %v4908_v55, %s4198_s28 }
  0xe6   : > { %v1055_v3 = vpop.permute.xlu1 %1054 }
  0xe7   : > { %1149 = vst.msk [vmem:[#allocation2 + $0x8] sm:$0xf] %vm1146_vm8, %v1055_v3  ;;  %v1053_v16 = vpop.permute.xlu0 %1052  ;;  %v1443_v3 = vrot.slane %v1441_v40, 4 }
  0xe8   : > { %1148 = vst.msk [vmem:[#allocation2 + $0x4] sm:$0xf] %vm1146_vm8, %v1053_v16  ;;  %1283 = vrot.lane.b32.xlu2 %v4920_v8, %s4198_s28  ;;  %v1446_v16 = vrot.slane %v1444_v7, 5 }
  0xea   : > { %v1069_v44 = vpop.permute.xlu2 %1068 }
  0xeb   : > { %1156 = vst.msk [vmem:[#allocation2 + $0x24] sm:$0xf] %vm1146_vm8, %v1069_v44  ;;  %v1410_v44 = vrot.slane %v1409_v41, 4  ;;  %v1470_v41 = vrot.slane %v1468_v50, 5 }
  0xec   : > { %1293 = vrot.lane.b32.xlu1 %v4923_v47, %s4198_s28 }
  0xed   : > { %1291 = vrot.lane.b32.xlu0 %v4926_v34, %s4198_s28 }
  0xee   : > { %v1061_v26 = vpop.permute.xlu1 %1060 }
  0xef   : > { %1152 = vst.msk [vmem:[#allocation2 + $0x14] sm:$0xf] %vm1146_vm8, %v1061_v26  ;;  %v1059_v39 = vpop.permute.xlu0 %1058  ;;  %v1414_v26 = vrot.slane %v1412_v21, 5  ;;  %v5063_v21 = vrot.slane %v1474_v24, 5 }
  0xf0   : > { %1151 = vst.msk [vmem:[#allocation2 + $0x10] sm:$0xf] %vm1146_vm8, %v1059_v39  ;;  %1289 = vrot.lane.b32.xlu2 %v4938_v35, %s4198_s28 }
  0xf1   : > { %v1415_v48 = vsel %vm4292_vm2, %v1410_v44, %v1414_v26  ;;  %v5069_v26 = vld [vmem:[%s4258_s25 + $0x38] sm:$0x1] }
  0xf2   : > { %v1075_v37 = vpop.permute.xlu2 %1074  ;;  %v1484_v24 = vshll.u32 %v5069_v26, 16 }
  0xf3   : > { %1159 = vst.msk [vmem:[#allocation2 + $0x30] sm:$0xf] %vm1146_vm8, %v1075_v37  ;;  %v5036_v37 = vrot.slane %v1426_v20, 5  ;;  %v1480_v20 = vrot.slane %v1478_v54, 4  ;;  %v1502_v54 = vshrl.u32 %v4887_v38, 16 }
  0xf4   : > { %1299 = vrot.lane.b32.xlu1 %v4941_v62, %s4198_s28 }
  0xf5   : > { %1297 = vrot.lane.b32.xlu0 %v4944_v52, %s4198_s28  ;;  %v1481_v50 = vor.u32 %v1480_v20, %v5063_v21  ;;  %v1486_v20 = vrot.slane %v1484_v24, 5  ;;  %v1550_v24 = vshrl.u32 %v4938_v35, 16 }
  0xf6   : > { %v1067_v33 = vpop.permute.xlu1 %1066 }
  0xf7   : > { %1155 = vst.msk [vmem:[#allocation2 + $0x20] sm:$0xf] %vm1146_vm8, %v1067_v33  ;;  %v1065_v63 = vpop.permute.xlu0 %1064  ;;  %v1432_v33 = vrot.slane %v1430_v60, 4  ;;  %v5066_v60 = vrot.slane %v1450_v32, 5 }
  0xf8   : > { %1154 = vst.msk [vmem:[#allocation2 + $0x1c] sm:$0xf] %vm1146_vm8, %v1065_v63  ;;  %1295 = vrot.lane.b32.xlu2 %v4956_v42, %s4198_s28  ;;  %v1417_v63 = vshrl.u32 %v4855_v14, 16 }
  0xfa   : > { %v1081_v1 = vpop.permute.xlu2 %1080 }
  0xfb   : > { %1162 = vst.msk [vmem:[#allocation2 + $0x3c] sm:$0xf] %vm1146_vm8, %v1081_v1 }
  0xfc   : > { %1305 = vrot.lane.b32.xlu1 %v4959_v0, %s4198_s28 }
  0xfd   : > { %1303 = vrot.lane.b32.xlu0 %v4962_v6, %s4198_s28 }
  0xfe   : > { %v1073_v22 = vpop.permute.xlu1 %1072 }
  0xff   : > { %1158 = vst.msk [vmem:[#allocation2 + $0x2c] sm:$0xf] %vm1146_vm8, %v1073_v22  ;;  %v1071_v56 = vpop.permute.xlu0 %1070  ;;  %v1400_v22 = vrot.slane %v1399_v28, 4 }
 0x100   : > { %1157 = vst.msk [vmem:[#allocation2 + $0x28] sm:$0xf] %vm1146_vm8, %v1071_v56  ;;  %1301 = vrot.lane.b32.xlu2 %v4974_v17, %s4198_s28  ;;  %v1420_v56 = vshll.u32 %v4855_v14, 16 }
 0x101   : > { %v1405_v59 = vsel %vm4292_vm2, %v1400_v22, %v1404_v12  ;;  %v5078_v22 = vld [vmem:[%s4258_s25 + $0xc4] sm:$0xf] }
 0x102   : > { %v1087_v4 = vpop.permute.xlu2 %1086  ;;  %v1422_v40 = vrot.slane %v1420_v56, 5 }
 0x103   : > { %1165 = vst.msk [vmem:[#allocation2 + $0x48] sm:$0xf] %vm1146_vm8, %v1087_v4  ;;  %v1465_v4 = vshrl.u32 %v4869_v29, 16 }
 0x104   : > { %1311 = vrot.lane.b32.xlu1 %v4977_v2, %s4198_s28 }
 0x105   : > { %1309 = vrot.lane.b32.xlu0 %v4980_v27, %s4198_s28  ;;  %v1467_v7 = vrot.slane %v1465_v4, 4  ;;  %v1516_v4 = vshll.u32 %v4920_v8, 16 }
 0x106   : > { %v1079_v31 = vpop.permute.xlu1 %1078 }
 0x107   : > { %1161 = vst.msk [vmem:[#allocation2 + $0x38] sm:$0xf] %vm1146_vm8, %v1079_v31  ;;  %v1077_v9 = vpop.permute.xlu0 %1076 }
 0x108   : > { %1160 = vst.msk [vmem:[#allocation2 + $0x34] sm:$0xf] %vm1146_vm8, %v1077_v9  ;;  %1307 = vrot.lane.b32.xlu2 %v4992_v53, %s4198_s28  ;;  %v5044_v9 = vld [vmem:[%s4258_s25 + $0x20] sm:$0x1] }
 0x109   : > { %v1436_v29 = vshll.u32 %v5044_v9, 16 }
 0x10a   : > { %v1093_v11 = vpop.permute.xlu2 %1092 }
 0x10b   : > { %1168 = vst.msk [vmem:[#allocation2 + $0x54] sm:$0xf] %vm1146_vm8, %v1093_v11  ;;  %v1447_v11 = vor.u32 %v1446_v16, %v1443_v3  ;;  %v1438_v44 = vrot.slane %v1436_v29, 5 }
 0x10c   : > { %1317 = vrot.lane.b32.xlu1 %v4997_v18, %s4198_s28 }
 0x10d   : > { %1315 = vrot.lane.b32.xlu0 %v5002_v58, %s4198_s28  ;;  %v1448_v12 = vrot.slane %v1447_v11, 4  ;;  %v1471_v11 = vor.u32 %v1470_v41, %v1467_v7  ;;  %v1504_v7 = vrot.slane %v1502_v54, 4  ;;  %v1489_v41 = vshrl.u32 %v4890_v46, 16 }
 0x10e   : > { %v1085_v19 = vpop.permute.xlu1 %1084 }
 0x10f   : > { %1164 = vst.msk [vmem:[#allocation2 + $0x44] sm:$0xf] %vm1146_vm8, %v1085_v19  ;;  %v1083_v49 = vpop.permute.xlu0 %1082  ;;  %v1433_v19 = vor.u32 %v1432_v33, %v5036_v37 }
 0x110   : > { %1163 = vst.msk [vmem:[#allocation2 + $0x40] sm:$0xf] %vm1146_vm8, %v1083_v49  ;;  %1313 = vrot.lane.b32.xlu2 %v5017_v43, %s4198_s28  ;;  %v1419_v49 = vrot.slane %v1417_v63, 4  ;;  %v1498_v63 = vshll.u32 %v4887_v38, 16 }
 0x111   : > { %v1434_v16 = vrot.slane %v1433_v19, 4 }
 0x112   : > { %v1099_v39 = vpop.permute.xlu2 %1098  ;;  %v1423_v56 = vor.u32 %v1422_v40, %v1419_v49  ;;  %v1518_v49 = vrot.slane %v1516_v4, 5  ;;  %v1482_v40 = vrot.slane %v1481_v50, 4 }
 0x113   : > { %1171 = vst.msk [vmem:[#allocation2 + $0x60] sm:$0xf] %vm1146_vm8, %v1099_v39  ;;  %v1454_v39 = vshrl.u32 %v4872_v36, 16 }
 0x114   : > { %1323 = vrot.lane.b32.xlu1 %v5022_v61, %s4198_s28  ;;  %v1424_v19 = vrot.slane %v1423_v56, 4  ;;  %v1546_v56 = vshll.u32 %v4938_v35, 16 }
 0x115   : > { %1321 = vrot.lane.b32.xlu0 %v5028_v10, %s4198_s28  ;;  %v1456_v32 = vrot.slane %v1454_v39, 4  ;;  %v1537_v39 = vshrl.u32 %v4905_v23, 16 }
 0x116   : > { %v1091_v1 = vpop.permute.xlu1 %1090  ;;  %v1429_v4 = vsel %vm4292_vm2, %v1424_v19, %v5036_v37  ;;  %v1491_v19 = vrot.slane %v1489_v41, 4 }
 0x117   : > { %1167 = vst.msk [vmem:[#allocation2 + $0x50] sm:$0xf] %vm1146_vm8, %v1091_v1  ;;  %v1089_v31 = vpop.permute.xlu0 %1088  ;;  %v1513_v1 = vshrl.u32 %v4920_v8, 16 }
 0x118   : > { %1166 = vst.msk [vmem:[#allocation2 + $0x4c] sm:$0xf] %vm1146_vm8, %v1089_v31  ;;  %1319 = vrot.lane.b32.xlu2 %v5050_v57, %s4198_s28  ;;  %v1453_v31 = vsel %vm4292_vm2, %v1448_v12, %v5066_v60 }
 0x119   : > { %v1515_v29 = vrot.slane %v1513_v1, 4  ;;  %v5105_v1 = vld [vmem:[%s4258_s25 + $0x44] sm:$0x1] }
 0x11a   : > { %v1105_v28 = vpop.permute.xlu2 %1104  ;;  %6361 = vst [vmem:[#allocation10_spill] sm:$0xff] %v5105_v1  ;;  %v1508_v37 = vshll.u32 %v5105_v1, 16  ;;  %v5131_v1 = vld [vmem:[%s4258_s25 + $0x5c] sm:$0x1] }
 0x11b   : > { %1174 = vst.msk [vmem:[#allocation2 + $0x6c] sm:$0xf] %vm1146_vm8, %v1105_v28  ;;  %v5096_v28 = vld [vmem:[%s4258_s25 + $0x2c] sm:$0x1]  ;;  %v1519_v54 = vor.u32 %v1518_v49, %v1515_v29 }
 0x11c   : > { %1778 = vrot.lane.b32.xlu1 %v1415_v48, %s4199_s29  ;;  %v1439_v48 = vsel %vm4292_vm2, %v1434_v16, %v1438_v44  ;;  %v1472_v44 = vrot.slane %v1471_v11, 4  ;;  %v1460_v50 = vshll.u32 %v5096_v28, 16 }
 0x11d   : > { %1776 = vrot.lane.b32.xlu0 %v1405_v59, %s4199_s29  ;;  %v5091_v59 = vrot.slane %v1498_v63, 5 }
 0x11e   : > { %v1097_v3 = vpop.permute.xlu1 %1096  ;;  %v1477_v11 = vsel %vm4292_vm2, %v1472_v44, %v5063_v21  ;;  %v1462_v49 = vrot.slane %v1460_v50, 5  ;;  %v1520_v21 = vrot.slane %v1519_v54, 4  ;;  %v1684_v50 = vshll.u32 %v4977_v2, 16 }
 0x11f   : > { %1170 = vst.msk [vmem:[#allocation2 + $0x5c] sm:$0xf] %vm1146_vm8, %v1097_v3  ;;  %v1095_v33 = vpop.permute.xlu0 %1094  ;;  %v1492_v3 = vshll.u32 %v4890_v46, 16 }
 0x120   : > { %1169 = vst.msk [vmem:[#allocation2 + $0x58] sm:$0xf] %vm1146_vm8, %v1095_v33  ;;  %1325 = vrot.lane.b32.xlu2 %v5078_v22, %s4198_s28  ;;  %v1540_v33 = vshll.u32 %v4905_v23, 16  ;;  %v1487_v23 = vsel %vm4292_vm2, %v1482_v40, %v1486_v20  ;;  %v5125_v40 = vrot.slane %v1546_v56, 5  ;;  %v1552_v20 = vrot.slane %v1550_v24, 4 }
 0x121   : > { %v1574_v56 = vshrl.u32 %v4923_v47, 16  ;;  %v1585_v24 = vshrl.u32 %v4956_v42, 16 }
 0x122   : > { %v1111_v12 = vpop.permute.xlu2 %1110 }
 0x123   : > { %1177 = vst.msk [vmem:[#allocation2 + $0x78] sm:$0xf] %vm1146_vm8, %v1111_v12  ;;  %v1505_v12 = vor.u32 %v1504_v7, %v5091_v59 }
 0x124   : > { %1784 = vrot.lane.b32.xlu1 %v1453_v31, %s4199_s29  ;;  %v1457_v31 = vor.u32 %v1456_v32, %v5066_v60  ;;  %v1494_v60 = vrot.slane %v1492_v3, 5  ;;  %v1539_v32 = vrot.slane %v1537_v39, 4  ;;  %v1526_v39 = vshrl.u32 %v4908_v55, 16 }
 0x125   : > { %1782 = vrot.lane.b32.xlu0 %v1439_v48, %s4199_s29  ;;  %v1522_v48 = vshll.u32 %v4908_v55, 16  ;;  %v1506_v44 = vrot.slane %v1505_v12, 4  ;;  %v1556_v12 = vshll.u32 %v5131_v1, 16 }
 0x126   : > { %v1103_v16 = vpop.permute.xlu1 %1102  ;;  %v1458_v29 = vrot.slane %v1457_v31, 4  ;;  %v1495_v54 = vor.u32 %v1494_v60, %v1491_v19  ;;  %v1561_v19 = vshrl.u32 %v4926_v34, 16  ;;  %v1686_v60 = vrot.slane %v1684_v50, 5 }
 0x127   : > { %1173 = vst.msk [vmem:[#allocation2 + $0x68] sm:$0xf] %vm1146_vm8, %v1103_v16  ;;  %v1101_v63 = vpop.permute.xlu0 %1100  ;;  %v1542_v16 = vrot.slane %v1540_v33, 5  ;;  %v5128_v7 = vrot.slane %v1522_v48, 5  ;;  %v1570_v33 = vshll.u32 %v4923_v47, 16  ;;  %v1588_v48 = vshll.u32 %v4956_v42, 16 }
 0x128   : > { %1172 = vst.msk [vmem:[#allocation2 + $0x64] sm:$0xf] %vm1146_vm8, %v1101_v63  ;;  %1780 = vrot.lane.b32.xlu2 %v1429_v4, %s4199_s29  ;;  %v1510_v63 = vrot.slane %v1508_v37, 5  ;;  %v1681_v4 = vshrl.u32 %v4977_v2, 16 }
 0x129   : > { %v1525_v47 = vsel %vm4292_vm2, %v1520_v21, %v5128_v7  ;;  %v1543_v37 = vor.u32 %v1542_v16, %v1539_v32  ;;  %v1590_v21 = vrot.slane %v1588_v48, 5  ;;  %v1558_v16 = vrot.slane %v1556_v12, 5  ;;  %v5170_v48 = vld [vmem:[%s4258_s25 + $0x68] sm:$0x1] }
 0x12a   : > { %v1266_v41 = vpop.permute.xlu2 %1265  ;;  %v1511_v2 = vsel %vm4292_vm2, %v1506_v44, %v1510_v63  ;;  %v1683_v42 = vrot.slane %v1681_v4, 4  ;;  %v5160_v63 = vld [vmem:[%s4258_s25 + $0x50] sm:$0x1] }
 0x12b   : > { %1361 = vst.msk [vmem:[#allocation2 + $0x4] sm:$0xf] %vm1359_vm9, %v1266_v41  ;;  %v1528_v41 = vrot.slane %v1526_v39, 4  ;;  %v1564_v39 = vshll.u32 %v4926_v34, 16  ;;  %v1544_v50 = vrot.slane %v1543_v37, 4  ;;  %v1594_v37 = vshll.u32 %v4944_v52, 16 }
 0x12c   : > { %1790 = vrot.lane.b32.xlu1 %v1487_v23, %s4199_s29  ;;  %v1463_v23 = vsel %vm4292_vm2, %v1458_v29, %v1462_v49  ;;  %v1576_v29 = vrot.slane %v1574_v56, 4  ;;  %v1587_v49 = vrot.slane %v1585_v24, 4  ;;  %v1612_v56 = vshll.u32 %v4941_v62, 16 }
 0x12d   : > { %1788 = vrot.lane.b32.xlu0 %v1477_v11, %s4199_s29  ;;  %v1553_v11 = vor.u32 %v1552_v20, %v5125_v40  ;;  %v1496_v20 = vrot.slane %v1495_v54, 4  ;;  %v1618_v24 = vshll.u32 %v4974_v17, 16 }
 0x12e   : > { %v1109_v3 = vpop.permute.xlu1 %1108 }
 0x12f   : > { %1176 = vst.msk [vmem:[#allocation2 + $0x74] sm:$0xf] %vm1146_vm8, %v1109_v3  ;;  %v1107_v31 = vpop.permute.xlu0 %1106  ;;  %v5152_v3 = vrot.slane %v1570_v33, 5  ;;  %v1554_v32 = vrot.slane %v1553_v11, 4  ;;  %v1609_v33 = vshrl.u32 %v4941_v62, 16  ;;  %v1501_v34 = vsel %vm4292_vm2, %v1496_v20, %v5091_v59 }
 0x130   : > { %1175 = vst.msk [vmem:[#allocation2 + $0x70] sm:$0xf] %vm1146_vm8, %v1107_v31  ;;  %1786 = vrot.lane.b32.xlu2 %v1463_v23, %s4199_s29  ;;  %v1690_v31 = vshll.u32 %v5017_v43, 16  ;;  %v1622_v23 = vshrl.u32 %v4974_v17, 16  ;;  %v1529_v62 = vor.u32 %v1528_v41, %v5128_v7  ;;  %v1687_v11 = vor.u32 %v1686_v60, %v1683_v42 }
 0x131   : > { %v1559_v17 = vsel %vm4292_vm2, %v1554_v32, %v1558_v16  ;;  %v1580_v59 = vshll.u32 %v5170_v48, 16  ;;  %v1563_v41 = vrot.slane %v1561_v19, 4  ;;  %v1566_v42 = vrot.slane %v1564_v39, 5 }
 0x132   : > { %v1272_v44 = vpop.permute.xlu2 %1271  ;;  %v5178_v12 = vrot.slane %v1690_v31, 5  ;;  %v5188_v7 = vrot.slane %v1687_v11, 4  ;;  %v1611_v60 = vrot.slane %v1609_v33, 4  ;;  %v1614_v20 = vrot.slane %v1612_v56, 5 }
 0x133   : > { %1364 = vst.msk [vmem:[#allocation2 + $0x10] sm:$0xf] %vm1359_vm9, %v1272_v44  ;;  %v1549_v44 = vsel %vm4292_vm2, %v1544_v50, %v5125_v40  ;;  %v1624_v19 = vrot.slane %v1622_v23, 4  ;;  %v5200_v16 = vrot.slane %v1594_v37, 5  ;;  %v1582_v56 = vrot.slane %v1580_v59, 5 }
 0x134   : > { %1796 = vrot.lane.b32.xlu1 %v1525_v47, %s4199_s29  ;;  %v1532_v47 = vshll.u32 %v5160_v63, 16  ;;  %v5203_v50 = vld [vmem:[%s4258_s25 + $0x80] sm:$0x1]  ;;  %v1657_v11 = vshrl.u32 %v4992_v53, 16  ;;  %v1615_v59 = vor.u32 %v1614_v20, %v1611_v60 }
 0x135   : > { %1794 = vrot.lane.b32.xlu0 %v1511_v2, %s4199_s29  ;;  %v1591_v2 = vor.u32 %v1590_v21, %v1587_v49  ;;  %v1598_v49 = vshrl.u32 %v4944_v52, 16  ;;  %v1530_v21 = vrot.slane %v1529_v62, 4  ;;  %v1567_v62 = vor.u32 %v1566_v42, %v1563_v41 }
 0x136   : > { %v1264_v4 = vpop.permute.xlu1 %1263  ;;  %v1534_v31 = vrot.slane %v1532_v47, 5  ;;  %v1756_v47 = vshll.u32 %v5022_v61, 16  ;;  %v1646_v41 = vshrl.u32 %v4959_v0, 16 }
 0x137   : > { %1360 = vst.msk [vmem:[#allocation2] sm:$0xf] %vm1359_vm9, %v1264_v4  ;;  %v1113_v54 = vpop.permute.xlu0 %1112  ;;  %v1577_v4 = vor.u32 %v1576_v29, %v5152_v3  ;;  %v5197_v29 = vrot.slane %v1618_v24, 5  ;;  %v1592_v32 = vrot.slane %v1591_v2, 4  ;;  %v1753_v24 = vshrl.u32 %v5022_v61, 16 }
 0x138   : > { %1178 = vst.msk [vmem:[#allocation2 + $0x7c] sm:$0xf] %vm1146_vm8, %v1113_v54  ;;  %1792 = vrot.lane.b32.xlu2 %v1501_v34, %s4199_s29  ;;  %v1633_v54 = vshrl.u32 %v4962_v6, 16  ;;  %v1636_v34 = vshll.u32 %v4962_v6, 16  ;;  %v1535_v2 = vsel %vm4292_vm2, %v1530_v21, %v1534_v31  ;;  %v1642_v61 = vshll.u32 %v4959_v0, 16 }
 0x139   : > { %v1578_v52 = vrot.slane %v1577_v4, 4  ;;  %v1597_v37 = vsel %vm4292_vm2, %v1592_v32, %v5200_v16  ;;  %v1628_v4 = vshll.u32 %v5203_v50, 16  ;;  %v1600_v42 = vrot.slane %v1598_v49, 4 }
 0x13a   : > { %v1278_v39 = vpop.permute.xlu2 %1277  ;;  %v1762_v21 = vshll.u32 %v5078_v22, 16  ;;  %v1568_v31 = vrot.slane %v1567_v62, 4  ;;  %v1638_v32 = vrot.slane %v1636_v34, 5  ;;  %v1616_v49 = vrot.slane %v1615_v59, 4 }
 0x13b   : > { %1367 = vst.msk [vmem:[#allocation2 + $0x1c] sm:$0xf] %vm1359_vm9, %v1278_v39  ;;  %v1635_v39 = vrot.slane %v1633_v54, 4  ;;  %v5230_v54 = vld [vmem:[%s4258_s25 + $0x74] sm:$0x1]  ;;  %v5232_v40 = vrot.slane %v1642_v61, 5 }
 0x13c   : > { %1802 = vrot.lane.b32.xlu1 %v1559_v17, %s4199_s29  ;;  %v1660_v17 = vshll.u32 %v4992_v53, 16  ;;  %v1583_v53 = vsel %vm4292_vm2, %v1578_v52, %v1582_v56  ;;  %v1630_v52 = vrot.slane %v1628_v4, 5  ;;  %v1694_v34 = vshrl.u32 %v5017_v43, 16 }
 0x13d   : > { %1800 = vrot.lane.b32.xlu0 %v1549_v44, %s4199_s29  ;;  %v1625_v44 = vor.u32 %v1624_v19, %v5197_v29  ;;  %v1755_v19 = vrot.slane %v1753_v24, 4  ;;  %v5236_v24 = vrot.slane %v1762_v21, 5  ;;  %v1639_v4 = vor.u32 %v1638_v32, %v1635_v39 }
 0x13e   : > { %v1270_v33 = vpop.permute.xlu1 %1269  ;;  %v1662_v60 = vrot.slane %v1660_v17, 5  ;;  %v1573_v17 = vsel %vm4292_vm2, %v1568_v31, %v5152_v3  ;;  %v1621_v61 = vsel %vm4292_vm2, %v1616_v49, %v5197_v29 }
 0x13f   : > { %1363 = vst.msk [vmem:[#allocation2 + $0xc] sm:$0xf] %vm1359_vm9, %v1270_v33  ;;  %v1268_v23 = vpop.permute.xlu0 %1267  ;;  %v1758_v33 = vrot.slane %v1756_v47, 5  ;;  %v1626_v20 = vrot.slane %v1625_v44, 4  ;;  %v1604_v44 = vshll.u32 %v5230_v54, 16  ;;  %v5256_v31 = vrot.slane %v1639_v4, 4 }
 0x140   : > { %1362 = vst.msk [vmem:[#allocation2 + $0x8] sm:$0xf] %vm1359_vm9, %v1268_v23  ;;  %1798 = vrot.lane.b32.xlu2 %v1535_v2, %s4199_s29  ;;  %v1659_v23 = vrot.slane %v1657_v11, 4  ;;  %v1648_v2 = vrot.slane %v1646_v41, 4  ;;  %v5240_v11 = vld [vmem:[%s4258_s25 + $0x8c] sm:$0x1] }
 0x141   : > { %v1759_v59 = vor.u32 %v1758_v33, %v1755_v19  ;;  %v1631_v43 = vsel %vm4292_vm2, %v1626_v20, %v1630_v52  ;;  %v1652_v21 = vshll.u32 %v5240_v11, 16  ;;  %v1606_v39 = vrot.slane %v1604_v44, 5 }
 0x142   : > { %v1284_v56 = vpop.permute.xlu2 %1283  ;;  %v1663_v41 = vor.u32 %v1662_v60, %v1659_v23  ;;  %v1649_v3 = vor.u32 %v1648_v2, %v5232_v40  ;;  %v1645_v29 = vsel %vm4292_vm2, %v5256_v31, %v5232_v40  ;;  %v1696_v19 = vrot.slane %v1694_v34, 4 }
 0x143   : > { %1370 = vst.msk [vmem:[#allocation2 + $0x28] sm:$0xf] %vm1359_vm9, %v1284_v56  ;;  %v1654_v49 = vrot.slane %v1652_v21, 5  ;;  %v5272_v56 = vld [vmem:[%s4258_s25 + $0xa4] sm:$0x1]  ;;  %v1670_v40 = vshrl.u32 %v4980_v27, 16 }
 0x144   : > { %1808 = vrot.lane.b32.xlu1 %v1597_v37, %s4199_s29  ;;  %v1601_v37 = vor.u32 %v1600_v42, %v5200_v16  ;;  %v5258_v16 = vrot.slane %v1759_v59, 4  ;;  %v1664_v33 = vrot.slane %v1663_v41, 4  ;;  %v1650_v52 = vrot.slane %v1649_v3, 4 }
 0x145   : > { %1806 = vrot.lane.b32.xlu0 %v1583_v53, %s4199_s29  ;;  %v1666_v53 = vshll.u32 %v4980_v27, 16  ;;  %v1708_v34 = vshll.u32 %v5002_v58, 16  ;;  %v1697_v27 = vor.u32 %v1696_v19, %v5178_v12  ;;  %v1700_v4 = vshll.u32 %v5272_v56, 16 }
 0x146   : > { %v1276_v62 = vpop.permute.xlu1 %1275  ;;  %v1602_v42 = vrot.slane %v1601_v37, 4  ;;  %v1765_v32 = vsel %vm4292_vm2, %v5258_v16, %v5236_v24  ;;  %v1732_v37 = vshll.u32 %v5050_v57, 16  ;;  %v1714_v59 = vshll.u32 %v4997_v18, 16 }
 0x147   : > { %1366 = vst.msk [vmem:[#allocation2 + $0x18] sm:$0xf] %vm1359_vm9, %v1276_v62  ;;  %v1274_v47 = vpop.permute.xlu0 %1273  ;;  %v1668_v23 = vrot.slane %v1666_v53, 5  ;;  %v1705_v62 = vshrl.u32 %v5002_v58, 16  ;;  %v1672_v41 = vrot.slane %v1670_v40, 4  ;;  %v1710_v3 = vrot.slane %v1708_v34, 5 }
 0x148   : > { %1365 = vst.msk [vmem:[#allocation2 + $0x14] sm:$0xf] %vm1359_vm9, %v1274_v47  ;;  %1804 = vrot.lane.b32.xlu2 %v1573_v17, %s4199_s29  ;;  %v1729_v47 = vshrl.u32 %v5050_v57, 16  ;;  %v1607_v17 = vsel %vm4292_vm2, %v1602_v42, %v1606_v39  ;;  %v1734_v31 = vrot.slane %v1732_v37, 5  ;;  %v1698_v42 = vrot.slane %v1697_v27, 4 }
 0x149   : > { %v1669_v44 = vsel %vm4292_vm2, %v1664_v33, %v1668_v23  ;;  %v1707_v53 = vrot.slane %v1705_v62, 4  ;;  %v1702_v39 = vrot.slane %v1700_v4, 5  ;;  %v5296_v33 = vld [vmem:[%s4258_s25 + $0x98] sm:$0x1]  ;;  %v5301_v40 = vld [vmem:[%s4258_s25 + $0xb0] sm:$0x1] }
 0x14a   : > { %v1290_v60 = vpop.permute.xlu2 %1289  ;;  %v1731_v21 = vrot.slane %v1729_v47, 4  ;;  %v1676_v62 = vshll.u32 %v5296_v33, 16  ;;  %v1766_v47 = vshrl.u32 %v5078_v22, 16  ;;  %v1724_v4 = vshll.u32 %v5301_v40, 16 }
 0x14b   : > { %1373 = vst.msk [vmem:[#allocation2 + $0x34] sm:$0xf] %vm1359_vm9, %v1290_v60  ;;  %v1716_v60 = vrot.slane %v1714_v59, 5  ;;  %v1711_v34 = vor.u32 %v1710_v3, %v1707_v53  ;;  %v6362_v53 = vsel %vm4292_vm2, %v5188_v7, %v5178_v12 }
 0x14c   : > { %1814 = vrot.lane.b32.xlu1 %v1631_v43, %s4199_s29  ;;  %v1718_v43 = vshrl.u32 %v4997_v18, 16  ;;  %v1735_v37 = vor.u32 %v1734_v31, %v1731_v21 }
 0x14d   : > { %1812 = vrot.lane.b32.xlu0 %v1621_v61, %s4199_s29  ;;  %v1655_v61 = vsel %vm4292_vm2, %v1650_v52, %v1654_v49  ;;  %v1712_v59 = vrot.slane %v1711_v34, 4 }
 0x14e   : > { %v1282_v20 = vpop.permute.xlu1 %1281  ;;  %v1736_v3 = vrot.slane %v1735_v37, 4 }
 0x14f   : > { %1369 = vst.msk [vmem:[#allocation2 + $0x24] sm:$0xf] %vm1359_vm9, %v1282_v20  ;;  %v1280_v2 = vpop.permute.xlu0 %1279  ;;  %v1720_v20 = vrot.slane %v1718_v43, 4  ;;  %v1678_v43 = vrot.slane %v1676_v62, 5 }
 0x150   : > { %1368 = vst.msk [vmem:[#allocation2 + $0x20] sm:$0xf] %vm1359_vm9, %v1280_v2  ;;  %1810 = vrot.lane.b32.xlu2 %v1607_v17, %s4199_s29  ;;  %v1673_v2 = vor.u32 %v1672_v41, %v1668_v23  ;;  %v1703_v17 = vsel %vm4292_vm2, %v1698_v42, %v1702_v39  ;;  %v1768_v41 = vrot.slane %v1766_v47, 4  ;;  %v1726_v39 = vrot.slane %v1724_v4, 5 }
 0x151   : > { %v1721_v27 = vor.u32 %v1720_v20, %v1716_v60  ;;  %v1742_v20 = vshrl.u32 %v5028_v10, 16 }
 0x152   : > { %v1296_v19 = vpop.permute.xlu2 %1295  ;;  %v1674_v23 = vrot.slane %v1673_v2, 4 }
 0x153   : > { %1376 = vst.msk [vmem:[#allocation2 + $0x40] sm:$0xf] %vm1359_vm9, %v1296_v19  ;;  %v5321_v19 = vld [vmem:[%s4258_s25 + $0xc8] sm:$0x1]  ;;  %v1744_v62 = vrot.slane %v1742_v20, 4  ;;  %v3832_v20 = vrot.slane %v4884_v30, 9 }
 0x154   : > { %1820 = vrot.lane.b32.xlu1 %v1669_v44, %s4199_s29  ;;  %v1738_v44 = vshll.u32 %v5028_v10, 16  ;;  %v1679_v12 = vsel %vm4292_vm2, %v1674_v23, %v1678_v43  ;;  %v1923_v23 = vrot.slane %v4866_v5, 5  ;;  %v1993_v30 = vrot.slane %v4959_v0, 5 }
 0x155   : > { %1818 = vrot.lane.b32.xlu0 %v1655_v61, %s4199_s29  ;;  %v1717_v61 = vsel %vm4292_vm2, %v1712_v59, %v1716_v60 }
 0x156   : > { %v1288_v52 = vpop.permute.xlu1 %1287  ;;  %v1740_v21 = vrot.slane %v1738_v44, 5 }
 0x157   : > { %1372 = vst.msk [vmem:[#allocation2 + $0x30] sm:$0xf] %vm1359_vm9, %v1288_v52  ;;  %v1286_v49 = vpop.permute.xlu0 %1285  ;;  %v1769_v52 = vor.u32 %v1768_v41, %v5236_v24 }
 0x158   : > { %1371 = vst.msk [vmem:[#allocation2 + $0x2c] sm:$0xf] %vm1359_vm9, %v1286_v49  ;;  %1816 = vrot.lane.b32.xlu2 %v1645_v29, %s4199_s29  ;;  %v1722_v29 = vrot.slane %v1721_v27, 4  ;;  %v1741_v7 = vsel %vm4292_vm2, %v1736_v3, %v1740_v21  ;;  %v1772_v49 = vshll.u32 %v5321_v19, 16  ;;  %v1745_v27 = vor.u32 %v1744_v62, %v1740_v21 }
 0x159   : > { %v1770_v10 = vrot.slane %v1769_v52, 4  ;;  %v1930_v3 = vrot.slane %v4852_v45, 5 }
 0x15a   : > { %v1302_v31 = vpop.permute.xlu2 %1301  ;;  %v1727_v2 = vsel %vm4292_vm2, %v1722_v29, %v1726_v39  ;;  %v1774_v34 = vrot.slane %v1772_v49, 5  ;;  %v1746_v43 = vrot.slane %v1745_v27, 4  ;;  %v1940_v39 = vrot.slane %v5096_v28, 5 }
 0x15b   : > { %1379 = vst.msk [vmem:[#allocation2 + $0x4c] sm:$0xf] %vm1359_vm9, %v1302_v31  ;;  %v1925_v31 = vrot.slane %v1923_v23, 4  ;;  %v1944_v49 = vrot.slane %v4902_v51, 5  ;;  %v1932_v62 = vrot.slane %v1930_v3, 4  ;;  %v1951_v51 = vrot.slane %v4887_v38, 5 }
 0x15c   : > { %1826 = vrot.lane.b32.xlu1 %v1703_v17, %s4199_s29  ;;  %v5339_v17 = vld [vmem:[%s4258_s25 + $0xbc] sm:$0x1]  ;;  %v1775_v59 = vsel %vm4292_vm2, %v1770_v10, %v1774_v34  ;;  %v1933_v10 = vrot.slane %v5044_v9, 5  ;;  %v3834_v34 = vrot.slane %v4890_v46, 9  ;;  %v1947_v27 = vrot.slane %v5069_v26, 5 }
 0x15d   : > { %1824 = vrot.lane.b32.xlu0 %v6362_v53, %s4199_s29  ;;  %v1748_v4 = vshll.u32 %v5339_v17, 16  ;;  %v3831_v53 = vrot.slane %v4855_v14, 9  ;;  %v1937_v14 = vrot.slane %v4872_v36, 5  ;;  %v1958_v46 = vrot.slane %v4908_v55, 5 }
 0x15e   : > { %v1294_v42 = vpop.permute.xlu1 %1293  ;;  %v1934_v9 = vsel %vm4610_vm6, %v1932_v62, %v1933_v10  ;;  %v1952_v26 = vsel %vm4610_vm6, %v3834_v34, %v1951_v51  ;;  %v1982_v10 = vrot.slane %v5230_v54, 5 }
 0x15f   : > { %1375 = vst.msk [vmem:[#allocation2 + $0x3c] sm:$0xf] %vm1359_vm9, %v1294_v42  ;;  %v1292_v60 = vpop.permute.xlu0 %1291  ;;  %v1750_v41 = vrot.slane %v1748_v4, 5  ;;  %v1931_v45 = vsel %vm4610_vm6, %v3831_v53, %v1930_v3  ;;  %v1939_v29 = vrot.slane %v1937_v14, 4  ;;  %v1938_v28 = vsel %vm4610_vm6, %v3832_v20, %v1937_v14  ;;  %v6363_v14 = vld [vmem:[#allocation10_spill] sm:$0xff] }
 0x160   : > { %1374 = vst.msk [vmem:[#allocation2 + $0x38] sm:$0xf] %vm1359_vm9, %v1292_v60  ;;  %1822 = vrot.lane.b32.xlu2 %v1679_v12, %s4199_s29  ;;  %v3835_v3 = vrot.slane %v4920_v8, 9 }
 0x161   : > { %v1751_v24 = vsel %vm4292_vm2, %v1746_v43, %v1750_v41  ;;  %v1941_v52 = vsel %vm4610_vm6, %v1939_v29, %v1940_v39  ;;  %v1960_v43 = vrot.slane %v1958_v46, 4  ;;  %v1961_v41 = vrot.slane %v5160_v63, 5 }
 0x162   : > { %v1308_v47 = vpop.permute.xlu2 %1307  ;;  %v1959_v8 = vsel %vm4610_vm6, %v3835_v3, %v1958_v46 }
 0x163   : > { %1382 = vst.msk [vmem:[#allocation2 + $0x58] sm:$0xf] %vm1359_vm9, %v1308_v47  ;;  %v1962_v63 = vsel %vm4610_vm6, %v1960_v43, %v1961_v41  ;;  %v1989_v41 = vrot.slane %v5203_v50, 5  ;;  %v4166_v50 = vld [vmem:[%s4258_s25 + $0x78] sm:$0xf] }
 0x164   : > { %1832 = vrot.lane.b32.xlu1 %v1741_v7, %s4199_s29 }
 0x165   : > { %1830 = vrot.lane.b32.xlu0 %v1727_v2, %s4199_s29  ;;  %v3840_v2 = vrot.slane %v4962_v6, 9 }
 0x166   : > { %v1300_v37 = vpop.permute.xlu1 %1299 }
 0x167   : > { %1378 = vst.msk [vmem:[#allocation2 + $0x48] sm:$0xf] %vm1359_vm9, %v1300_v37  ;;  %v1298_v44 = vpop.permute.xlu0 %1297  ;;  %v5403_v38 = vsel %vm4610_vm6, %v3840_v2, %v1993_v30 }
 0x168   : > { %1377 = vst.msk [vmem:[#allocation2 + $0x44] sm:$0xf] %vm1359_vm9, %v1298_v44  ;;  %1828 = vrot.lane.b32.xlu2 %v1717_v61, %s4199_s29  ;;  %v1926_v61 = vrot.slane %v5011_v15, 5  ;;  %v4157_v15 = vld [vmem:[%s4258_s25 + $0xc] sm:$0xf]  ;;  %v1946_v44 = vrot.slane %v1944_v49, 4 }
 0x16a   : > { %v1314_v21 = vpop.permute.xlu2 %1313  ;;  %v1927_v16 = vsel %vm4610_vm6, %v1925_v31, %v1926_v61  ;;  %v1948_v4 = vsel %vm4610_vm6, %v1946_v44, %v1947_v27  ;;  %v1965_v31 = vrot.slane %v4938_v35, 5  ;;  %v2014_v61 = vrot.slane %v4997_v18, 5  ;;  %v4160_v35 = vld [vmem:[%s4258_s25 + $0x64] sm:$0xf] }
 0x16b   : > { %1385 = vst.msk [vmem:[#allocation2 + $0x64] sm:$0xf] %vm1359_vm9, %v1314_v21 }
 0x16c   : > { %1838 = vrot.lane.b32.xlu1 %v1775_v59, %s4199_s29  ;;  %v4158_v59 = vld [vmem:[%s4258_s25 + $0x30] sm:$0xf] }
 0x16d   : > { %1836 = vrot.lane.b32.xlu0 %v1765_v32, %s4199_s29  ;;  %v3830_v32 = vrot.slane %v4157_v15, 9 }
 0x16e   : > { %v1306_v5 = vpop.permute.xlu1 %1305 }
 0x16f   : > { %1381 = vst.msk [vmem:[#allocation2 + $0x54] sm:$0xf] %vm1359_vm9, %v1306_v5  ;;  %v1304_v42 = vpop.permute.xlu0 %1303  ;;  %v1924_v7 = vsel %vm4610_vm6, %v3830_v32, %v1923_v23  ;;  %v3833_v23 = vrot.slane %v4158_v59, 9  ;;  %v1972_v32 = vrot.slane %v4160_v35, 5 }
 0x170   : > { %1380 = vst.msk [vmem:[#allocation2 + $0x50] sm:$0xf] %vm1359_vm9, %v1304_v42  ;;  %1834 = vrot.lane.b32.xlu2 %v1751_v24, %s4199_s29  ;;  %v3843_v42 = vrot.slane %v5002_v58, 9  ;;  %v1953_v24 = vrot.slane %v1951_v51, 4 }
 0x171   : > { %v1945_v5 = vsel %vm4610_vm6, %v3833_v23, %v1944_v49 }
 0x172   : > { %v1320_v60 = vpop.permute.xlu2 %1319 }
 0x173   : > { %1388 = vst.msk [vmem:[#allocation2 + $0x70] sm:$0xf] %vm1359_vm9, %v1320_v60  ;;  %v1967_v60 = vrot.slane %v1965_v31, 4 }
 0x174   : > { %2037 = vrot.lane.b32.xlu1 %v1931_v45, %s4200_s30  ;;  %v1954_v45 = vrot.slane %v6363_v14, 5 }
 0x175   : > { %2035 = vrot.lane.b32.xlu0 %v1927_v16, %s4200_s30  ;;  %v4159_v16 = vld [vmem:[%s4258_s25 + $0x60] sm:$0xf] }
 0x176   : > { %v1312_v36 = vpop.permute.xlu1 %1311  ;;  %v3837_v15 = vrot.slane %v4159_v16, 9  ;;  %v1955_v20 = vsel %vm4610_vm6, %v1953_v24, %v1954_v45  ;;  %v4168_v16 = vld [vmem:[%s4258_s25 + $0x9c] sm:$0xf] }
 0x177   : > { %1384 = vst.msk [vmem:[#allocation2 + $0x60] sm:$0xf] %vm1359_vm9, %v1312_v36  ;;  %v1310_v12 = vpop.permute.xlu0 %1309  ;;  %v1968_v36 = vrot.slane %v5131_v1, 5 }
 0x178   : > { %1383 = vst.msk [vmem:[#allocation2 + $0x5c] sm:$0xf] %vm1359_vm9, %v1310_v12  ;;  %2033 = vrot.lane.b32.xlu2 %v1924_v7, %s4200_s30  ;;  %v5444_v12 = vsel %vm4610_vm6, %v3843_v42, %v2014_v61  ;;  %v4161_v7 = vld [vmem:[%s4258_s25 + $0x70] sm:$0xf]  ;;  %v1973_v1 = vsel %vm4610_vm6, %v3837_v15, %v1972_v32  ;;  %v3842_v15 = vrot.slane %v4168_v16, 9 }
 0x179   : > { %v1969_v49 = vsel %vm4610_vm6, %v1967_v60, %v1968_v36  ;;  %v4167_v42 = vld [vmem:[%s4258_s25 + $0x90] sm:$0xf]  ;;  %v1996_v60 = vrot.slane %v5240_v11, 5  ;;  %v4170_v11 = vld [vmem:[%s4258_s25 + $0xb8] sm:$0xf] }
 0x17a   : > { %v1326_v47 = vpop.permute.xlu2 %1325  ;;  %v3841_v24 = vrot.slane %v4167_v42, 9 }
 0x17b   : > { %1391 = vst.msk [vmem:[#allocation2 + $0x7c] sm:$0xf] %vm1359_vm9, %v1326_v47  ;;  %v4163_v47 = vld [vmem:[%s4258_s25 + $0x6c] sm:$0xf] }
 0x17c   : > { %2043 = vrot.lane.b32.xlu1 %v1941_v52, %s4200_s30  ;;  %v1979_v52 = vrot.slane %v4161_v7, 5 }
 0x17d   : > { %2041 = vrot.lane.b32.xlu0 %v1938_v28, %s4200_s30  ;;  %v4162_v28 = vld [vmem:[%s4258_s25 + $0x54] sm:$0xf] }
 0x17e   : > { %v1318_v37 = vpop.permute.xlu1 %1317  ;;  %v3836_v2 = vrot.slane %v4162_v28, 9  ;;  %v1981_v62 = vrot.slane %v1979_v52, 4  ;;  %v2024_v28 = vrot.slane %v5339_v17, 5 }
 0x17f   : > { %1387 = vst.msk [vmem:[#allocation2 + $0x6c] sm:$0xf] %vm1359_vm9, %v1318_v37  ;;  %v1316_v6 = vpop.permute.xlu0 %1315  ;;  %v3838_v37 = vrot.slane %v4163_v47, 9  ;;  %v5527_v47 = vld [vmem:[%s4258_s25 + $0x18] sm:$0xf] }
 0x180   : > { %1386 = vst.msk [vmem:[#allocation2 + $0x68] sm:$0xf] %vm1359_vm9, %v1316_v6  ;;  %2039 = vrot.lane.b32.xlu2 %v1934_v9, %s4200_s30  ;;  %v1966_v27 = vsel %vm4610_vm6, %v3836_v2, %v1965_v31  ;;  %v1983_v6 = vsel %vm4610_vm6, %v1981_v62, %v1982_v10  ;;  %v4164_v9 = vld [vmem:[%s4258_s25 + $0x7c] sm:$0xf]  ;;  %v2003_v31 = vrot.slane %v5296_v33, 5  ;;  %v3844_v62 = vrot.slane %v5050_v57, 9 }
 0x181   : > { %v1986_v46 = vrot.slane %v4164_v9, 5  ;;  %v1980_v54 = vsel %vm4610_vm6, %v3838_v37, %v1979_v52  ;;  %v4169_v33 = vld [vmem:[%s4258_s25 + $0xa0] sm:$0xf]  ;;  %v2010_v52 = vrot.slane %v5272_v56, 5  ;;  %v2376_v9 = vshrl.u32 %v5527_v47, 16 }
 0x182   : > { %v1781_v53 = vpop.permute.xlu2 %1780  ;;  %v4171_v37 = vld [vmem:[%s4258_s25 + $0xc0] sm:$0xf] }
 0x183   : > { %1875 = vst.msk [vmem:[#allocation2 + $0x8] sm:$0xf] %vm1872_vm10, %v1781_v53  ;;  %v1988_v43 = vrot.slane %v1986_v46, 4 }
 0x184   : > { %2049 = vrot.lane.b32.xlu1 %v1952_v26, %s4200_s30  ;;  %v1974_v26 = vrot.slane %v1972_v32, 4  ;;  %v2007_v32 = vrot.slane %v4169_v33, 5 }
 0x185   : > { %2047 = vrot.lane.b32.xlu0 %v1948_v4, %s4200_s30  ;;  %v1975_v4 = vrot.slane %v5170_v48, 5  ;;  %v4165_v48 = vld [vmem:[%s4258_s25 + $0x94] sm:$0xf] }
 0x186   : > { %v1324_v55 = vpop.permute.xlu1 %1323  ;;  %v2000_v3 = vrot.slane %v4165_v48, 5  ;;  %v2008_v36 = vsel %vm4610_vm6, %v3842_v15, %v2007_v32  ;;  %v2009_v7 = vrot.slane %v2007_v32, 4  ;;  %v5573_v32 = vld [vmem:[%s4258_s25 + $0x48] sm:$0xf] }
 0x187   : > { %1390 = vst.msk [vmem:[#allocation2 + $0x78] sm:$0xf] %vm1359_vm9, %v1324_v55  ;;  %v1322_v21 = vpop.permute.xlu0 %1321  ;;  %v1976_v55 = vsel %vm4610_vm6, %v1974_v26, %v1975_v4 }
 0x188   : > { %1389 = vst.msk [vmem:[#allocation2 + $0x74] sm:$0xf] %vm1359_vm9, %v1322_v21  ;;  %2045 = vrot.lane.b32.xlu2 %v1945_v5, %s4200_s30  ;;  %v1990_v21 = vsel %vm4610_vm6, %v1988_v43, %v1989_v41  ;;  %v3839_v5 = vrot.slane %v4166_v50, 9 }
 0x18a   : > { %v1787_v29 = vpop.permute.xlu2 %1786 }
 0x18b   : > { %1878 = vst.msk [vmem:[#allocation2 + $0x14] sm:$0xf] %vm1872_vm10, %v1787_v29  ;;  %v2001_v29 = vsel %vm4610_vm6, %v3841_v24, %v2000_v3 }
 0x18c   : > { %2055 = vrot.lane.b32.xlu1 %v1962_v63, %s4200_s30  ;;  %v2002_v63 = vrot.slane %v2000_v3, 4  ;;  %v3848_v3 = vld [vmem:[%s4258_s25 + $0x20] sm:$0x1] }
 0x18d   : > { %2053 = vrot.lane.b32.xlu0 %v1959_v8, %s4200_s30  ;;  %v2909_v33 = vrot.slane %v3848_v3, 5 }
 0x18e   : > { %v1779_v39 = vpop.permute.xlu1 %1778  ;;  %v2004_v35 = vsel %vm4610_vm6, %v2002_v63, %v2003_v31 }
 0x18f   : > { %1874 = vst.msk [vmem:[#allocation2 + $0x4] sm:$0xf] %vm1872_vm10, %v1779_v39  ;;  %v1777_v58 = vpop.permute.xlu0 %1776  ;;  %v1995_v39 = vrot.slane %v1993_v30, 4  ;;  %v2021_v30 = vrot.slane %v4170_v11, 5 }
 0x190   : > { %1873 = vst.msk [vmem:[#allocation2] sm:$0xf] %vm1872_vm10, %v1777_v58  ;;  %2051 = vrot.lane.b32.xlu2 %v1955_v20, %s4200_s30 }
 0x191   : > { %v1997_v0 = vsel %vm4610_vm6, %v1995_v39, %v1996_v60  ;;  %v2023_v56 = vrot.slane %v2021_v30, 4  ;;  %v5578_v39 = vld [vmem:[%s4258_s25 + $0x28] sm:$0xf]  ;;  %v5582_v60 = vld [vmem:[%s4258_s25 + $0x24] sm:$0xf] }
 0x192   : > { %v1793_v34 = vpop.permute.xlu2 %1792 }
 0x193   : > { %1881 = vst.msk [vmem:[#allocation2 + $0x20] sm:$0xf] %vm1872_vm10, %v1793_v34  ;;  %v5523_v34 = vld [vmem:[%s4258_s25 + $0x1c] sm:$0xf]  ;;  %v2025_v17 = vsel %vm4610_vm6, %v2023_v56, %v2024_v28 }
 0x194   : > { %2061 = vrot.lane.b32.xlu1 %v1973_v1, %s4200_s30  ;;  %v2385_v57 = vshll.u32 %v5523_v34, 16  ;;  %v2906_v16 = vrot.slane %v5523_v34, 5 }
 0x195   : > { %2059 = vrot.lane.b32.xlu0 %v1969_v49, %s4200_s30  ;;  %v2011_v49 = vsel %vm4610_vm6, %v2009_v7, %v2010_v52  ;;  %v2409_v7 = vshll.u32 %v5578_v39, 16  ;;  %v2413_v52 = vshrl.u32 %v5578_v39, 16 }
 0x196   : > { %v1785_v51 = vpop.permute.xlu1 %1784 }
 0x197   : > { %1877 = vst.msk [vmem:[#allocation2 + $0x10] sm:$0xf] %vm1872_vm10, %v1785_v51  ;;  %v1783_v44 = vpop.permute.xlu0 %1782  ;;  %v2411_v56 = vrot.slane %v2409_v7, 5  ;;  %v2415_v28 = vrot.slane %v2413_v52, 4 }
 0x198   : > { %1876 = vst.msk [vmem:[#allocation2 + $0xc] sm:$0xf] %vm1872_vm10, %v1783_v44  ;;  %2057 = vrot.lane.b32.xlu2 %v1966_v27, %s4200_s30  ;;  %v2028_v44 = vrot.slane %v5078_v22, 5  ;;  %v2389_v27 = vshrl.u32 %v5523_v34, 16  ;;  %v2016_v22 = vrot.slane %v2014_v61, 4 }
 0x19a   : > { %v1799_v59 = vpop.permute.xlu2 %1798  ;;  %v2030_v4 = vrot.slane %v2028_v44, 4  ;;  %v2391_v43 = vrot.slane %v2389_v27, 4 }
 0x19b   : > { %1884 = vst.msk [vmem:[#allocation2 + $0x2c] sm:$0xf] %vm1872_vm10, %v1799_v59  ;;  %v2031_v59 = vrot.slane %v5321_v19, 5 }
 0x19c   : > { %2067 = vrot.lane.b32.xlu1 %v1983_v6, %s4200_s30  ;;  %v2022_v6 = vsel %vm4610_vm6, %v3844_v62, %v2021_v30  ;;  %v3851_v62 = vld [vmem:[%s4258_s25 + $0x2c] sm:$0x1] }
 0x19d   : > { %2065 = vrot.lane.b32.xlu0 %v1980_v54, %s4200_s30  ;;  %v2017_v54 = vrot.slane %v5301_v40, 5  ;;  %v2032_v19 = vsel %vm4610_vm6, %v2030_v4, %v2031_v59 }
 0x19e   : > { %v1791_v23 = vpop.permute.xlu1 %1790 }
 0x19f   : > { %1880 = vst.msk [vmem:[#allocation2 + $0x1c] sm:$0xf] %vm1872_vm10, %v1791_v23  ;;  %v1789_v53 = vpop.permute.xlu0 %1788  ;;  %v2387_v23 = vrot.slane %v2385_v57, 5  ;;  %v2018_v40 = vsel %vm4610_vm6, %v2016_v22, %v2017_v54 }
 0x1a0   : > { %1879 = vst.msk [vmem:[#allocation2 + $0x18] sm:$0xf] %vm1872_vm10, %v1789_v53  ;;  %2063 = vrot.lane.b32.xlu2 %v1976_v55, %s4200_s30  ;;  %v2378_v55 = vrot.slane %v2376_v9, 4 }
 0x1a1   : > { %v2392_v61 = vor.u32 %v2391_v43, %v2387_v23 }
 0x1a2   : > { %v1805_v8 = vpop.permute.xlu2 %1804 }
 0x1a3   : > { %1887 = vst.msk [vmem:[#allocation2 + $0x38] sm:$0xf] %vm1872_vm10, %v1805_v8 }
 0x1a4   : > { %2073 = vrot.lane.b32.xlu1 %v5403_v38, %s4200_s30  ;;  %v1987_v38 = vsel %vm4610_vm6, %v3839_v5, %v1986_v46  ;;  %v2379_v46 = vshll.u32 %v5527_v47, 16  ;;  %v2393_v5 = vrot.slane %v2392_v61, 4  ;;  %v3895_v61 = vrot.slane %v5582_v60, 9 }
 0x1a5   : > { %2071 = vrot.lane.b32.xlu0 %v1990_v21, %s4200_s30  ;;  %v2395_v21 = vshll.u32 %v3848_v3, 16 }
 0x1a6   : > { %v1797_v14 = vpop.permute.xlu1 %1796  ;;  %v2381_v48 = vrot.slane %v2379_v46, 5 }
 0x1a7   : > { %1883 = vst.msk [vmem:[#allocation2 + $0x28] sm:$0xf] %vm1872_vm10, %v1797_v14  ;;  %v1795_v45 = vpop.permute.xlu0 %1794  ;;  %v2397_v63 = vrot.slane %v2395_v21, 5 }
 0x1a8   : > { %1882 = vst.msk [vmem:[#allocation2 + $0x24] sm:$0xf] %vm1872_vm10, %v1795_v45  ;;  %2069 = vrot.lane.b32.xlu2 %v1987_v38, %s4200_s30  ;;  %v2382_v50 = vor.u32 %v2381_v48, %v2378_v55 }
 0x1a9   : > { %v2398_v14 = vsel %vm4292_vm2, %v2393_v5, %v2397_v63  ;;  %v5633_v5 = vld [vmem:[%s4258_s25 + $0x78] sm:$0xf]  ;;  %v3860_v63 = vld [vmem:[%s4258_s25 + $0x50] sm:$0x1] }
 0x1aa   : > { %v1811_v58 = vpop.permute.xlu2 %1810  ;;  %v2383_v42 = vrot.slane %v2382_v50, 4 }
 0x1ab   : > { %1890 = vst.msk [vmem:[#allocation2 + $0x44] sm:$0xf] %vm1872_vm10, %v1811_v58  ;;  %v2475_v58 = vshll.u32 %v5573_v32, 16 }
 0x1ac   : > { %2079 = vrot.lane.b32.xlu1 %v2004_v35, %s4200_s30  ;;  %v2388_v45 = vsel %vm4292_vm2, %v2383_v42, %v2387_v23  ;;  %v2908_v35 = vrot.slane %v2906_v16, 4  ;;  %v2491_v42 = vshll.u32 %v3860_v63, 16 }
 0x1ad   : > { %2077 = vrot.lane.b32.xlu0 %v2001_v29, %s4200_s30  ;;  %v2477_v11 = vrot.slane %v2475_v58, 5 }
 0x1ae   : > { %v1803_v20 = vpop.permute.xlu1 %1802 }
 0x1af   : > { %1886 = vst.msk [vmem:[#allocation2 + $0x34] sm:$0xf] %vm1872_vm10, %v1803_v20  ;;  %v1801_v1 = vpop.permute.xlu0 %1800  ;;  %v2910_v20 = vsel %vm4610_vm6, %v2908_v35, %v2909_v33  ;;  %v2571_v35 = vshll.u32 %v5633_v5, 16 }
 0x1b0   : > { %1885 = vst.msk [vmem:[#allocation2 + $0x30] sm:$0xf] %vm1872_vm10, %v1801_v1  ;;  %2075 = vrot.lane.b32.xlu2 %v1997_v0, %s4200_s30  ;;  %v3894_v1 = vrot.slane %v5527_v47, 9 }
 0x1b2   : > { %v1817_v2 = vpop.permute.xlu2 %1816 }
 0x1b3   : > { %1893 = vst.msk [vmem:[#allocation2 + $0x50] sm:$0xf] %vm1872_vm10, %v1817_v2 }
 0x1b4   : > { %2085 = vrot.lane.b32.xlu1 %v5444_v12, %s4200_s30  ;;  %v3845_v12 = vrot.slane %v4171_v37, 9 }
 0x1b5   : > { %2083 = vrot.lane.b32.xlu0 %v2011_v49, %s4200_s30 }
 0x1b6   : > { %v1809_v10 = vpop.permute.xlu1 %1808  ;;  %v2029_v26 = vsel %vm4610_vm6, %v3845_v12, %v2028_v44  ;;  %v2416_v44 = vor.u32 %v2415_v28, %v2411_v56 }
 0x1b7   : > { %1889 = vst.msk [vmem:[#allocation2 + $0x40] sm:$0xf] %vm1872_vm10, %v1809_v10  ;;  %v1807_v51 = vpop.permute.xlu0 %1806  ;;  %v2400_v10 = vshrl.u32 %v5582_v60, 16 }
 0x1b8   : > { %1888 = vst.msk [vmem:[#allocation2 + $0x3c] sm:$0xf] %vm1872_vm10, %v1807_v51  ;;  %2081 = vrot.lane.b32.xlu2 %v2008_v36, %s4200_s30  ;;  %v2472_v36 = vshrl.u32 %v5573_v32, 16  ;;  %v5603_v51 = vld [vmem:[%s4258_s25 + $0x4c] sm:$0xf]  ;;  %v2417_v54 = vrot.slane %v2416_v44, 4 }
 0x1b9   : > { %v2481_v37 = vshll.u32 %v5603_v51, 16  ;;  %v2402_v57 = vrot.slane %v2400_v10, 4  ;;  %v2485_v59 = vshrl.u32 %v5603_v51, 16 }
 0x1ba   : > { %v1823_v41 = vpop.permute.xlu2 %1822  ;;  %v2474_v0 = vrot.slane %v2472_v36, 4 }
 0x1bb   : > { %1896 = vst.msk [vmem:[#allocation2 + $0x5c] sm:$0xf] %vm1872_vm10, %v1823_v41  ;;  %v2483_v9 = vrot.slane %v2481_v37, 5  ;;  %v2913_v41 = vrot.slane %v5578_v39, 5  ;;  %v2487_v55 = vrot.slane %v2485_v59, 4 }
 0x1bc   : > { %2091 = vrot.lane.b32.xlu1 %v2025_v17, %s4200_s30  ;;  %v2478_v12 = vor.u32 %v2477_v11, %v2474_v0  ;;  %v2419_v17 = vshll.u32 %v3851_v62, 16  ;;  %v3872_v0 = vld [vmem:[%s4258_s25 + $0x80] sm:$0x1] }
 0x1bd   : > { %2089 = vrot.lane.b32.xlu0 %v2022_v6, %s4200_s30  ;;  %v2915_v3 = vrot.slane %v2913_v41, 4 }
 0x1be   : > { %v1815_v53 = vpop.permute.xlu1 %1814  ;;  %v2479_v6 = vrot.slane %v2478_v12, 4 }
 0x1bf   : > { %1892 = vst.msk [vmem:[#allocation2 + $0x4c] sm:$0xf] %vm1872_vm10, %v1815_v53  ;;  %v1813_v18 = vpop.permute.xlu0 %1812 }
 0x1c0   : > { %1891 = vst.msk [vmem:[#allocation2 + $0x48] sm:$0xf] %vm1872_vm10, %v1813_v18  ;;  %2087 = vrot.lane.b32.xlu2 %v2018_v40, %s4200_s30  ;;  %v2484_v43 = vsel %vm4292_vm2, %v2479_v6, %v2483_v9  ;;  %v2916_v18 = vrot.slane %v3851_v62, 5  ;;  %v3898_v62 = vrot.slane %v5573_v32, 9 }
 0x1c2   : > { %v1829_v31 = vpop.permute.xlu2 %1828 }
 0x1c3   : > { %1899 = vst.msk [vmem:[#allocation2 + $0x68] sm:$0xf] %vm1872_vm10, %v1829_v31 }
 0x1c4   : > { %2246 = vrot.lane.b32.xlu1 %v5527_v47, %s4201_s6  ;;  %v2907_v47 = vsel %vm4610_vm6, %v3894_v1, %v2906_v16  ;;  %v2573_v1 = vrot.slane %v2571_v35, 5 }
 0x1c5   : > { %2095 = vrot.lane.b32.xlu0 %v2032_v19, %s4200_s30  ;;  %v5629_v19 = vld [vmem:[%s4258_s25 + $0x7c] sm:$0xf] }
 0x1c6   : > { %v1821_v8 = vpop.permute.xlu1 %1820  ;;  %v2581_v16 = vshrl.u32 %v5629_v19, 16 }
 0x1c7   : > { %1895 = vst.msk [vmem:[#allocation2 + $0x58] sm:$0xf] %vm1872_vm10, %v1821_v8  ;;  %v1819_v24 = vpop.permute.xlu0 %1818  ;;  %v2488_v8 = vor.u32 %v2487_v55, %v2483_v9  ;;  %v3902_v55 = vrot.slane %v5633_v5, 9 }
 0x1c8   : > { %1894 = vst.msk [vmem:[#allocation2 + $0x54] sm:$0xf] %vm1872_vm10, %v1819_v24  ;;  %2093 = vrot.lane.b32.xlu2 %v2029_v26, %s4200_s30  ;;  %v2421_v26 = vrot.slane %v2419_v17, 5  ;;  %v2934_v24 = vrot.slane %v5603_v51, 5  ;;  %v2583_v58 = vrot.slane %v2581_v16, 4 }
 0x1c9   : > { %v2489_v33 = vrot.slane %v2488_v8, 4 }
 0x1ca   : > { %v1835_v15 = vpop.permute.xlu2 %1834  ;;  %v2422_v53 = vsel %vm4292_vm2, %v2417_v54, %v2421_v26  ;;  %v5683_v26 = vld [vmem:[%s4258_s25 + $0x34] sm:$0xf] }
 0x1cb   : > { %1902 = vst.msk [vmem:[#allocation2 + $0x74] sm:$0xf] %vm1872_vm10, %v1835_v15  ;;  %v2914_v15 = vsel %vm4610_vm6, %v3895_v61, %v2913_v41  ;;  %v2433_v41 = vshll.u32 %v5683_v26, 16 }
 0x1cc   : > { %2761 = vrot.lane.b32.xlu1 %v2398_v14, %s4202_s7  ;;  %v2917_v14 = vsel %vm4610_vm6, %v2915_v3, %v2916_v18 }
 0x1cd   : > { %2759 = vrot.lane.b32.xlu0 %v2388_v45, %s4202_s7  ;;  %v2577_v45 = vshll.u32 %v5629_v19, 16  ;;  %v2435_v61 = vrot.slane %v2433_v41, 5 }
 0x1ce   : > { %v1827_v38 = vpop.permute.xlu1 %1826 }
 0x1cf   : > { %1898 = vst.msk [vmem:[#allocation2 + $0x64] sm:$0xf] %vm1872_vm10, %v1827_v38  ;;  %v1825_v29 = vpop.permute.xlu0 %1824  ;;  %v2568_v38 = vshrl.u32 %v5633_v5, 16  ;;  %v2579_v36 = vrot.slane %v2577_v45, 5 }
 0x1d0   : > { %1897 = vst.msk [vmem:[#allocation2 + $0x60] sm:$0xf] %vm1872_vm10, %v1825_v29  ;;  %2248 = vrot.lane.b32.xlu2 %v5523_v34, %s4201_s6  ;;  %v2403_v34 = vshll.u32 %v5582_v60, 16  ;;  %v2493_v29 = vrot.slane %v2491_v42, 5 }
 0x1d1   : > { %v2570_v52 = vrot.slane %v2568_v38, 4 }
 0x1d2   : > { %v2034_v30 = vpop.permute.xlu2 %2033  ;;  %v2405_v27 = vrot.slane %v2403_v34, 5 }
 0x1d3   : > { %2130 = vst.msk [vmem:[#allocation2] sm:$0xf] %vm2129_vm11, %v2034_v30  ;;  %v2494_v30 = vsel %vm4292_vm2, %v2489_v33, %v2493_v29 }
 0x1d4   : > { %2250 = vrot.lane.b32.xlu1 %v5582_v60, %s4201_s6  ;;  %v2406_v23 = vor.u32 %v2405_v27, %v2402_v57  ;;  %v2937_v60 = vrot.slane %v3860_v63, 5  ;;  %v2962_v57 = vrot.slane %v5629_v19, 5 }
 0x1d5   : > { %3018 = vrot.lane.b32.xlu0 %v2910_v20, %s4203_s8 }
 0x1d6   : > { %v1833_v49 = vpop.permute.xlu1 %1832  ;;  %v2407_v48 = vrot.slane %v2406_v23, 4  ;;  %v2964_v9 = vrot.slane %v2962_v57, 4  ;;  %v2963_v8 = vsel %vm4610_vm6, %v3902_v55, %v2962_v57 }
 0x1d7   : > { %1901 = vst.msk [vmem:[#allocation2 + $0x70] sm:$0xf] %vm1872_vm10, %v1833_v49  ;;  %v1831_v2 = vpop.permute.xlu0 %1830  ;;  %v2584_v49 = vor.u32 %v2583_v58, %v2579_v36 }
 0x1d8   : > { %1900 = vst.msk [vmem:[#allocation2 + $0x6c] sm:$0xf] %vm1872_vm10, %v1831_v2  ;;  %3016 = vrot.lane.b32.xlu2 %v2907_v47, %s4203_s8  ;;  %v2412_v31 = vsel %vm4292_vm2, %v2407_v48, %v2411_v56  ;;  %v2587_v56 = vshll.u32 %v3872_v0, 16  ;;  %v2574_v2 = vor.u32 %v2573_v1, %v2570_v52  ;;  %v2920_v52 = vrot.slane %v5683_v26, 5 }
 0x1d9   : > { %v2585_v10 = vrot.slane %v2584_v49, 4 }
 0x1da   : > { %v2040_v46 = vpop.permute.xlu2 %2039  ;;  %v2589_v34 = vrot.slane %v2587_v56, 5  ;;  %v2575_v37 = vrot.slane %v2574_v2, 4 }
 0x1db   : > { %2133 = vst.msk [vmem:[#allocation2 + $0xc] sm:$0xf] %vm2129_vm11, %v2040_v46  ;;  %v2965_v46 = vrot.slane %v3872_v0, 5 }
 0x1dc   : > { %2264 = vrot.lane.b32.xlu1 %v5603_v51, %s4201_s6  ;;  %v2590_v44 = vsel %vm4292_vm2, %v2585_v10, %v2589_v34  ;;  %v2580_v17 = vsel %vm4292_vm2, %v2575_v37, %v2579_v36  ;;  %v3863_v10 = vld [vmem:[%s4258_s25 + $0x5c] sm:$0x1] }
 0x1dd   : > { %2262 = vrot.lane.b32.xlu0 %v5573_v32, %s4201_s6  ;;  %v2935_v32 = vsel %vm4610_vm6, %v3898_v62, %v2934_v24 }
 0x1de   : > { %v1839_v22 = vpop.permute.xlu1 %1838 }
 0x1df   : > { %1904 = vst.msk [vmem:[#allocation2 + $0x7c] sm:$0xf] %vm1872_vm10, %v1839_v22  ;;  %v1837_v4 = vpop.permute.xlu0 %1836  ;;  %v5678_v22 = vld [vmem:[%s4258_s25 + $0x54] sm:$0xf] }
 0x1e0   : > { %1903 = vst.msk [vmem:[#allocation2 + $0x78] sm:$0xf] %vm1872_vm10, %v1837_v4  ;;  %2252 = vrot.lane.b32.xlu2 %v5578_v39, %s4201_s6  ;;  %v2936_v39 = vrot.slane %v2934_v24, 4  ;;  %v5687_v4 = vld [vmem:[%s4258_s25 + $0x30] sm:$0xf]  ;;  %v2496_v59 = vshrl.u32 %v5678_v22, 16 }
 0x1e1   : > { %v2499_v23 = vshll.u32 %v5678_v22, 16  ;;  %v2427_v63 = vshll.u32 %v5687_v4, 16 }
 0x1e2   : > { %v2046_v40 = vpop.permute.xlu2 %2045  ;;  %v2938_v28 = vsel %vm4610_vm6, %v2936_v39, %v2937_v60  ;;  %v2498_v48 = vrot.slane %v2496_v59, 4  ;;  %v3181_v59 = vld [vmem:[%s6312_s1 + $0x10] sm:$0x3] }
 0x1e3   : > { %2136 = vst.msk [vmem:[#allocation2 + $0x18] sm:$0xf] %vm2129_vm11, %v2046_v40  ;;  %v2501_v3 = vrot.slane %v2499_v23, 5  ;;  %v5761_v23 = vld [vmem:[%s4258_s25 + $0x84] sm:$0xf] }
 0x1e4   : > { %2775 = vrot.lane.b32.xlu1 %v2484_v43, %s4202_s7  ;;  %v2966_v43 = vsel %vm4610_vm6, %v2964_v9, %v2965_v46  ;;  %v2944_v9 = vrot.slane %v3863_v10, 5  ;;  %v5747_v46 = vld [vmem:[%s4258_s25 + $0xa8] sm:$0xf] }
 0x1e5   : > { %2765 = vrot.lane.b32.xlu0 %v2422_v53, %s4202_s7  ;;  %v2437_v53 = vshrl.u32 %v5683_v26, 16  ;;  %v2502_v24 = vor.u32 %v2501_v3, %v2498_v48  ;;  %v2667_v41 = vshll.u32 %v5747_v46, 16 }
 0x1e6   : > { %v2038_v21 = vpop.permute.xlu1 %2037 }
 0x1e7   : > { %2132 = vst.msk [vmem:[#allocation2 + $0x8] sm:$0xf] %vm2129_vm11, %v2038_v21  ;;  %v2036_v50 = vpop.permute.xlu0 %2035  ;;  %v2439_v21 = vrot.slane %v2437_v53, 4  ;;  %v2503_v38 = vrot.slane %v2502_v24, 4  ;;  %v3275_v53 = vunpack.c.l.b16 %v3181_v59  ;;  %v2595_v24 = vshll.u32 %v5761_v23, 16 }
 0x1e8   : > { %2131 = vst.msk [vmem:[#allocation2 + $0x4] sm:$0xf] %vm2129_vm11, %v2036_v50  ;;  %2763 = vrot.lane.b32.xlu2 %v2412_v31, %s4202_s7  ;;  %v5708_v31 = vld [vmem:[%s4258_s25 + $0x58] sm:$0xf] }
 0x1e9   : > { %v2505_v42 = vshll.u32 %v5708_v31, 16  ;;  %v2509_v58 = vshrl.u32 %v5708_v31, 16 }
 0x1ea   : > { %v2052_v20 = vpop.permute.xlu2 %2051 }
 0x1eb   : > { %2139 = vst.msk [vmem:[#allocation2 + $0x24] sm:$0xf] %vm2129_vm11, %v2052_v20  ;;  %v2507_v35 = vrot.slane %v2505_v42, 5  ;;  %v2511_v0 = vrot.slane %v2509_v58, 4  ;;  %v3875_v42 = vld [vmem:[%s4258_s25 + $0x8c] sm:$0x1] }
 0x1ec   : > { %3022 = vrot.lane.b32.xlu1 %v2917_v14, %s4203_s8  ;;  %v2440_v14 = vor.u32 %v2439_v21, %v2435_v61  ;;  %v2669_v21 = vrot.slane %v2667_v41, 5  ;;  %v5829_v41 = vld [vmem:[%s4258_s25 + $0x60] sm:$0xf] }
 0x1ed   : > { %3020 = vrot.lane.b32.xlu0 %v2914_v15, %s4203_s8  ;;  %v2429_v15 = vrot.slane %v2427_v63, 5 }
 0x1ee   : > { %v2044_v7 = vpop.permute.xlu1 %2043  ;;  %v2441_v39 = vrot.slane %v2440_v14, 4  ;;  %v5783_v14 = vld [vmem:[%s4258_s25 + $0xac] sm:$0xf] }
 0x1ef   : > { %2135 = vst.msk [vmem:[#allocation2 + $0x14] sm:$0xf] %vm2129_vm11, %v2044_v7  ;;  %v2042_v11 = vpop.permute.xlu0 %2041  ;;  %v2508_v7 = vsel %vm4292_vm2, %v2503_v38, %v2507_v35 }
 0x1f0   : > { %2134 = vst.msk [vmem:[#allocation2 + $0x10] sm:$0xf] %vm2129_vm11, %v2042_v11  ;;  %2777 = vrot.lane.b32.xlu2 %v2494_v30, %s4202_s7  ;;  %v2922_v30 = vrot.slane %v2920_v52, 4 }
 0x1f2   : > { %v2058_v51 = vpop.permute.xlu2 %2057 }
 0x1f3   : > { %2142 = vst.msk [vmem:[#allocation2 + $0x30] sm:$0xf] %vm2129_vm11, %v2058_v51  ;;  %v2512_v51 = vor.u32 %v2511_v0, %v2507_v35 }
 0x1f4   : > { %2278 = vrot.lane.b32.xlu1 %v5633_v5, %s4201_s6  ;;  %v2424_v5 = vshrl.u32 %v5687_v4, 16 }
 0x1f5   : > { %3034 = vrot.lane.b32.xlu0 %v2938_v28, %s4203_s8  ;;  %v3896_v28 = vrot.slane %v5687_v4, 9 }
 0x1f6   : > { %v2050_v47 = vpop.permute.xlu1 %2049  ;;  %v2426_v16 = vrot.slane %v2424_v5, 4 }
 0x1f7   : > { %2138 = vst.msk [vmem:[#allocation2 + $0x20] sm:$0xf] %vm2129_vm11, %v2050_v47  ;;  %v2048_v12 = vpop.permute.xlu0 %2047  ;;  %v2515_v47 = vshll.u32 %v3863_v10, 16 }
 0x1f8   : > { %2137 = vst.msk [vmem:[#allocation2 + $0x1c] sm:$0xf] %vm2129_vm11, %v2048_v12  ;;  %3032 = vrot.lane.b32.xlu2 %v2935_v32, %s4203_s8  ;;  %v2430_v20 = vor.u32 %v2429_v15, %v2426_v16  ;;  %v2941_v12 = vrot.slane %v5708_v31, 5  ;;  %v2921_v32 = vsel %vm4610_vm6, %v3896_v28, %v2920_v52  ;;  %v4018_v16 = vld [vmem:[%s6312_s1 + $0x8] sm:$0xff]  ;;  %v2673_v15 = vshll.u32 %v5783_v14, 16 }
 0x1fa   : > { %v2064_v27 = vpop.permute.xlu2 %2063  ;;  %v2431_v11 = vrot.slane %v2430_v20, 4  ;;  %v2675_v58 = vrot.slane %v2673_v15, 5 }
 0x1fb   : > { %2145 = vst.msk [vmem:[#allocation2 + $0x3c] sm:$0xf] %vm2129_vm11, %v2064_v27 }
 0x1fc   : > { %2793 = vrot.lane.b32.xlu1 %v2590_v44, %s4202_s7  ;;  %v2436_v34 = vsel %vm4292_vm2, %v2431_v11, %v2435_v61  ;;  %v2513_v44 = vrot.slane %v2512_v51, 4  ;;  %v2677_v11 = vshrl.u32 %v5783_v14, 16 }
 0x1fd   : > { %2791 = vrot.lane.b32.xlu0 %v2580_v17, %s4202_s7  ;;  %v2517_v17 = vrot.slane %v2515_v47, 5  ;;  %v3903_v47 = vrot.slane %v5761_v23, 9 }
 0x1fe   : > { %v2056_v6 = vpop.permute.xlu1 %2055 }
 0x1ff   : > { %2141 = vst.msk [vmem:[#allocation2 + $0x2c] sm:$0xf] %vm2129_vm11, %v2056_v6  ;;  %v2054_v54 = vpop.permute.xlu0 %2053  ;;  %v2943_v6 = vrot.slane %v2941_v12, 4 }
 0x200   : > { %2140 = vst.msk [vmem:[#allocation2 + $0x28] sm:$0xf] %vm2129_vm11, %v2054_v54  ;;  %2280 = vrot.lane.b32.xlu2 %v5629_v19, %s4201_s6  ;;  %v3854_v19 = vld [vmem:[%s4258_s25 + $0x38] sm:$0x1] }
 0x201   : > { %v2443_v45 = vshll.u32 %v3854_v19, 16  ;;  %v2923_v49 = vrot.slane %v3854_v19, 5  ;;  %v2945_v55 = vsel %vm4610_vm6, %v2943_v6, %v2944_v9 }
 0x202   : > { %v2070_v18 = vpop.permute.xlu2 %2069 }
 0x203   : > { %2148 = vst.msk [vmem:[#allocation2 + $0x48] sm:$0xf] %vm2129_vm11, %v2070_v18  ;;  %v2445_v60 = vrot.slane %v2443_v45, 5  ;;  %v2924_v37 = vsel %vm4610_vm6, %v2922_v30, %v2923_v49  ;;  %v3278_v18 = vpack.c.b16 %v3275_v53, %v3275_v53 }
 0x204   : > { %2254 = vrot.lane.b32.xlu1 %v5687_v4, %s4201_s6  ;;  %v2518_v4 = vsel %vm4292_vm2, %v2513_v44, %v2517_v17 }
 0x205   : > { %3050 = vrot.lane.b32.xlu0 %v2966_v43, %s4203_s8  ;;  %v2446_v1 = vsel %vm4292_vm2, %v2441_v39, %v2445_v60  ;;  %v2664_v43 = vshrl.u32 %v5747_v46, 16  ;;  %v3332_v19 = vsel %vm3330_vm12, %v3278_v18, 0  ;;  %v2597_v39 = vrot.slane %v2595_v24, 5  ;;  %v4017_v60 = vld [vmem:[%s6312_s1] sm:$0xff] }
 0x206   : > { %v2062_v40 = vpop.permute.xlu1 %2061  ;;  %3339 = vmatpush.bf16.msra.mxu0 %v3332_v19  ;;  %4114 = vmatpush.bf16.msra.mxu1 %v3332_v19  ;;  %v2520_v18 = vshrl.u32 %v5829_v41, 16 }
 0x207   : > { %2144 = vst.msk [vmem:[#allocation2 + $0x38] sm:$0xf] %vm2129_vm11, %v2062_v40  ;;  %v2060_v50 = vpop.permute.xlu0 %2059  ;;  %v3899_v40 = vrot.slane %v5678_v22, 9  ;;  %v2666_v61 = vrot.slane %v2664_v43, 4  ;;  %4115 = vmatpush.bf16.msra.mxu2 %v3332_v19  ;;  %4116 = vmatpush.bf16.msra.mxu3 %v3332_v19  ;;  %v3906_v19 = vrot.slane %v5747_v46, 9 }
 0x208   : > { %2143 = vst.msk [vmem:[#allocation2 + $0x34] sm:$0xf] %vm2129_vm11, %v2060_v50  ;;  %3048 = vrot.lane.b32.xlu2 %v2963_v8, %s4203_s8 }
 0x209   : > { %v2942_v45 = vsel %vm4610_vm6, %v3899_v40, %v2941_v12  ;;  %v2670_v38 = vor.u32 %v2669_v21, %v2666_v61  ;;  %v2523_v40 = vshll.u32 %v5829_v41, 16 }
 0x20a   : > { %v2076_v33 = vpop.permute.xlu2 %2075  ;;  %3340 = vmatpush.bf16.msra.mxu0 %v4018_v16  ;;  %4117 = vmatpush.bf16.msra.mxu1 %v4018_v16 }
 0x20b   : > { %2151 = vst.msk [vmem:[#allocation2 + $0x54] sm:$0xf] %vm2129_vm11, %v2076_v33  ;;  %v2611_v33 = vshll.u32 %v3875_v42, 16  ;;  %4118 = vmatpush.bf16.msra.mxu2 %v4018_v16  ;;  %4119 = vmatpush.bf16.msra.mxu3 %v4018_v16 }
 0x20c   : > { %2268 = vrot.lane.b32.xlu1 %v5708_v31, %s4201_s6 }
 0x20d   : > { %2266 = vrot.lane.b32.xlu0 %v5678_v22, %s4201_s6  ;;  %v2592_v22 = vshrl.u32 %v5761_v23, 16 }
 0x20e   : > { %v2068_v29 = vpop.permute.xlu1 %2067  ;;  %3341 = vmatpush.bf16.msra.mxu0 %v4017_v60  ;;  %4120 = vmatpush.bf16.msra.mxu1 %v4017_v60 }
 0x20f   : > { %2147 = vst.msk [vmem:[#allocation2 + $0x44] sm:$0xf] %vm2129_vm11, %v2068_v29  ;;  %v2066_v36 = vpop.permute.xlu0 %2065  ;;  %v2594_v29 = vrot.slane %v2592_v22, 4  ;;  %4121 = vmatpush.bf16.msra.mxu2 %v4017_v60  ;;  %4122 = vmatpush.bf16.msra.mxu3 %v4017_v60 }
 0x210   : > { %2146 = vst.msk [vmem:[#allocation2 + $0x40] sm:$0xf] %vm2129_vm11, %v2066_v36  ;;  %2256 = vrot.lane.b32.xlu2 %v5683_v26, %s4201_s6  ;;  %v5752_v26 = vld [vmem:[%s4258_s25 + $0x88] sm:$0xf]  ;;  %v2671_v36 = vrot.slane %v2670_v38, 4 }
 0x211   : > { %v2601_v48 = vshll.u32 %v5752_v26, 16  ;;  %v2605_v3 = vshrl.u32 %v5752_v26, 16  ;;  %v2598_v30 = vor.u32 %v2597_v39, %v2594_v29 }
 0x212   : > { %v2082_v56 = vpop.permute.xlu2 %2081  ;;  %v2676_v49 = vsel %vm4292_vm2, %v2671_v36, %v2675_v58 }
 0x213   : > { %2154 = vst.msk [vmem:[#allocation2 + $0x60] sm:$0xf] %vm2129_vm11, %v2082_v56  ;;  %v5774_v63 = vrot.slane %v2601_v48, 5  ;;  %v2607_v31 = vrot.slane %v2605_v3, 4  ;;  %v2969_v56 = vrot.slane %v5752_v26, 5 }
 0x214   : > { %2779 = vrot.lane.b32.xlu1 %v2508_v7, %s4202_s7  ;;  %v5840_v3 = vld [vmem:[%s4258_s25 + $0x3c] sm:$0xf] }
 0x215   : > { %2769 = vrot.lane.b32.xlu0 %v2446_v1, %s4202_s7  ;;  %v2608_v35 = vor.u32 %v2607_v31, %v5774_v63  ;;  %v2613_v1 = vrot.slane %v2611_v33, 5  ;;  %v2971_v10 = vrot.slane %v2969_v56, 4  ;;  %v2970_v9 = vsel %vm4610_vm6, %v3903_v47, %v2969_v56 }
 0x216   : > { %v2074_v2 = vpop.permute.xlu1 %2073  ;;  %v2451_v16 = vshll.u32 %v5840_v3, 16 }
 0x217   : > { %2150 = vst.msk [vmem:[#allocation2 + $0x50] sm:$0xf] %vm2129_vm11, %v2074_v2  ;;  %v2072_v62 = vpop.permute.xlu0 %2071  ;;  %v2609_v52 = vrot.slane %v2608_v35, 4  ;;  %v2679_v2 = vrot.slane %v2677_v11, 4 }
 0x218   : > { %2149 = vst.msk [vmem:[#allocation2 + $0x4c] sm:$0xf] %vm2129_vm11, %v2072_v62  ;;  %2767 = vrot.lane.b32.xlu2 %v2436_v34, %s4202_s7  ;;  %v2599_v62 = vrot.slane %v2598_v30, 4  ;;  %v2972_v34 = vrot.slane %v3875_v42, 5  ;;  %v2453_v60 = vrot.slane %v2451_v16, 5 }
 0x219   : > { %v2614_v28 = vsel %vm4292_vm2, %v2609_v52, %v2613_v1  ;;  %v2680_v17 = vor.u32 %v2679_v2, %v2675_v58 }
 0x21a   : > { %v2088_v57 = vpop.permute.xlu2 %2087  ;;  %v2604_v44 = vsel %vm4292_vm2, %v2599_v62, %v5774_v63  ;;  %v2973_v6 = vsel %vm4610_vm6, %v2971_v10, %v2972_v34  ;;  %v2525_v63 = vrot.slane %v2523_v40, 5  ;;  %v5912_v40 = vld [vmem:[%s4258_s25 + $0x90] sm:$0xf] }
 0x21b   : > { %2157 = vst.msk [vmem:[#allocation2 + $0x6c] sm:$0xf] %vm2129_vm11, %v2088_v57 }
 0x21c   : > { %3026 = vrot.lane.b32.xlu1 %v2924_v37, %s4203_s8 }
 0x21d   : > { %3024 = vrot.lane.b32.xlu0 %v2921_v32, %s4203_s8  ;;  %v3884_v32 = vld [vmem:[%s4258_s25 + $0xb0] sm:$0x1] }
 0x21e   : > { %v2080_v27 = vpop.permute.xlu1 %2079  ;;  %v2683_v57 = vshll.u32 %v3884_v32, 16  ;;  %v2993_v43 = vrot.slane %v3884_v32, 5 }
 0x21f   : > { %2153 = vst.msk [vmem:[#allocation2 + $0x5c] sm:$0xf] %vm2129_vm11, %v2080_v27  ;;  %v2078_v54 = vpop.permute.xlu0 %2077  ;;  %v2990_v27 = vrot.slane %v5783_v14, 5 }
 0x220   : > { %2152 = vst.msk [vmem:[#allocation2 + $0x58] sm:$0xf] %vm2129_vm11, %v2078_v54  ;;  %2781 = vrot.lane.b32.xlu2 %v2518_v4, %s4202_s7  ;;  %v2681_v54 = vrot.slane %v2680_v17, 4 }
 0x221   : > { %v2992_v4 = vrot.slane %v2990_v27, 4  ;;  %v2991_v15 = vsel %vm4610_vm6, %v3906_v19, %v2990_v27 }
 0x222   : > { %v2094_v50 = vpop.permute.xlu2 %2093 }
 0x223   : > { %2160 = vst.msk [vmem:[#allocation2 + $0x78] sm:$0xf] %vm2129_vm11, %v2094_v50  ;;  %v2994_v61 = vsel %vm4610_vm6, %v2992_v4, %v2993_v43 }
 0x224   : > { %2282 = vrot.lane.b32.xlu1 %v5761_v23, %s4201_s6 }
 0x225   : > { %3038 = vrot.lane.b32.xlu0 %v2945_v55, %s4203_s8  ;;  %v5834_v55 = vld [vmem:[%s4258_s25 + $0x40] sm:$0xf] }
 0x226   : > { %v2086_v5 = vpop.permute.xlu1 %2085  ;;  %v2457_v21 = vshll.u32 %v5834_v55, 16  ;;  %v2461_v50 = vshrl.u32 %v5834_v55, 16 }
 0x227   : > { %2156 = vst.msk [vmem:[#allocation2 + $0x68] sm:$0xf] %vm2129_vm11, %v2086_v5  ;;  %v2084_v8 = vpop.permute.xlu0 %2083  ;;  %v2522_v5 = vrot.slane %v2520_v18, 4 }
 0x228   : > { %2155 = vst.msk [vmem:[#allocation2 + $0x64] sm:$0xf] %vm2129_vm11, %v2084_v8  ;;  %3036 = vrot.lane.b32.xlu2 %v2942_v45, %s4203_s8  ;;  %v2459_v8 = vrot.slane %v2457_v21, 5  ;;  %v2463_v42 = vrot.slane %v2461_v50, 4  ;;  %v2448_v45 = vshrl.u32 %v5840_v3, 16 }
 0x229   : > { %v2526_v35 = vor.u32 %v2525_v63, %v2522_v5  ;;  %v3900_v63 = vrot.slane %v5829_v41, 9 }
 0x22a   : > { %v2249_v20 = vpop.permute.xlu2 %2248  ;;  %v2464_v33 = vor.u32 %v2463_v42, %v2459_v8  ;;  %v2450_v39 = vrot.slane %v2448_v45, 4 }
 0x22b   : > { %2344 = vst.msk [vmem:[#allocation2 + $0x4] sm:$0xf] %vm2342_vm13, %v2249_v20  ;;  %v2527_v36 = vrot.slane %v2526_v35, 4 }
 0x22c   : > { %2296 = vrot.lane.b32.xlu1 %v5783_v14, %s4201_s6  ;;  %v3857_v14 = vld [vmem:[%s4258_s25 + $0x44] sm:$0x1]  ;;  %v2465_v52 = vrot.slane %v2464_v33, 4 }
 0x22d   : > { %2294 = vrot.lane.b32.xlu0 %v5747_v46, %s4201_s6  ;;  %v5860_v46 = vld [vmem:[%s4258_s25 + $0x64] sm:$0xf]  ;;  %v2467_v29 = vshll.u32 %v3857_v14, 16 }
 0x22e   : > { %v2092_v7 = vpop.permute.xlu1 %2091  ;;  %v2529_v38 = vshll.u32 %v5860_v46, 16  ;;  %v2533_v30 = vshrl.u32 %v5860_v46, 16 }
 0x22f   : > { %2159 = vst.msk [vmem:[#allocation2 + $0x74] sm:$0xf] %vm2129_vm11, %v2092_v7  ;;  %v2090_v0 = vpop.permute.xlu0 %2089  ;;  %v2469_v1 = vrot.slane %v2467_v29, 5 }
 0x230   : > { %2158 = vst.msk [vmem:[#allocation2 + $0x70] sm:$0xf] %vm2129_vm11, %v2090_v0  ;;  %2284 = vrot.lane.b32.xlu2 %v5752_v26, %s4201_s6  ;;  %v2685_v26 = vrot.slane %v2683_v57, 5  ;;  %v2531_v58 = vrot.slane %v2529_v38, 5  ;;  %v2535_v62 = vrot.slane %v2533_v30, 4 }
 0x231   : > { %v2470_v2 = vsel %vm4292_vm2, %v2465_v52, %v2469_v1  ;;  %v5933_v38 = vld [vmem:[%s4258_s25 + $0xb8] sm:$0xf] }
 0x232   : > { %v3017_v51 = vpop.permute.xlu2 %3016  ;;  %v2686_v48 = vsel %vm4292_vm2, %v2681_v54, %v2685_v26  ;;  %v2532_v56 = vsel %vm4292_vm2, %v2527_v36, %v2531_v58  ;;  %v2536_v57 = vor.u32 %v2535_v62, %v2531_v58  ;;  %v2697_v33 = vshll.u32 %v5933_v38, 16 }
 0x234   : > { %2807 = vrot.lane.b32.xlu1 %v2676_v49, %s4202_s7  ;;  %v2454_v49 = vor.u32 %v2453_v60, %v2450_v39  ;;  %v2537_v26 = vrot.slane %v2536_v57, 4 }
 0x235   : > { %2797 = vrot.lane.b32.xlu0 %v2614_v28, %s4202_s7  ;;  %v2927_v28 = vrot.slane %v5834_v55, 5 }
 0x236   : > { %v2247_v37 = vpop.permute.xlu1 %2246  ;;  %v2455_v10 = vrot.slane %v2454_v49, 4 }
 0x237   : > { %2343 = vst.msk [vmem:[#allocation2] sm:$0xf] %vm2342_vm13, %v2247_v37  ;;  %v2096_v12 = vpop.permute.xlu0 %2095  ;;  %v2929_v34 = vrot.slane %v2927_v28, 4  ;;  %v3897_v37 = vrot.slane %v5840_v3, 9 }
 0x238   : > { %2161 = vst.msk [vmem:[#allocation2 + $0x7c] sm:$0xf] %vm2129_vm11, %v2096_v12  ;;  %2795 = vrot.lane.b32.xlu2 %v2604_v44, %s4202_s7  ;;  %v3866_v44 = vld [vmem:[%s4258_s25 + $0x68] sm:$0x1]  ;;  %v2460_v17 = vsel %vm4292_vm2, %v2455_v10, %v2459_v8 }
 0x239   : > { %v2539_v27 = vshll.u32 %v3866_v44, 16  ;;  %v2928_v54 = vsel %vm4610_vm6, %v3897_v37, %v2927_v28 }
 0x23a   : > { %v2253_v59 = vpop.permute.xlu2 %2252 }
 0x23b   : > { %2346 = vst.msk [vmem:[#allocation2 + $0xc] sm:$0xf] %vm2342_vm13, %v2253_v59  ;;  %v2541_v4 = vrot.slane %v2539_v27, 5  ;;  %v5966_v27 = vld [vmem:[%s4258_s25 + $0x6c] sm:$0xf] }
 0x23c   : > { %3054 = vrot.lane.b32.xlu1 %v2973_v6, %s4203_s8 }
 0x23d   : > { %3052 = vrot.lane.b32.xlu0 %v2970_v9, %s4203_s8  ;;  %v2948_v9 = vrot.slane %v5860_v46, 5  ;;  %v2542_v18 = vsel %vm4292_vm2, %v2537_v26, %v2541_v4 }
 0x23e   : > { %v2762_v23 = vpop.permute.xlu1 %2761 }
 0x23f   : > { %v2760_v53 = vpop.permute.xlu0 %2759  ;;  %2857 = vst.msk [vmem:[#allocation2 + $0x4] sm:$0xf] %vm2855_vm14, %v2762_v23  ;;  %v2950_v43 = vrot.slane %v2948_v9, 4  ;;  %v2949_v35 = vsel %vm4610_vm6, %v3900_v63, %v2948_v9 }
 0x240   : > { %2856 = vst.msk [vmem:[#allocation2] sm:$0xf] %vm2855_vm14, %v2760_v53  ;;  %2809 = vrot.lane.b32.xlu2 %v2686_v48, %s4202_s7  ;;  %v2951_v53 = vrot.slane %v3866_v44, 5 }
 0x241   : > { %3113 = vst.msk [vmem:[#allocation2] sm:$0xf] %vm3112_vm15, %v3017_v51  ;;  %v2930_v51 = vrot.slane %v3857_v14, 5 }
 0x242   : > { %v2764_v31 = vpop.permute.xlu2 %2763  ;;  %v2952_v50 = vsel %vm4610_vm6, %v2950_v43, %v2951_v53  ;;  %v2997_v43 = vrot.slane %v5933_v38, 5 }
 0x243   : > { %v2931_v6 = vsel %vm4610_vm6, %v2929_v34, %v2930_v51 }
 0x244   : > { %2258 = vrot.lane.b32.xlu1 %v5840_v3, %s4201_s6  ;;  %v5906_v3 = vld [vmem:[%s4258_s25 + $0x94] sm:$0xf] }
 0x245   : > { %3066 = vrot.lane.b32.xlu0 %v2994_v61, %s4203_s8  ;;  %v2625_v19 = vshll.u32 %v5906_v3, 16  ;;  %v2629_v5 = vshrl.u32 %v5906_v3, 16  ;;  %v2976_v62 = vrot.slane %v5906_v3, 5 }
 0x246   : > { %v2251_v22 = vpop.permute.xlu1 %2250 }
 0x247   : > { %2345 = vst.msk [vmem:[#allocation2 + $0x8] sm:$0xf] %vm2342_vm13, %v2251_v22  ;;  %v3019_v24 = vpop.permute.xlu0 %3018  ;;  %v2631_v14 = vrot.slane %v2629_v5, 4 }
 0x248   : > { %3114 = vst.msk [vmem:[#allocation2 + $0x4] sm:$0xf] %vm3112_vm15, %v3019_v24  ;;  %3064 = vrot.lane.b32.xlu2 %v2991_v15, %s4203_s8  ;;  %v5925_v24 = vrot.slane %v2625_v19, 5  ;;  %v2619_v15 = vshll.u32 %v5912_v40, 16 }
 0x249   : > { %2858 = vst.msk [vmem:[#allocation2 + $0x8] sm:$0xf] %vm2855_vm14, %v2764_v31 }
 0x24a   : > { %v2778_v20 = vpop.permute.xlu2 %2777  ;;  %v2632_v39 = vor.u32 %v2631_v14, %v5925_v24  ;;  %v2621_v58 = vrot.slane %v2619_v15, 5 }
 0x24c   : > { %2272 = vrot.lane.b32.xlu1 %v5860_v46, %s4201_s6  ;;  %v3878_v46 = vld [vmem:[%s4258_s25 + $0x98] sm:$0x1] }
 0x24d   : > { %2270 = vrot.lane.b32.xlu0 %v5829_v41, %s4201_s6  ;;  %v2616_v41 = vshrl.u32 %v5912_v40, 16  ;;  %v2635_v60 = vshll.u32 %v3878_v46, 16  ;;  %v2979_v37 = vrot.slane %v3878_v46, 5 }
 0x24e   : > { %v2265_v7 = vpop.permute.xlu1 %2264 }
 0x24f   : > { %2352 = vst.msk [vmem:[#allocation2 + $0x24] sm:$0xf] %vm2342_vm13, %v2265_v7  ;;  %v2263_v0 = vpop.permute.xlu0 %2262  ;;  %v4001_v11 = vld [vmem:[#allocation2] sm:$0xff]  ;;  %v2618_v36 = vrot.slane %v2616_v41, 4  ;;  %v2699_v7 = vrot.slane %v2697_v33, 5 }
 0x250   : > { %2351 = vst.msk [vmem:[#allocation2 + $0x20] sm:$0xf] %vm2342_vm13, %v2263_v0  ;;  %3982 = vmatmul.msk.bf16.vlgmr.msra.gmra.mxu0 %vm3281_vm0, %v4001_v11  ;;  %2260 = vrot.lane.b32.xlu2 %v5834_v55, %s4201_s6  ;;  %v5901_v55 = vld [vmem:[%s4258_s25 + $0xb4] sm:$0xf]  ;;  %v2633_v0 = vrot.slane %v2632_v39, 4  ;;  %v2637_v11 = vrot.slane %v2635_v60, 5 }
 0x251   : > { %2865 = vst.msk [vmem:[#allocation2 + $0x24] sm:$0xf] %vm2855_vm14, %v2778_v20  ;;  %v2688_v61 = vshrl.u32 %v5901_v55, 16  ;;  %v2691_v21 = vshll.u32 %v5901_v55, 16  ;;  %v2622_v28 = vor.u32 %v2621_v58, %v2618_v36  ;;  %v3907_v15 = vrot.slane %v5901_v55, 9 }
 0x252   : > { %v3033_v47 = vpop.permute.xlu2 %3032  ;;  %v2638_v10 = vsel %vm4292_vm2, %v2633_v0, %v2637_v11  ;;  %v6014_v11 = vld [vmem:[%s4258_s25 + $0xc0] sm:$0xf] }
 0x253   : > { %v2690_v31 = vrot.slane %v2688_v61, 4  ;;  %v2693_v22 = vrot.slane %v2691_v21, 5  ;;  %v2623_v51 = vrot.slane %v2622_v28, 4  ;;  %v2998_v36 = vsel %vm4610_vm6, %v3907_v15, %v2997_v43 }
 0x254   : > { %2783 = vrot.lane.b32.xlu1 %v2532_v56, %s4202_s7  ;;  %v2701_v56 = vshrl.u32 %v5933_v38, 16  ;;  %v2712_v28 = vshrl.u32 %v6014_v11, 16 }
 0x255   : > { %2773 = vrot.lane.b32.xlu0 %v2470_v2, %s4202_s7  ;;  %v2694_v29 = vor.u32 %v2693_v22, %v2690_v31  ;;  %v2628_v9 = vsel %vm4292_vm2, %v2623_v51, %v5925_v24  ;;  %v2999_v31 = vrot.slane %v2997_v43, 4  ;;  %v3901_v51 = vrot.slane %v5966_v27, 9 }
 0x256   : > { %v2776_v12 = vpop.permute.xlu1 %2775  ;;  %v2703_v34 = vrot.slane %v2701_v56, 4  ;;  %v6023_v56 = vld [vmem:[%s4258_s25 + $0x9c] sm:$0xf] }
 0x257   : > { %2864 = vst.msk [vmem:[#allocation2 + $0x20] sm:$0xf] %vm2855_vm14, %v2776_v12  ;;  %v2766_v32 = vpop.permute.xlu0 %2765  ;;  %v2695_v20 = vrot.slane %v2694_v29, 4  ;;  %v3905_v15 = vrot.slane %v6023_v56, 9 }
 0x258   : > { %2859 = vst.msk [vmem:[#allocation2 + $0xc] sm:$0xf] %vm2855_vm14, %v2766_v32  ;;  %2771 = vrot.lane.b32.xlu2 %v2460_v17, %s4202_s7  ;;  %v3904_v32 = vrot.slane %v5912_v40, 9  ;;  %v5962_v17 = vld [vmem:[%s4258_s25 + $0x70] sm:$0xf] }
 0x259   : > { %3121 = vst.msk [vmem:[#allocation2 + $0x20] sm:$0xf] %vm3112_vm15, %v3033_v47  ;;  %v2700_v2 = vsel %vm4292_vm2, %v2695_v20, %v2699_v7  ;;  %v2978_v47 = vrot.slane %v2976_v62, 4  ;;  %v2955_v20 = vrot.slane %v5962_v17, 5 }
 0x25a   : > { %v2281_v59 = vpop.permute.xlu2 %2280  ;;  %v2977_v53 = vsel %vm4610_vm6, %v3904_v32, %v2976_v62 }
 0x25b   : > { %2360 = vst.msk [vmem:[#allocation2 + $0x44] sm:$0xf] %vm2342_vm13, %v2281_v59  ;;  %v2980_v4 = vsel %vm4610_vm6, %v2978_v47, %v2979_v37  ;;  %v2553_v59 = vshll.u32 %v5962_v17, 16  ;;  %v2714_v47 = vrot.slane %v2712_v28, 4 }
 0x25c   : > { %3030 = vrot.lane.b32.xlu1 %v2931_v6, %s4203_s8  ;;  %v3887_v6 = vld [vmem:[%s4258_s25 + $0xbc] sm:$0x1] }
 0x25d   : > { %3028 = vrot.lane.b32.xlu0 %v2928_v54, %s4203_s8  ;;  %v2704_v54 = vor.u32 %v2703_v34, %v2699_v7  ;;  %v2707_v26 = vshll.u32 %v3887_v6, 16  ;;  %v2555_v61 = vrot.slane %v2553_v59, 5  ;;  %v3000_v22 = vrot.slane %v3887_v6, 5 }
 0x25e   : > { %v3023_v23 = vpop.permute.xlu1 %3022 }
 0x25f   : > { %3116 = vst.msk [vmem:[#allocation2 + $0xc] sm:$0xf] %vm3112_vm15, %v3023_v23  ;;  %v3021_v48 = vpop.permute.xlu0 %3020  ;;  %v2557_v23 = vshrl.u32 %v5962_v17, 16  ;;  %v3001_v46 = vsel %vm4610_vm6, %v2999_v31, %v3000_v22 }
 0x260   : > { %3115 = vst.msk [vmem:[#allocation2 + $0x8] sm:$0xf] %vm3112_vm15, %v3021_v48  ;;  %2785 = vrot.lane.b32.xlu2 %v2542_v18, %s4202_s7  ;;  %v2544_v48 = vshrl.u32 %v5966_v27, 16  ;;  %v2705_v18 = vrot.slane %v2704_v54, 4  ;;  %v2643_v54 = vshll.u32 %v6023_v56, 16 }
 0x261   : > { %v2559_v21 = vrot.slane %v2557_v23, 4 }
 0x262   : > { %v3049_v8 = vpop.permute.xlu2 %3048  ;;  %v2546_v5 = vrot.slane %v2544_v48, 4 }
 0x264   : > { %2286 = vrot.lane.b32.xlu1 %v5912_v40, %s4201_s6  ;;  %v2709_v40 = vrot.slane %v2707_v26, 5  ;;  %v6045_v26 = vld [vmem:[%s4258_s25 + $0xc4] sm:$0xf] }
 0x265   : > { %3042 = vrot.lane.b32.xlu0 %v2952_v50, %s4203_s8  ;;  %v2721_v59 = vshll.u32 %v6045_v26, 16  ;;  %v2725_v31 = vshrl.u32 %v6045_v26, 16 }
 0x266   : > { %v2279_v42 = vpop.permute.xlu1 %2278  ;;  %v2710_v14 = vsel %vm4292_vm2, %v2705_v18, %v2709_v40 }
 0x267   : > { %2359 = vst.msk [vmem:[#allocation2 + $0x40] sm:$0xf] %vm2342_vm13, %v2279_v42  ;;  %v3035_v45 = vpop.permute.xlu0 %3034  ;;  %v4002_v16 = vld [vmem:[#allocation2 + $0x8] sm:$0xff]  ;;  %v2723_v40 = vrot.slane %v2721_v59, 5 }
 0x268   : > { %3122 = vst.msk [vmem:[#allocation2 + $0x24] sm:$0xf] %vm3112_vm15, %v3035_v45  ;;  %3983 = vmatmul.msk.bf16.gmra.mxu0 %vm3281_vm0, %v4002_v16  ;;  %3040 = vrot.lane.b32.xlu2 %v2949_v35, %s4203_s8  ;;  %v2560_v45 = vor.u32 %v2559_v21, %v2555_v61 }
 0x26a   : > { %v2257_v52 = vpop.permute.xlu2 %2256 }
 0x26b   : > { %2348 = vst.msk [vmem:[#allocation2 + $0x14] sm:$0xf] %vm2342_vm13, %v2257_v52 }
 0x26c   : > { %2300 = vrot.lane.b32.xlu1 %v5933_v38, %s4201_s6  ;;  %v2561_v38 = vrot.slane %v2560_v45, 4 }
 0x26d   : > { %2298 = vrot.lane.b32.xlu0 %v5901_v55, %s4201_s6 }
 0x26e   : > { %v2794_v1 = vpop.permute.xlu1 %2793 }
 0x26f   : > { %2873 = vst.msk [vmem:[#allocation2 + $0x44] sm:$0xf] %vm2855_vm14, %v2794_v1  ;;  %v2792_v30 = vpop.permute.xlu0 %2791  ;;  %v4005_v49 = vld [vmem:[#allocation2 + $0x20] sm:$0xff]  ;;  %v2957_v1 = vrot.slane %v2955_v20, 4 }
 0x270   : > { %2872 = vst.msk [vmem:[#allocation2 + $0x40] sm:$0xf] %vm2855_vm14, %v2792_v30  ;;  %3986 = vmatmul.msk.bf16.vlgmr.msra.gmra.mxu1 %vm3281_vm0, %v4005_v49  ;;  %2288 = vrot.lane.b32.xlu2 %v5906_v3, %s4201_s6  ;;  %v2547_v3 = vshll.u32 %v5966_v27, 16  ;;  %v6019_v49 = vld [vmem:[%s4258_s25 + $0xa0] sm:$0xf] }
 0x271   : > { %3129 = vst.msk [vmem:[#allocation2 + $0x40] sm:$0xf] %vm3112_vm15, %v3049_v8  ;;  %v3869_v8 = vld [vmem:[%s4258_s25 + $0x74] sm:$0x1]  ;;  %v2653_v34 = vshrl.u32 %v6019_v49, 16 }
 0x272   : > { %v2768_v12 = vpop.permute.xlu2 %2767  ;;  %v2549_v63 = vrot.slane %v2547_v3, 5  ;;  %v2563_v16 = vshll.u32 %v3869_v8, 16  ;;  %v2958_v0 = vrot.slane %v3869_v8, 5  ;;  %v2645_v3 = vrot.slane %v2643_v54, 5 }
 0x274   : > { %2811 = vrot.lane.b32.xlu1 %v2700_v2, %s4202_s7  ;;  %v2550_v41 = vor.u32 %v2549_v63, %v2546_v5  ;;  %v2565_v35 = vrot.slane %v2563_v16, 5  ;;  %v2715_v2 = vshll.u32 %v6014_v11, 16  ;;  %v2959_v62 = vsel %vm4610_vm6, %v2957_v1, %v2958_v0 }
 0x275   : > { %2801 = vrot.lane.b32.xlu0 %v2638_v10, %s4202_s7  ;;  %v2649_v10 = vshll.u32 %v6019_v49, 16 }
 0x276   : > { %v2255_v44 = vpop.permute.xlu1 %2254  ;;  %v2551_v39 = vrot.slane %v2550_v41, 4  ;;  %v2566_v55 = vsel %vm4292_vm2, %v2561_v38, %v2565_v35  ;;  %v2717_v37 = vrot.slane %v2715_v2, 5 }
 0x277   : > { %2347 = vst.msk [vmem:[#allocation2 + $0x10] sm:$0xf] %vm2342_vm13, %v2255_v44  ;;  %v3051_v57 = vpop.permute.xlu0 %3050  ;;  %v6037_v44 = vrot.slane %v2649_v10, 5 }
 0x278   : > { %3130 = vst.msk [vmem:[#allocation2 + $0x44] sm:$0xf] %vm3112_vm15, %v3051_v57  ;;  %2799 = vrot.lane.b32.xlu2 %v2628_v9, %s4202_s7  ;;  %v2556_v58 = vsel %vm4292_vm2, %v2551_v39, %v2555_v61  ;;  %v2655_v57 = vrot.slane %v2653_v34, 4  ;;  %v2718_v23 = vor.u32 %v2717_v37, %v2714_v47  ;;  %v3893_v37 = vld [vmem:[%s4258_s25 + $0xd4] sm:$0x1] }
 0x279   : > { %2860 = vst.msk [vmem:[#allocation2 + $0x10] sm:$0xf] %vm2855_vm14, %v2768_v12 }
 0x27a   : > { %v2782_v50 = vpop.permute.xlu2 %2781  ;;  %v2656_v43 = vor.u32 %v2655_v57, %v6037_v44  ;;  %v2719_v18 = vrot.slane %v2718_v23, 4 }
 0x27c   : > { %3058 = vrot.lane.b32.xlu1 %v2980_v4, %s4203_s8  ;;  %v2956_v4 = vsel %vm4610_vm6, %v3901_v51, %v2955_v20  ;;  %v2724_v8 = vsel %vm4292_vm2, %v2719_v18, %v2723_v40 }
 0x27d   : > { %3056 = vrot.lane.b32.xlu0 %v2977_v53, %s4203_s8 }
 0x27e   : > { %v2269_v19 = vpop.permute.xlu1 %2268 }
 0x27f   : > { %2354 = vst.msk [vmem:[#allocation2 + $0x2c] sm:$0xf] %vm2342_vm13, %v2269_v19  ;;  %v2267_v42 = vpop.permute.xlu0 %2266  ;;  %v4009_v24 = vld [vmem:[#allocation2 + $0x40] sm:$0xff] }
 0x280   : > { %2353 = vst.msk [vmem:[#allocation2 + $0x28] sm:$0xf] %vm2342_vm13, %v2267_v42  ;;  %3990 = vmatmul.msk.bf16.vlgmr.msra.gmra.mxu2 %vm3281_vm0, %v4009_v24  ;;  %2813 = vrot.lane.b32.xlu2 %v2710_v14, %s4202_s7  ;;  %v2983_v42 = vrot.slane %v6019_v49, 5  ;;  %v2727_v14 = vrot.slane %v2725_v31, 4 }
 0x281   : > { %2867 = vst.msk [vmem:[#allocation2 + $0x2c] sm:$0xf] %vm2855_vm14, %v2782_v50  ;;  %v2657_v50 = vrot.slane %v2656_v43, 4 }
 0x282   : > { %v3037_v33 = vpop.permute.xlu2 %3036  ;;  %v2985_v16 = vrot.slane %v2983_v42, 4 }
 0x284   : > { %2274 = vrot.lane.b32.xlu1 %v5966_v27, %s4201_s6  ;;  %v2640_v27 = vshrl.u32 %v6023_v56, 16 }
 0x285   : > { %3070 = vrot.lane.b32.xlu0 %v3001_v46, %s4203_s8 }
 0x286   : > { %v2780_v29 = vpop.permute.xlu1 %2779  ;;  %v2642_v48 = vrot.slane %v2640_v27, 4  ;;  %v3908_v27 = vrot.slane %v6014_v11, 9 }
 0x287   : > { %2866 = vst.msk [vmem:[#allocation2 + $0x28] sm:$0xf] %vm2855_vm14, %v2780_v29  ;;  %v2770_v60 = vpop.permute.xlu0 %2769  ;;  %v6076_v29 = vld [vmem:[%s4258_s25 + $0xcc] sm:$0xf] }
 0x288   : > { %2861 = vst.msk [vmem:[#allocation2 + $0x14] sm:$0xf] %vm2855_vm14, %v2770_v60  ;;  %3068 = vrot.lane.b32.xlu2 %v2998_v36, %s4203_s8  ;;  %v2646_v22 = vor.u32 %v2645_v3, %v2642_v48  ;;  %v6083_v60 = vld [vmem:[%s4258_s25 + $0xd0] sm:$0xf]  ;;  %v2728_v36 = vor.u32 %v2727_v14, %v2723_v40  ;;  %v2736_v1 = vshrl.u32 %v6076_v29, 16  ;;  %v2739_v0 = vshll.u32 %v6076_v29, 16 }
 0x289   : > { %3123 = vst.msk [vmem:[#allocation2 + $0x28] sm:$0xf] %vm3112_vm15, %v3037_v33  ;;  %v3890_v33 = vld [vmem:[%s4258_s25 + $0xc8] sm:$0x1]  ;;  %v3011_v18 = vrot.slane %v6083_v60, 5 }
 0x28a   : > { %v2285_v7 = vpop.permute.xlu2 %2284  ;;  %v2647_v45 = vrot.slane %v2646_v22, 4  ;;  %v3007_v2 = vrot.slane %v3890_v33, 5  ;;  %v2738_v51 = vrot.slane %v2736_v1, 4  ;;  %v2741_v47 = vrot.slane %v2739_v0, 5 }
 0x28b   : > { %2362 = vst.msk [vmem:[#allocation2 + $0x4c] sm:$0xf] %vm2342_vm13, %v2285_v7  ;;  %v2749_v7 = vshrl.u32 %v6083_v60, 16 }
 0x28c   : > { %2789 = vrot.lane.b32.xlu1 %v2566_v55, %s4202_s7  ;;  %v2652_v39 = vsel %vm4292_vm2, %v2647_v45, %v6037_v44  ;;  %v2731_v55 = vshll.u32 %v3890_v33, 16 }
 0x28d   : > { %2787 = vrot.lane.b32.xlu0 %v2556_v58, %s4202_s7  ;;  %v3004_v58 = vrot.slane %v6045_v26, 5  ;;  %v2751_v10 = vrot.slane %v2749_v7, 4 }
 0x28e   : > { %v3027_v52 = vpop.permute.xlu1 %3026 }
 0x28f   : > { %3118 = vst.msk [vmem:[#allocation2 + $0x14] sm:$0xf] %vm3112_vm15, %v3027_v52  ;;  %v3025_v30 = vpop.permute.xlu0 %3024  ;;  %v2984_v52 = vsel %vm4610_vm6, %v3905_v15, %v2983_v42  ;;  %v3006_v28 = vrot.slane %v3004_v58, 4  ;;  %v3005_v48 = vsel %vm4610_vm6, %v3908_v27, %v3004_v58 }
 0x290   : > { %3117 = vst.msk [vmem:[#allocation2 + $0x10] sm:$0xf] %vm3112_vm15, %v3025_v30  ;;  %2276 = vrot.lane.b32.xlu2 %v5962_v17, %s4201_s6  ;;  %v3881_v17 = vld [vmem:[%s4258_s25 + $0xa4] sm:$0x1]  ;;  %v2745_v30 = vshll.u32 %v6083_v60, 16  ;;  %s3764_s25 = sshll.u32 %s6369_s18, 3 }
 0x291   : > { %v2659_v53 = vshll.u32 %v3881_v17, 16  ;;  %v2986_v46 = vrot.slane %v3881_v17, 5  ;;  %v2742_v17 = vor.u32 %v2741_v47, %v2738_v51  ;;  %s277_s28 = scalar_lea.vmem %s6315_s4, %s3764_s25 }
 0x292   : > { %v2796_v12 = vpop.permute.xlu2 %2795 }
 0x293   : > { %v2661_v19 = vrot.slane %v2659_v53, 5  ;;  %v2987_v20 = vsel %vm4610_vm6, %v2985_v16, %v2986_v46  ;;  %v2743_v23 = vrot.slane %v2742_v17, 4  ;;  %v6147_v46 = vld [vmem:[%s6313_s2] ss:$0 sm:$0xff] }
 0x294   : > { %2290 = vrot.lane.b32.xlu1 %v6023_v56, %s4201_s6  ;;  %v2733_v56 = vrot.slane %v2731_v55, 5 }
 0x295   : > { %3046 = vrot.lane.b32.xlu0 %v2959_v62, %s4203_s8  ;;  %v2662_v24 = vsel %vm4292_vm2, %v2657_v50, %v2661_v19  ;;  %v3014_v50 = vrot.slane %v3893_v37, 5 }
 0x296   : > { %v2283_v32 = vpop.permute.xlu1 %2282 }
 0x297   : > { %2361 = vst.msk [vmem:[#allocation2 + $0x48] sm:$0xf] %vm2342_vm13, %v2283_v32  ;;  %v3039_v6 = vpop.permute.xlu0 %3038  ;;  %v4003_v9 = vld [vmem:[#allocation2 + $0x10] sm:$0xff]  ;;  %v2747_v32 = vrot.slane %v2745_v30, 5 }
 0x298   : > { %3124 = vst.msk [vmem:[#allocation2 + $0x2c] sm:$0xf] %vm3112_vm15, %v3039_v6  ;;  %3984 = vmatmul.msk.bf16.gmra.mxu0 %vm3281_vm0, %v4003_v9  ;;  %3044 = vrot.lane.b32.xlu2 %v2956_v4, %s4203_s8  ;;  %v2755_v6 = vshll.u32 %v3893_v37, 16  ;;  %v3008_v9 = vsel %vm4610_vm6, %v3006_v28, %v3007_v2 }
 0x299   : > { %2874 = vst.msk [vmem:[#allocation2 + $0x48] sm:$0xf] %vm2855_vm14, %v2796_v12  ;;  %v2752_v57 = vor.u32 %v2751_v10, %v2747_v32  ;;  %v2748_v3 = vsel %vm4292_vm2, %v2743_v23, %v2747_v32 }
 0x29a   : > { %v2810_v61 = vpop.permute.xlu2 %2809 }
 0x29b   : > { %v2753_v54 = vrot.slane %v2752_v57, 4 }
 0x29c   : > { %2304 = vrot.lane.b32.xlu1 %v6045_v26, %s4201_s6  ;;  %v2757_v26 = vrot.slane %v2755_v6, 5 }
 0x29d   : > { %2302 = vrot.lane.b32.xlu0 %v6014_v11, %s4201_s6 }
 0x29e   : > { %v2297_v21 = vpop.permute.xlu1 %2296  ;;  %v2758_v11 = vsel %vm4292_vm2, %v2753_v54, %v2757_v26 }
 0x29f   : > { %2368 = vst.msk [vmem:[#allocation2 + $0x64] sm:$0xf] %vm2342_vm13, %v2297_v21  ;;  %v2295_v5 = vpop.permute.xlu0 %2294  ;;  %v4006_v63 = vld [vmem:[#allocation2 + $0x28] sm:$0xff]  ;;  %v3013_v21 = vrot.slane %v3011_v18, 4 }
 0x2a0   : > { %2367 = vst.msk [vmem:[#allocation2 + $0x60] sm:$0xf] %vm2342_vm13, %v2295_v5  ;;  %3987 = vmatmul.msk.bf16.gmra.mxu1 %vm3281_vm0, %v4006_v63  ;;  %2292 = vrot.lane.b32.xlu2 %v6019_v49, %s4201_s6  ;;  %v2729_v49 = vrot.slane %v2728_v36, 4  ;;  %v3909_v63 = vrot.slane %v6076_v29, 9 }
 0x2a1   : > { %2881 = vst.msk [vmem:[#allocation2 + $0x64] sm:$0xf] %vm2855_vm14, %v2810_v61  ;;  %v3015_v25 = vsel %vm4610_vm6, %v3013_v21, %v3014_v50 }
 0x2a2   : > { %v3065_v41 = vpop.permute.xlu2 %3064  ;;  %v2734_v44 = vsel %vm4292_vm2, %v2729_v49, %v2733_v56  ;;  %v3012_v42 = vsel %vm4610_vm6, %v3909_v63, %v3011_v18 }
 0x2a4   : > { %2815 = vrot.lane.b32.xlu1 %v2724_v8, %s4202_s7 }
 0x2a5   : > { %2805 = vrot.lane.b32.xlu0 %v2662_v24, %s4202_s7 }
 0x2a6   : > { %v2808_v38 = vpop.permute.xlu1 %2807 }
 0x2a7   : > { %2880 = vst.msk [vmem:[#allocation2 + $0x60] sm:$0xf] %vm2855_vm14, %v2808_v38  ;;  %v2798_v35 = vpop.permute.xlu0 %2797 }
 0x2a8   : > { %2875 = vst.msk [vmem:[#allocation2 + $0x4c] sm:$0xf] %vm2855_vm14, %v2798_v35  ;;  %2803 = vrot.lane.b32.xlu2 %v2652_v39, %s4202_s7 }
 0x2a9   : > { %3137 = vst.msk [vmem:[#allocation2 + $0x60] sm:$0xf] %vm3112_vm15, %v3065_v41 }
 0x2aa   : > { %v2261_v62 = vpop.permute.xlu2 %2260 }
 0x2ab   : > { %2350 = vst.msk [vmem:[#allocation2 + $0x1c] sm:$0xf] %vm2342_vm13, %v2261_v62 }
 0x2ac   : > { %3062 = vrot.lane.b32.xlu1 %v2987_v20, %s4203_s8 }
 0x2ad   : > { %3060 = vrot.lane.b32.xlu0 %v2984_v52, %s4203_s8 }
 0x2ae   : > { %v3055_v34 = vpop.permute.xlu1 %3054 }
 0x2af   : > { %3132 = vst.msk [vmem:[#allocation2 + $0x4c] sm:$0xf] %vm3112_vm15, %v3055_v34  ;;  %v3053_v12 = vpop.permute.xlu0 %3052 }
 0x2b0   : > { %3131 = vst.msk [vmem:[#allocation2 + $0x48] sm:$0xf] %vm3112_vm15, %v3053_v12  ;;  %2817 = vrot.lane.b32.xlu2 %v2734_v44, %s4202_s7 }
 0x2b2   : > { %v2772_v4 = vpop.permute.xlu2 %2771 }
 0x2b4   : > { %2306 = vrot.lane.b32.xlu1 %v6076_v29, %s4201_s6 }
 0x2b5   : > { %3074 = vrot.lane.b32.xlu0 %v3008_v9, %s4203_s8 }
 0x2b6   : > { %v2259_v59 = vpop.permute.xlu1 %2258 }
 0x2b7   : > { %2349 = vst.msk [vmem:[#allocation2 + $0x18] sm:$0xf] %vm2342_vm13, %v2259_v59  ;;  %v3067_v43 = vpop.permute.xlu0 %3066  ;;  %v4010_v53 = vld [vmem:[#allocation2 + $0x48] sm:$0xff] }
 0x2b8   : > { %3138 = vst.msk [vmem:[#allocation2 + $0x64] sm:$0xf] %vm3112_vm15, %v3067_v43  ;;  %3991 = vmatmul.msk.bf16.gmra.mxu2 %vm3281_vm0, %v4010_v53  ;;  %3072 = vrot.lane.b32.xlu2 %v3005_v48, %s4203_s8 }
 0x2b9   : > { %2862 = vst.msk [vmem:[#allocation2 + $0x18] sm:$0xf] %vm2855_vm14, %v2772_v4 }
 0x2ba   : > { %v2786_v40 = vpop.permute.xlu2 %2785 }
 0x2bc   : > { %2821 = vrot.lane.b32.xlu1 %v2758_v11, %s4202_s7 }
 0x2bd   : > { %2819 = vrot.lane.b32.xlu0 %v2748_v3, %s4202_s7 }
 0x2be   : > { %v2273_v61 = vpop.permute.xlu1 %2272 }
 0x2bf   : > { %2356 = vst.msk [vmem:[#allocation2 + $0x34] sm:$0xf] %vm2342_vm13, %v2273_v61  ;;  %v2271_v19 = vpop.permute.xlu0 %2270  ;;  %v4013_v5 = vld [vmem:[#allocation2 + $0x60] sm:$0xff] }
 0x2c0   : > { %2355 = vst.msk [vmem:[#allocation2 + $0x30] sm:$0xf] %vm2342_vm13, %v2271_v19  ;;  %3994 = vmatmul.msk.bf16.vlgmr.msra.gmra.mxu3 %vm3281_vm0, %v4013_v5  ;;  %2308 = vrot.lane.b32.xlu2 %v6083_v60, %s4201_s6  ;;  %s284_s6 = scalar_lea.vmem %s6316_s5, %s3764_s25 }
 0x2c1   : > { %2869 = vst.msk [vmem:[#allocation2 + $0x34] sm:$0xf] %vm2855_vm14, %v2786_v40 }
 0x2c2   : > { %v3041_v31 = vpop.permute.xlu2 %3040 }
 0x2c5   : > { %3078 = vrot.lane.b32.xlu0 %v3015_v25, %s4203_s8 }
 0x2c6   : > { %v2784_v22 = vpop.permute.xlu1 %2783 }
 0x2c7   : > { %2868 = vst.msk [vmem:[#allocation2 + $0x30] sm:$0xf] %vm2855_vm14, %v2784_v22  ;;  %v2774_v8 = vpop.permute.xlu0 %2773 }
 0x2c8   : > { %2863 = vst.msk [vmem:[#allocation2 + $0x1c] sm:$0xf] %vm2855_vm14, %v2774_v8  ;;  %3076 = vrot.lane.b32.xlu2 %v3012_v42, %s4203_s8 }
 0x2c9   : > { %3125 = vst.msk [vmem:[#allocation2 + $0x30] sm:$0xf] %vm3112_vm15, %v3041_v31 }
 0x2ca   : > { %v2289_v24 = vpop.permute.xlu2 %2288 }
 0x2cb   : > { %2364 = vst.msk [vmem:[#allocation2 + $0x54] sm:$0xf] %vm2342_vm13, %v2289_v24 }
 0x2cd   : > { %v3343_v45 = vpop.f32.mrf.mxu0 }
 0x2ce   : > { %v3031_v14 = vpop.permute.xlu1 %3030  ;;  %v3344_v13 = vadd.f32 %v6147_v46, %v3343_v45 }
 0x2cf   : > { %3120 = vst.msk [vmem:[#allocation2 + $0x1c] sm:$0xf] %vm3112_vm15, %v3031_v14  ;;  %v3029_v16 = vpop.permute.xlu0 %3028 }
 0x2d0   : > { %3119 = vst.msk [vmem:[#allocation2 + $0x18] sm:$0xf] %vm3112_vm15, %v3029_v16  ;;  %v3519_v39 = vmul.f32 %v3344_v13, %v3344_v13 }
 0x2d2   : > { %v2800_v41 = vpop.permute.xlu2 %2799 }
 0x2d5   : > { %v3345_v38 = vpop.f32.mrf.mxu0 }
 0x2d6   : > { %v2287_v15 = vpop.permute.xlu1 %2286  ;;  %v3346_v33 = vadd.f32 %v6147_v46, %v3345_v38 }
 0x2d7   : > { %2363 = vst.msk [vmem:[#allocation2 + $0x50] sm:$0xf] %vm2342_vm13, %v2287_v15  ;;  %v3043_v35 = vpop.permute.xlu0 %3042  ;;  %v4004_v29 = vld [vmem:[#allocation2 + $0x18] sm:$0xff] }
 0x2d8   : > { %3126 = vst.msk [vmem:[#allocation2 + $0x34] sm:$0xf] %vm3112_vm15, %v3043_v35  ;;  %v4022_v60 = vpack.c.bf16 %v3346_v33, %v3344_v13  ;;  %v3487_v36 = vadd.f32 %v3346_v33, %v3344_v13  ;;  %v3520_v55 = vmul.f32 %v3346_v33, %v3346_v33  ;;  %3985 = vmatmul.msk.bf16.gmra.mxu0 %vm3281_vm0, %v4004_v29 }
 0x2d9   : > { %2876 = vst.msk [vmem:[#allocation2 + $0x50] sm:$0xf] %vm2855_vm14, %v2800_v41 }
 0x2da   : > { %4023 = vst [vmem:[%s6157_s24] sm:$0xff] %v4022_v60   ;;  %v3551_v58 = vadd.f32 %v3520_v55, %v3519_v39  ;;  %v2814_v20 = vpop.permute.xlu2 %2813 }
 0x2de   : > { %v2301_v7 = vpop.permute.xlu1 %2300 }
 0x2df   : > { %2370 = vst.msk [vmem:[#allocation2 + $0x6c] sm:$0xf] %vm2342_vm13, %v2301_v7  ;;  %v2299_v52 = vpop.permute.xlu0 %2298  ;;  %v4007_v1 = vld [vmem:[#allocation2 + $0x30] sm:$0xff] }
 0x2e0   : > { %2369 = vst.msk [vmem:[#allocation2 + $0x68] sm:$0xf] %vm2342_vm13, %v2299_v52  ;;  %3988 = vmatmul.msk.bf16.gmra.mxu1 %vm3281_vm0, %v4007_v1 }
 0x2e1   : > { %2883 = vst.msk [vmem:[#allocation2 + $0x6c] sm:$0xf] %vm2855_vm14, %v2814_v20 }
 0x2e2   : > { %v3069_v0 = vpop.permute.xlu2 %3068 }
 0x2e5   : > { %v3348_v49 = vpop.f32.mrf.mxu0 }
 0x2e6   : > { %v2812_v30 = vpop.permute.xlu1 %2811  ;;  %v3349_v28 = vadd.f32 %v6147_v46, %v3348_v49 }
 0x2e7   : > { %2882 = vst.msk [vmem:[#allocation2 + $0x68] sm:$0xf] %vm2855_vm14, %v2812_v30  ;;  %v2802_v56 = vpop.permute.xlu0 %2801 }
 0x2e8   : > { %2877 = vst.msk [vmem:[#allocation2 + $0x54] sm:$0xf] %vm2855_vm14, %v2802_v56  ;;  %v3488_v2 = vadd.f32 %v3487_v36, %v3349_v28  ;;  %v3521_v62 = vmul.f32 %v3349_v28, %v3349_v28 }
 0x2e9   : > { %3139 = vst.msk [vmem:[#allocation2 + $0x68] sm:$0xf] %vm3112_vm15, %v3069_v0 }
 0x2ea   : > { %v3552_v10 = vadd.f32 %v3551_v58, %v3521_v62  ;;  %v2277_v34 = vpop.permute.xlu2 %2276 }
 0x2eb   : > { %2358 = vst.msk [vmem:[#allocation2 + $0x3c] sm:$0xf] %vm2342_vm13, %v2277_v34 }
 0x2ed   : > { %v3363_v47 = vpop.f32.mrf.mxu1  ;;  %v3350_v12 = vpop.f32.mrf.mxu0 }
 0x2ee   : > { %v3059_v51 = vpop.permute.xlu1 %3058  ;;  %v3351_v32 = vadd.f32 %v6147_v46, %v3350_v12  ;;  %v6176_v26 = vadd.f32 %v6147_v46, %v3363_v47 }
 0x2ef   : > { %3134 = vst.msk [vmem:[#allocation2 + $0x54] sm:$0xf] %vm3112_vm15, %v3059_v51  ;;  %v3057_v37 = vpop.permute.xlu0 %3056 }
 0x2f0   : > { %3133 = vst.msk [vmem:[#allocation2 + $0x50] sm:$0xf] %vm3112_vm15, %v3057_v37  ;;  %v4027_v44 = vpack.c.bf16 %v3351_v32, %v3349_v28  ;;  %v3489_v57 = vadd.f32 %v3488_v2, %v3351_v32  ;;  %v3522_v6 = vmul.f32 %v3351_v32, %v3351_v32 }
 0x2f2   : > { %4099 = vst [vmem:[%s6157_s24 + $0x8] sm:$0xff] %v4027_v44   ;;  %v3553_v9 = vadd.f32 %v3552_v10, %v3522_v6  ;;  %v3045_v17 = vpop.permute.xlu2 %3044 }
 0x2f5   : > { %v3365_v54 = vpop.f32.mrf.mxu1 }
 0x2f6   : > { %v2275_v27 = vpop.permute.xlu1 %2274  ;;  %v6180_v4 = vadd.f32 %v6147_v46, %v3365_v54 }
 0x2f7   : > { %2357 = vst.msk [vmem:[#allocation2 + $0x38] sm:$0xf] %vm2342_vm13, %v2275_v27  ;;  %v3071_v59 = vpop.permute.xlu0 %3070  ;;  %v4011_v23 = vld [vmem:[#allocation2 + $0x50] sm:$0xff] }
 0x2f8   : > { %3140 = vst.msk [vmem:[#allocation2 + $0x6c] sm:$0xf] %vm3112_vm15, %v3071_v59  ;;  %v4042_v43 = vpack.c.bf16 %v6180_v4, %v6176_v26  ;;  %3992 = vmatmul.msk.bf16.gmra.mxu2 %vm3281_vm0, %v4011_v23 }
 0x2fa   : > { %4102 = vst [vmem:[%s6157_s24 + $0x20] sm:$0xff] %v4042_v43   ;;  %v2293_v53 = vpop.permute.xlu2 %2292 }
 0x2fb   : > { %2366 = vst.msk [vmem:[#allocation2 + $0x5c] sm:$0xf] %vm2342_vm13, %v2293_v53 }
 0x2fe   : > { %v2790_v48 = vpop.permute.xlu1 %2789 }
 0x2ff   : > { %2871 = vst.msk [vmem:[#allocation2 + $0x3c] sm:$0xf] %vm2855_vm14, %v2790_v48  ;;  %v2788_v11 = vpop.permute.xlu0 %2787  ;;  %v4014_v3 = vld [vmem:[#allocation2 + $0x68] sm:$0xff] }
 0x300   : > { %2870 = vst.msk [vmem:[#allocation2 + $0x38] sm:$0xf] %vm2855_vm14, %v2788_v11  ;;  %3995 = vmatmul.msk.bf16.gmra.mxu3 %vm3281_vm0, %v4014_v3 }
 0x301   : > { %3127 = vst.msk [vmem:[#allocation2 + $0x38] sm:$0xf] %vm3112_vm15, %v3045_v17 }
 0x302   : > { %v2804_v40 = vpop.permute.xlu2 %2803 }
 0x303   : > { %v3383_v18 = vpop.f32.mrf.mxu2 }
 0x304   : > { %v6196_v19 = vadd.f32 %v6147_v46, %v3383_v18 }
 0x306   : > { %v2291_v61 = vpop.permute.xlu1 %2290 }
 0x307   : > { %2365 = vst.msk [vmem:[#allocation2 + $0x58] sm:$0xf] %vm2342_vm13, %v2291_v61  ;;  %v3047_v21 = vpop.permute.xlu0 %3046 }
 0x308   : > { %3128 = vst.msk [vmem:[#allocation2 + $0x3c] sm:$0xf] %vm3112_vm15, %v3047_v21  ;;  %v3527_v21 = vmul.f32 %v6176_v26, %v6176_v26 }
 0x309   : > { %2878 = vst.msk [vmem:[#allocation2 + $0x58] sm:$0xf] %vm2855_vm14, %v2804_v40 }
 0x30a   : > { %v2818_v25 = vpop.permute.xlu2 %2817 }
 0x30b   : > { %v3385_v50 = vpop.f32.mrf.mxu2 }
 0x30c   : > { %v6199_v5 = vadd.f32 %v6147_v46, %v3385_v50 }
 0x30e   : > { %v2305_v63 = vpop.permute.xlu1 %2304  ;;  %v4062_v31 = vpack.c.bf16 %v6199_v5, %v6196_v19 }
 0x30f   : > { %2372 = vst.msk [vmem:[#allocation2 + $0x74] sm:$0xf] %vm2342_vm13, %v2305_v63  ;;  %v2303_v22 = vpop.permute.xlu0 %2302  ;;  %v4008_v8 = vld [vmem:[#allocation2 + $0x38] sm:$0xff]  ;;  %v3528_v63 = vmul.f32 %v6180_v4, %v6180_v4 }
 0x310   : > { %2371 = vst.msk [vmem:[#allocation2 + $0x70] sm:$0xf] %vm2342_vm13, %v2303_v22  ;;  %3989 = vmatmul.msk.bf16.gmra.mxu1 %vm3281_vm0, %v4008_v8 }
 0x311   : > { %4106 = vst [vmem:[%s6157_s24 + $0x40] sm:$0xff] %v4062_v31  }
 0x312   : > { %2885 = vst.msk [vmem:[#allocation2 + $0x74] sm:$0xf] %vm2855_vm14, %v2818_v25  ;;  %v3073_v42 = vpop.permute.xlu2 %3072 }
 0x315   : > { %v3353_v14 = vpop.f32.mrf.mxu0 }
 0x316   : > { %v2816_v24 = vpop.permute.xlu1 %2815  ;;  %v3354_v16 = vadd.f32 %v6147_v46, %v3353_v14 }
 0x317   : > { %2884 = vst.msk [vmem:[#allocation2 + $0x70] sm:$0xf] %vm2855_vm14, %v2816_v24  ;;  %v2806_v45 = vpop.permute.xlu0 %2805 }
 0x318   : > { %2879 = vst.msk [vmem:[#allocation2 + $0x5c] sm:$0xf] %vm2855_vm14, %v2806_v45  ;;  %v3490_v13 = vadd.f32 %v3489_v57, %v3354_v16  ;;  %v3523_v41 = vmul.f32 %v3354_v16, %v3354_v16 }
 0x319   : > { %3141 = vst.msk [vmem:[#allocation2 + $0x70] sm:$0xf] %vm3112_vm15, %v3073_v42 }
 0x31a   : > { %v3554_v15 = vadd.f32 %v3553_v9, %v3523_v41  ;;  %v2309_v38 = vpop.permute.xlu2 %2308 }
 0x31b   : > { %2374 = vst.msk [vmem:[#allocation2 + $0x7c] sm:$0xf] %vm2342_vm13, %v2309_v38 }
 0x31d   : > { %v3368_v33 = vpop.f32.mrf.mxu1  ;;  %v3355_v39 = vpop.f32.mrf.mxu0 }
 0x31e   : > { %v3063_v35 = vpop.permute.xlu1 %3062  ;;  %v3356_v60 = vadd.f32 %v6147_v46, %v3355_v39  ;;  %v3369_v1 = vadd.f32 %v6147_v46, %v3368_v33 }
 0x31f   : > { %3136 = vst.msk [vmem:[#allocation2 + $0x5c] sm:$0xf] %vm3112_vm15, %v3063_v35  ;;  %v3061_v29 = vpop.permute.xlu0 %3060 }
 0x320   : > { %3135 = vst.msk [vmem:[#allocation2 + $0x58] sm:$0xf] %vm3112_vm15, %v3061_v29  ;;  %v4032_v36 = vpack.c.bf16 %v3356_v60, %v3354_v16  ;;  %v3491_v55 = vadd.f32 %v3490_v13, %v3356_v60  ;;  %v3524_v58 = vmul.f32 %v3356_v60, %v3356_v60  ;;  %v3529_v8 = vmul.f32 %v3369_v1, %v3369_v1 }
 0x322   : > { %4100 = vst [vmem:[%s6157_s24 + $0x10] sm:$0xff] %v4032_v36   ;;  %v3555_v20 = vadd.f32 %v3554_v15, %v3524_v58  ;;  %v3077_v2 = vpop.permute.xlu2 %3076 }
 0x325   : > { %v3370_v7 = vpop.f32.mrf.mxu1 }
 0x326   : > { %v2307_v52 = vpop.permute.xlu1 %2306  ;;  %v3371_v0 = vadd.f32 %v6147_v46, %v3370_v7 }
 0x327   : > { %v3075_v30 = vpop.permute.xlu0 %3074  ;;  %v4012_v49 = vld [vmem:[#allocation2 + $0x58] sm:$0xff]  ;;  %2373 = vst.msk [vmem:[#allocation2 + $0x78] sm:$0xf] %vm2342_vm13, %v2307_v52 }
 0x328   : > { %3142 = vst.msk [vmem:[#allocation2 + $0x74] sm:$0xf] %vm3112_vm15, %v3075_v30  ;;  %v4047_v56 = vpack.c.bf16 %v3371_v0, %v3369_v1  ;;  %3993 = vmatmul.msk.bf16.gmra.mxu2 %vm3281_vm0, %v4012_v49  ;;  %v3530_v13 = vmul.f32 %v3371_v0, %v3371_v0 }
 0x32a   : > { %4103 = vst [vmem:[%s6157_s24 + $0x28] sm:$0xff] %v4047_v56  }
 0x32e   : > { %v2822_v28 = vpop.permute.xlu1 %2821 }
 0x32f   : > { %v2820_v62 = vpop.permute.xlu0 %2819  ;;  %v4015_v10 = vld [vmem:[#allocation2 + $0x70] sm:$0xff]  ;;  %2887 = vst.msk [vmem:[#allocation2 + $0x7c] sm:$0xf] %vm2855_vm14, %v2822_v28 }
 0x330   : > { %2886 = vst.msk [vmem:[#allocation2 + $0x78] sm:$0xf] %vm2855_vm14, %v2820_v62  ;;  %3996 = vmatmul.msk.bf16.gmra.mxu3 %vm3281_vm0, %v4015_v10 }
 0x331   : > { %3143 = vst.msk [vmem:[#allocation2 + $0x78] sm:$0xf] %vm3112_vm15, %v3077_v2 }
 0x337   : > { %v3079_v34 = vpop.permute.xlu0 %3078 }
 0x338   : > { %3144 = vst.msk [vmem:[#allocation2 + $0x7c] sm:$0xf] %vm3112_vm15, %v3079_v34 }
 0x33b   : > { %v3388_v51 = vpop.f32.mrf.mxu2 }
 0x33c   : > { %v6230_v32 = vadd.f32 %v6147_v46, %v3388_v51 }
 0x33f   : > { %v4016_v47 = vld [vmem:[#allocation2 + $0x78] sm:$0xff] }
 0x340   : > { %3997 = vmatmul.msk.bf16.gmra.mxu3 %vm3281_vm0, %v4016_v47 }
 0x343   : > { %v3390_v37 = vpop.f32.mrf.mxu2  ;;  %v3403_v12 = vpop.f32.mrf.mxu3 }
 0x344   : > { %v6233_v44 = vadd.f32 %v6147_v46, %v3390_v37  ;;  %v6239_v9 = vadd.f32 %v6147_v46, %v3403_v12 }
 0x346   : > { %v4067_v57 = vpack.c.bf16 %v6233_v44, %v6230_v32 }
 0x348   : > { %4107 = vst [vmem:[%s6157_s24 + $0x48] sm:$0xff] %v4067_v57  }
 0x34b   : > { %v3405_v6 = vpop.f32.mrf.mxu3 }
 0x34c   : > { %v6242_v17 = vadd.f32 %v6147_v46, %v3405_v6  ;;  %v3535_v6 = vmul.f32 %v6196_v19, %v6196_v19 }
 0x34e   : > { %v4082_v27 = vpack.c.bf16 %v6242_v17, %v6239_v9 }
 0x350   : > { %4110 = vst [vmem:[%s6157_s24 + $0x60] sm:$0xff] %v4082_v27  }
 0x355   : > { %v3358_v54 = vpop.f32.mrf.mxu0 }
 0x356   : > { %v3359_v59 = vadd.f32 %v6147_v46, %v3358_v54 }
 0x358   : > { %v3525_v23 = vmul.f32 %v3359_v59, %v3359_v59  ;;  %v3492_v48 = vadd.f32 %v3491_v55, %v3359_v59 }
 0x35a   : > { %v3556_v3 = vadd.f32 %v3555_v20, %v3525_v23 }
 0x35d   : > { %v3360_v43 = vpop.f32.mrf.mxu0  ;;  %v3373_v53 = vpop.f32.mrf.mxu1 }
 0x35e   : > { %v3361_v11 = vadd.f32 %v6147_v46, %v3360_v43  ;;  %v3374_v14 = vadd.f32 %v6147_v46, %v3373_v53  ;;  %v3537_v53 = vmul.f32 %v6230_v32, %v6230_v32 }
 0x360   : > { %v4037_v18 = vpack.c.bf16 %v3361_v11, %v3359_v59  ;;  %v3493_v40 = vadd.f32 %v3492_v48, %v3361_v11  ;;  %v3526_v61 = vmul.f32 %v3361_v11, %v3361_v11  ;;  %v3531_v35 = vmul.f32 %v3374_v14, %v3374_v14 }
 0x361   : > { %v3536_v59 = vmul.f32 %v6199_v5, %v6199_v5 }
 0x362   : > { %4101 = vst [vmem:[%s6157_s24 + $0x18] sm:$0xff] %v4037_v18   ;;  %v3494_v50 = vadd.f32 %v3493_v40, %v6176_v26  ;;  %v3557_v25 = vadd.f32 %v3556_v3, %v3526_v61  ;;  %v3538_v3 = vmul.f32 %v6233_v44, %v6233_v44 }
 0x364   : > { %v3495_v31 = vadd.f32 %v3494_v50, %v6180_v4  ;;  %v3558_v22 = vadd.f32 %v3557_v25, %v3527_v21 }
 0x365   : > { %v3375_v42 = vpop.f32.mrf.mxu1 }
 0x366   : > { %v3559_v24 = vadd.f32 %v3558_v22, %v3528_v63  ;;  %v3496_v45 = vadd.f32 %v3495_v31, %v3369_v1  ;;  %v3376_v16 = vadd.f32 %v6147_v46, %v3375_v42 }
 0x368   : > { %v3497_v41 = vadd.f32 %v3496_v45, %v3371_v0  ;;  %v3560_v15 = vadd.f32 %v3559_v24, %v3529_v8  ;;  %v4052_v26 = vpack.c.bf16 %v3376_v16, %v3374_v14  ;;  %v3532_v39 = vmul.f32 %v3376_v16, %v3376_v16 }
 0x36a   : > { %v3498_v38 = vadd.f32 %v3497_v41, %v3374_v14  ;;  %v3561_v33 = vadd.f32 %v3560_v15, %v3530_v13  ;;  %4104 = vst [vmem:[%s6157_s24 + $0x30] sm:$0xff] %v4052_v26   ;;  %v3543_v13 = vmul.f32 %v6239_v9, %v6239_v9  ;;  %v3544_v26 = vmul.f32 %v6242_v17, %v6242_v17 }
 0x36c   : > { %v3562_v29 = vadd.f32 %v3561_v33, %v3531_v35  ;;  %v3499_v4 = vadd.f32 %v3498_v38, %v3376_v16 }
 0x36e   : > { %v3563_v60 = vadd.f32 %v3562_v29, %v3532_v39 }
 0x37b   : > { %v3393_v36 = vpop.f32.mrf.mxu2 }
 0x37c   : > { %v3394_v20 = vadd.f32 %v6147_v46, %v3393_v36 }
 0x37e   : > { %v3539_v61 = vmul.f32 %v3394_v20, %v3394_v20 }
 0x383   : > { %v3395_v55 = vpop.f32.mrf.mxu2  ;;  %v3408_v58 = vpop.f32.mrf.mxu3 }
 0x384   : > { %v3396_v7 = vadd.f32 %v6147_v46, %v3395_v55  ;;  %v3409_v0 = vadd.f32 %v6147_v46, %v3408_v58 }
 0x386   : > { %v4072_v52 = vpack.c.bf16 %v3396_v7, %v3394_v20  ;;  %v3540_v25 = vmul.f32 %v3396_v7, %v3396_v7 }
 0x388   : > { %4108 = vst [vmem:[%s6157_s24 + $0x50] sm:$0xff] %v4072_v52  }
 0x38b   : > { %v3410_v1 = vpop.f32.mrf.mxu3 }
 0x38c   : > { %v3411_v30 = vadd.f32 %v6147_v46, %v3410_v1 }
 0x38d   : > { %v3378_v49 = vpop.f32.mrf.mxu1 }
 0x38e   : > { %v4087_v56 = vpack.c.bf16 %v3411_v30, %v3409_v0  ;;  %v3379_v28 = vadd.f32 %v6147_v46, %v3378_v49 }
 0x390   : > { %4111 = vst [vmem:[%s6157_s24 + $0x68] sm:$0xff] %v4087_v56   ;;  %v3533_v62 = vmul.f32 %v3379_v28, %v3379_v28  ;;  %v3500_v34 = vadd.f32 %v3499_v4, %v3379_v28 }
 0x392   : > { %v3564_v37 = vadd.f32 %v3563_v60, %v3533_v62  ;;  %v3545_v60 = vmul.f32 %v3409_v0, %v3409_v0 }
 0x395   : > { %v3380_v2 = vpop.f32.mrf.mxu1 }
 0x396   : > { %v3381_v10 = vadd.f32 %v6147_v46, %v3380_v2 }
 0x398   : > { %v4057_v51 = vpack.c.bf16 %v3381_v10, %v3379_v28  ;;  %v3534_v47 = vmul.f32 %v3381_v10, %v3381_v10  ;;  %v3501_v12 = vadd.f32 %v3500_v34, %v3381_v10 }
 0x39a   : > { %4105 = vst [vmem:[%s6157_s24 + $0x38] sm:$0xff] %v4057_v51   ;;  %v3565_v57 = vadd.f32 %v3564_v37, %v3534_v47  ;;  %v3502_v27 = vadd.f32 %v3501_v12, %v6196_v19 }
 0x39c   : > { %v3566_v54 = vadd.f32 %v3565_v57, %v3535_v6  ;;  %v3503_v23 = vadd.f32 %v3502_v27, %v6199_v5 }
 0x39e   : > { %v3567_v43 = vadd.f32 %v3566_v54, %v3536_v59  ;;  %v3504_v48 = vadd.f32 %v3503_v23, %v6230_v32 }
 0x3a0   : > { %v3568_v11 = vadd.f32 %v3567_v43, %v3537_v53  ;;  %v3505_v18 = vadd.f32 %v3504_v48, %v6233_v44 }
 0x3a2   : > { %v3569_v19 = vadd.f32 %v3568_v11, %v3538_v3  ;;  %v3506_v50 = vadd.f32 %v3505_v18, %v3394_v20 }
 0x3a4   : > { %v3570_v5 = vadd.f32 %v3569_v19, %v3539_v61  ;;  %v3507_v63 = vadd.f32 %v3506_v50, %v3396_v7 }
 0x3a6   : > { %v3571_v42 = vadd.f32 %v3570_v5, %v3540_v25 }
 0x3ab   : > { %v3398_v40 = vpop.f32.mrf.mxu2 }
 0x3ac   : > { %v3399_v21 = vadd.f32 %v6147_v46, %v3398_v40 }
 0x3ae   : > { %v3541_v31 = vmul.f32 %v3399_v21, %v3399_v21  ;;  %v3508_v32 = vadd.f32 %v3507_v63, %v3399_v21 }
 0x3b0   : > { %v3572_v14 = vadd.f32 %v3571_v42, %v3541_v31 }
 0x3b3   : > { %v3400_v22 = vpop.f32.mrf.mxu2  ;;  %v3413_v8 = vpop.f32.mrf.mxu3 }
 0x3b4   : > { %v3401_v24 = vadd.f32 %v6147_v46, %v3400_v22  ;;  %v3414_v4 = vadd.f32 %v6147_v46, %v3413_v8 }
 0x3b6   : > { %v4077_v45 = vpack.c.bf16 %v3401_v24, %v3399_v21  ;;  %v3509_v44 = vadd.f32 %v3508_v32, %v3401_v24  ;;  %v3542_v16 = vmul.f32 %v3401_v24, %v3401_v24  ;;  %v3547_v49 = vmul.f32 %v3414_v4, %v3414_v4 }
 0x3b8   : > { %4109 = vst [vmem:[%s6157_s24 + $0x58] sm:$0xff] %v4077_v45   ;;  %v3510_v41 = vadd.f32 %v3509_v44, %v6239_v9  ;;  %v3573_v15 = vadd.f32 %v3572_v14, %v3542_v16  ;;  %v3546_v9 = vmul.f32 %v3411_v30, %v3411_v30 }
 0x3ba   : > { %v3511_v38 = vadd.f32 %v3510_v41, %v6242_v17  ;;  %v3574_v35 = vadd.f32 %v3573_v15, %v3543_v13 }
 0x3bb   : > { %v3415_v33 = vpop.f32.mrf.mxu3 }
 0x3bc   : > { %v3575_v29 = vadd.f32 %v3574_v35, %v3544_v26  ;;  %v3416_v39 = vadd.f32 %v6147_v46, %v3415_v33  ;;  %v3512_v36 = vadd.f32 %v3511_v38, %v3409_v0 }
 0x3be   : > { %v4092_v55 = vpack.c.bf16 %v3416_v39, %v3414_v4  ;;  %v3576_v58 = vadd.f32 %v3575_v29, %v3545_v60  ;;  %v3513_v20 = vadd.f32 %v3512_v36, %v3411_v30  ;;  %v3548_v2 = vmul.f32 %v3416_v39, %v3416_v39 }
 0x3c0   : > { %4112 = vst [vmem:[%s6157_s24 + $0x70] sm:$0xff] %v4092_v55   ;;  %v3577_v52 = vadd.f32 %v3576_v58, %v3546_v9  ;;  %v3514_v1 = vadd.f32 %v3513_v20, %v3414_v4 }
 0x3c2   : > { %v3578_v56 = vadd.f32 %v3577_v52, %v3547_v49  ;;  %v3515_v28 = vadd.f32 %v3514_v1, %v3416_v39 }
 0x3c3   : > { %v3418_v7 = vpop.f32.mrf.mxu3 }
 0x3c4   : > { %v3419_v17 = vadd.f32 %v6147_v46, %v3418_v7  ;;  %v3579_v34 = vadd.f32 %v3578_v56, %v3548_v2 }
 0x3c6   : > { %v3549_v62 = vmul.f32 %v3419_v17, %v3419_v17  ;;  %v3516_v0 = vadd.f32 %v3515_v28, %v3419_v17 }
 0x3c8   : > { %v3580_v47 = vadd.f32 %v3579_v34, %v3549_v62 }
 0x3cb   : > { %v3420_v10 = vpop.f32.mrf.mxu3 }
 0x3cc   : > { %v3421_v51 = vadd.f32 %v6147_v46, %v3420_v10 }
 0x3ce   : > { %v4097_v30 = vpack.c.bf16 %v3421_v51, %v3419_v17  ;;  %v3517_v37 = vadd.f32 %v3516_v0, %v3421_v51  ;;  %v3550_v12 = vmul.f32 %v3421_v51, %v3421_v51 }
 0x3d0   : > { %4113 = vst [vmem:[%s6157_s24 + $0x78] sm:$0xff] %v4097_v30   ;;  %v3581_v57 = vadd.f32 %v3580_v47, %v3550_v12 }
 0x3d1   : > { %3518 = vst [vmem:[%s277_s28] sm:$0xff] %v3517_v37 }
 0x3d2   : > { %3582 = vst [vmem:[%s284_s6] sm:$0xff] %v3581_v57 }
 0x3d3 PF: > { %s16_s20 = sadd.s32 1, %s4194_s20   ;;  %s6364_s18 = smov %s4190_s19 }
 0x3d4   : > { %p13_p5 = scmp.ge.s32.totalorder %s16_s20, 4   ;;  %s6365_s19 = smov %s6367_s21 }
 0x3d6   :  { %15 = sbr.rel (!%p13_p5) target bundleno = 2 (0x2), region = 89 }

</bundles_post_ra>
